<compile_context>
chip_gen: v6e
topology: v6e:2x2x1
jax: 0.10.0
libtpu: 0.0.40
codegen_flags: <defaults>
</compile_context>

<pallas_src>
import functools
import math

import jax
import jax.numpy as jnp
from jax.experimental import pallas as pl
from jax.experimental.pallas import tpu as pltpu

EPS = 1e-6          # Norm eps (annotated-transformer style Norm)
NEG_INF = -1e9      # masked_fill value used in attention


def _decoder_kernel(x_ref, mem_ref, tmask_ref, smask_ref,
                    lng_ref, lnb_ref,
                    swq_ref, sbq_ref, swk_ref, sbk_ref,
                    swv_ref, sbv_ref, swo_ref, sbo_ref,
                    cwq_ref, cbq_ref, cwk_ref, cbk_ref,
                    cwv_ref, cbv_ref, cwo_ref, cbo_ref,
                    w1_ref, b1_ref, w2_ref, b2_ref,
                    fg_ref, fb_ref,
                    o_ref,
                    xc_ref, *, num_heads):
    layer = pl.program_id(1)
    num_layers = pl.num_programs(1)

    # Load this batch element's x into the VMEM carry once (layer 0 only).
    @pl.when(layer == 0)
    def _():
        xc_ref[...] = x_ref[0].astype(jnp.float32)

    x = xc_ref[...]                                   # (St, D) f32 carry
    mem = mem_ref[0].astype(jnp.float32)              # (Ss, D) f32
    tmask = tmask_ref[...]                            # (St, St) additive f32
    smask = smask_ref[...]                            # (St, Ss) additive f32
    g_all = lng_ref[0].astype(jnp.float32)            # (3, D)
    b_all = lnb_ref[0].astype(jnp.float32)            # (3, D)

    def norm(v, g, b):
        # annotated-transformer Norm: g * (v - mean) / (std + eps) + b, std unbiased.
        d = v.shape[-1]
        mean = jnp.mean(v, axis=-1, keepdims=True)
        var = jnp.sum((v - mean) ** 2, axis=-1, keepdims=True) * (1.0 / (d - 1))
        return g * (v - mean) / (jnp.sqrt(var) + EPS) + b

    def proj(a_bf16, w_ref, b_ref):
        # bf16 MXU matmul, f32 accumulation, f32 bias add.
        return (jnp.dot(a_bf16, w_ref[0].astype(jnp.bfloat16),
                        preferred_element_type=jnp.float32) + b_ref[0])

    def attention(y, kv, mask,
                  wq_ref, bq_ref, wk_ref, bk_ref, wv_ref, bv_ref, wo_ref, bo_ref):
        sq, d = y.shape
        dk = d // num_heads
        scale = 1.0 / math.sqrt(dk)
        y_bf = y.astype(jnp.bfloat16)
        kv_bf = kv.astype(jnp.bfloat16)
        q = proj(y_bf, wq_ref, bq_ref) * scale        # fold 1/sqrt(dk) into q
        k = proj(kv_bf, wk_ref, bk_ref)
        v = proj(kv_bf, wv_ref, bv_ref)
        wo = wo_ref[0].astype(jnp.bfloat16)           # (D, D)

        out = jnp.zeros((sq, d), jnp.float32)
        for h in range(num_heads):                    # static unroll; no concat
            sl = slice(h * dk, (h + 1) * dk)
            qh = q[:, sl].astype(jnp.bfloat16)
            kh = k[:, sl].astype(jnp.bfloat16)
            vh = v[:, sl].astype(jnp.bfloat16)
            s = jax.lax.dot_general(qh, kh, (((1,), (1,)), ((), ())),
                                    preferred_element_type=jnp.float32)
            s = s + mask                              # mask add in f32
            s = s - jnp.max(s, axis=-1, keepdims=True)
            p = jnp.exp(s)
            p = p * pl.reciprocal(jnp.sum(p, axis=-1, keepdims=True), approx=True)
            oh = jnp.dot(p.astype(jnp.bfloat16), vh,
                         preferred_element_type=jnp.float32)
            # accumulate straight into the lane-dense (Sq, D) output via Wo row-block
            out = out + jnp.dot(oh.astype(jnp.bfloat16), wo[sl, :],
                                preferred_element_type=jnp.float32)
        return out + bo_ref[0]

    # sublayer 0: pre-norm masked self-attention + residual
    y = norm(x, g_all[0:1], b_all[0:1])
    x = x + attention(y, y, tmask,
                      swq_ref, sbq_ref, swk_ref, sbk_ref,
                      swv_ref, sbv_ref, swo_ref, sbo_ref)

    # sublayer 1: pre-norm encoder (source) attention + residual
    y = norm(x, g_all[1:2], b_all[1:2])
    x = x + attention(y, mem, smask,
                      cwq_ref, cbq_ref, cwk_ref, cbk_ref,
                      cwv_ref, cbv_ref, cwo_ref, cbo_ref)

    # sublayer 2: pre-norm feed-forward + residual
    y = norm(x, g_all[2:3], b_all[2:3])
    h1 = jnp.maximum(
        jnp.dot(y.astype(jnp.bfloat16), w1_ref[0].astype(jnp.bfloat16),
                preferred_element_type=jnp.float32) + b1_ref[0], 0.0)
    ff = jnp.dot(h1.astype(jnp.bfloat16), w2_ref[0].astype(jnp.bfloat16),
                 preferred_element_type=jnp.float32) + b2_ref[0]
    x = x + ff

    xc_ref[...] = x                                   # carry to next layer

    # final Norm + store (last layer only)
    @pl.when(layer == num_layers - 1)
    def _():
        o_ref[0] = norm(x, fg_ref[...].astype(jnp.float32),
                        fb_ref[...].astype(jnp.float32)).astype(o_ref.dtype)


def decoder_forward(x, memory, src_mask_add, tgt_mask_add, params, num_heads):
    B, St, D = x.shape
    Ss = memory.shape[1]
    L = params["ln_g"].shape[0]
    Dff = params["w1"].shape[-1]

    act = lambda S: pl.BlockSpec((1, S, D), lambda b, l: (b, 0, 0))
    const = lambda r, c: pl.BlockSpec((r, c), lambda b, l: (0, 0))
    perl = lambda r, c: pl.BlockSpec((1, r, c), lambda b, l: (l, 0, 0))

    in_specs = [
        act(St),              # x
        act(Ss),              # encoder memory
        const(St, St),        # target (causal) additive mask
        const(St, Ss),        # source additive mask
        perl(3, D),           # ln gamma (3 sublayers, per layer)
        perl(3, D),           # ln beta
    ]
    for _ in range(2):        # self-attention block, then source-attention block
        for _ in range(4):    # wq/bq, wk/bk, wv/bv, wo/bo
            in_specs += [perl(D, D), perl(1, D)]
    in_specs += [perl(D, Dff), perl(1, Dff), perl(Dff, D), perl(1, D)]   # FFN
    in_specs += [const(1, D), const(1, D)]                               # final Norm

    kernel = functools.partial(_decoder_kernel, num_heads=num_heads)
    return pl.pallas_call(
        kernel,
        out_shape=jax.ShapeDtypeStruct((B, St, D), x.dtype),
        grid=(B, L),
        in_specs=in_specs,
        out_specs=pl.BlockSpec((1, St, D), lambda b, l: (b, 0, 0)),
        scratch_shapes=[pltpu.VMEM((St, D), jnp.float32)],
        compiler_params=pltpu.CompilerParams(
            dimension_semantics=("parallel", "arbitrary")),
    )(x, memory,
      tgt_mask_add, src_mask_add,
      params["ln_g"], params["ln_b"],
      params["s_wq"], params["s_bq"], params["s_wk"], params["s_bk"],
      params["s_wv"], params["s_bv"], params["s_wo"], params["s_bo"],
      params["c_wq"], params["c_bq"], params["c_wk"], params["c_bk"],
      params["c_wv"], params["c_bv"], params["c_wo"], params["c_bo"],
      params["w1"], params["b1"], params["w2"], params["b2"],
      params["fin_g"], params["fin_b"])


# ----------------------------------------------------------------------------
# Parameter init (deterministic, synthetic) and mask helpers.
# ----------------------------------------------------------------------------
def init_decoder_params(key, num_layers, d_model, d_ff):
    def linear(k, d_in, d_out):
        kw, kb = jax.random.split(k)
        w = jax.random.normal(kw, (d_in, d_out), jnp.float32) * (1.0 / math.sqrt(d_in))
        b = jax.random.normal(kb, (1, d_out), jnp.float32) * 0.01
        return w, b

    names = ["s_wq", "s_bq", "s_wk", "s_bk", "s_wv", "s_bv", "s_wo", "s_bo",
             "c_wq", "c_bq", "c_wk", "c_bk", "c_wv", "c_bv", "c_wo", "c_bo",
             "w1", "b1", "w2", "b2"]
    per_layer = {n: [] for n in names}
    ln_g, ln_b = [], []
    for _ in range(num_layers):
        key, *ks = jax.random.split(key, 11)
        ln_g.append(jnp.ones((3, d_model), jnp.float32))
        ln_b.append(jnp.zeros((3, d_model), jnp.float32))
        for i, prefix in enumerate(["s", "c"]):
            for j, nm in enumerate(["wq", "wk", "wv", "wo"]):
                w, b = linear(ks[4 * i + j], d_model, d_model)
                per_layer[f"{prefix}_{nm}"].append(w)
                per_layer[f"{prefix}_b{nm[1]}"].append(b)
        w1, b1 = linear(ks[8], d_model, d_ff)
        w2, b2 = linear(ks[9], d_ff, d_model)
        per_layer["w1"].append(w1)
        per_layer["b1"].append(b1)
        per_layer["w2"].append(w2)
        per_layer["b2"].append(b2)

    params = {n: jnp.stack(v) for n, v in per_layer.items()}
    params["ln_g"] = jnp.stack(ln_g)
    params["ln_b"] = jnp.stack(ln_b)
    params["fin_g"] = jnp.ones((1, d_model), jnp.float32)
    params["fin_b"] = jnp.zeros((1, d_model), jnp.float32)
    return params


def causal_decoder_mask(seq):
    # mirrors decoder_mask(): positions where triu(ones, k=1) == 0 are allowed
    allowed = jnp.tril(jnp.ones((seq, seq), jnp.bool_))
    return jnp.where(allowed, 0.0, NEG_INF).astype(jnp.float32)


if __name__ == "__main__":
    B, S_TGT, S_SRC = 2, 8, 8
    D_MODEL, D_FF, NUM_HEADS, NUM_LAYERS = 32, 64, 4, 2

    key = jax.random.PRNGKey(0)
    kx, km, kp = jax.random.split(key, 3)
    x = jax.random.normal(kx, (B, S_TGT, D_MODEL), jnp.float32)          # decoder input
    encoder_outputs = jax.random.normal(km, (B, S_SRC, D_MODEL), jnp.float32)

    params = init_decoder_params(kp, NUM_LAYERS, D_MODEL, D_FF)
    target_mask = causal_decoder_mask(S_TGT)                              # additive mask
    source_mask = jnp.zeros((S_TGT, S_SRC), jnp.float32)                  # all allowed

    out = decoder_forward(x, encoder_outputs, source_mask, target_mask,
                          params, NUM_HEADS)
    jax.block_until_ready(out)
    assert out.shape == (B, S_TGT, D_MODEL) and out.dtype == jnp.float32
    print("KERNEL_OK")
</pallas_src>

<mosaic_0001>
module attributes {stable_mosaic.version = 11 : i64} {
  func.func @_decoder_kernel(%arg0: i32, %arg1: i32, %arg2: memref<1x8x32xf32, #tpu.memory_space<vmem>>, %arg3: memref<1x8x32xf32, #tpu.memory_space<vmem>>, %arg4: memref<8x8xf32, #tpu.memory_space<vmem>>, %arg5: memref<8x8xf32, #tpu.memory_space<vmem>>, %arg6: memref<1x3x32xf32, #tpu.memory_space<vmem>>, %arg7: memref<1x3x32xf32, #tpu.memory_space<vmem>>, %arg8: memref<1x32x32xf32, #tpu.memory_space<vmem>>, %arg9: memref<1x1x32xf32, #tpu.memory_space<vmem>>, %arg10: memref<1x32x32xf32, #tpu.memory_space<vmem>>, %arg11: memref<1x1x32xf32, #tpu.memory_space<vmem>>, %arg12: memref<1x32x32xf32, #tpu.memory_space<vmem>>, %arg13: memref<1x1x32xf32, #tpu.memory_space<vmem>>, %arg14: memref<1x32x32xf32, #tpu.memory_space<vmem>>, %arg15: memref<1x1x32xf32, #tpu.memory_space<vmem>>, %arg16: memref<1x32x32xf32, #tpu.memory_space<vmem>>, %arg17: memref<1x1x32xf32, #tpu.memory_space<vmem>>, %arg18: memref<1x32x32xf32, #tpu.memory_space<vmem>>, %arg19: memref<1x1x32xf32, #tpu.memory_space<vmem>>, %arg20: memref<1x32x32xf32, #tpu.memory_space<vmem>>, %arg21: memref<1x1x32xf32, #tpu.memory_space<vmem>>, %arg22: memref<1x32x32xf32, #tpu.memory_space<vmem>>, %arg23: memref<1x1x32xf32, #tpu.memory_space<vmem>>, %arg24: memref<1x32x64xf32, #tpu.memory_space<vmem>>, %arg25: memref<1x1x64xf32, #tpu.memory_space<vmem>>, %arg26: memref<1x64x32xf32, #tpu.memory_space<vmem>>, %arg27: memref<1x1x32xf32, #tpu.memory_space<vmem>>, %arg28: memref<1x32xf32, #tpu.memory_space<vmem>>, %arg29: memref<1x32xf32, #tpu.memory_space<vmem>>, %arg30: memref<1x8x32xf32, #tpu.memory_space<vmem>>, %arg31: memref<8x32xf32, #tpu.memory_space<vmem>>) attributes {dimension_semantics = [#tpu.dimension_semantics<parallel>, #tpu.dimension_semantics<arbitrary>], iteration_bounds = array<i64: 2, 2>, scalar_prefetch = 0 : i64, scratch_operands = 1 : i64, tpu.core_type = #tpu.core_type<tc>, window_params = [{transform_indices = @transform_0, window_bounds = array<i64: 1, 8, 32>}, {transform_indices = @transform_1, window_bounds = array<i64: 1, 8, 32>}, {pipeline_mode = #tpu.pipeline_mode<synchronous>, transform_indices = @transform_2, window_bounds = array<i64: 8, 8>}, {pipeline_mode = #tpu.pipeline_mode<synchronous>, transform_indices = @transform_3, window_bounds = array<i64: 8, 8>}, {transform_indices = @transform_4, window_bounds = array<i64: 1, 3, 32>}, {transform_indices = @transform_5, window_bounds = array<i64: 1, 3, 32>}, {transform_indices = @transform_6, window_bounds = array<i64: 1, 32, 32>}, {transform_indices = @transform_7, window_bounds = array<i64: 1, 1, 32>}, {transform_indices = @transform_8, window_bounds = array<i64: 1, 32, 32>}, {transform_indices = @transform_9, window_bounds = array<i64: 1, 1, 32>}, {transform_indices = @transform_10, window_bounds = array<i64: 1, 32, 32>}, {transform_indices = @transform_11, window_bounds = array<i64: 1, 1, 32>}, {transform_indices = @transform_12, window_bounds = array<i64: 1, 32, 32>}, {transform_indices = @transform_13, window_bounds = array<i64: 1, 1, 32>}, {transform_indices = @transform_14, window_bounds = array<i64: 1, 32, 32>}, {transform_indices = @transform_15, window_bounds = array<i64: 1, 1, 32>}, {transform_indices = @transform_16, window_bounds = array<i64: 1, 32, 32>}, {transform_indices = @transform_17, window_bounds = array<i64: 1, 1, 32>}, {transform_indices = @transform_18, window_bounds = array<i64: 1, 32, 32>}, {transform_indices = @transform_19, window_bounds = array<i64: 1, 1, 32>}, {transform_indices = @transform_20, window_bounds = array<i64: 1, 32, 32>}, {transform_indices = @transform_21, window_bounds = array<i64: 1, 1, 32>}, {transform_indices = @transform_22, window_bounds = array<i64: 1, 32, 64>}, {transform_indices = @transform_23, window_bounds = array<i64: 1, 1, 64>}, {transform_indices = @transform_24, window_bounds = array<i64: 1, 64, 32>}, {transform_indices = @transform_25, window_bounds = array<i64: 1, 1, 32>}, {pipeline_mode = #tpu.pipeline_mode<synchronous>, transform_indices = @transform_26, window_bounds = array<i64: 1, 32>}, {pipeline_mode = #tpu.pipeline_mode<synchronous>, transform_indices = @transform_27, window_bounds = array<i64: 1, 32>}, {transform_indices = @transform_28, window_bounds = array<i64: 1, 8, 32>}]} {
    %c0_i32 = arith.constant 0 : i32
    %0 = arith.cmpi eq, %arg1, %c0_i32 : i32
    %1 = arith.extui %0 : i1 to i32
    %c0_i32_0 = arith.constant 0 : i32
    %2 = arith.cmpi ne, %1, %c0_i32_0 : i32
    scf.if %2 {
      %c0_145 = arith.constant 0 : index
      %c0_146 = arith.constant 0 : index
      %c0_147 = arith.constant 0 : index
      %375 = vector.load %arg2[%c0_145, %c0_146, %c0_147] : memref<1x8x32xf32, #tpu.memory_space<vmem>>, vector<1x8x32xf32>
      %376 = vector.shape_cast %375 : vector<1x8x32xf32> to vector<8x32xf32>
      %c0_148 = arith.constant 0 : index
      %c0_149 = arith.constant 0 : index
      %377 = vector.load %arg31[%c0_148, %c0_149] : memref<8x32xf32, #tpu.memory_space<vmem>>, vector<8x32xf32>
      tpu.vector_store %arg31[%c0_148, %c0_149], %376 {strides = array<i32>} : memref<8x32xf32, #tpu.memory_space<vmem>>, vector<8x32xf32>,
    } else {
    }
    %c0 = arith.constant 0 : index
    %c0_1 = arith.constant 0 : index
    %3 = vector.load %arg31[%c0, %c0_1] : memref<8x32xf32, #tpu.memory_space<vmem>>, vector<8x32xf32>
    %c0_2 = arith.constant 0 : index
    %c0_3 = arith.constant 0 : index
    %c0_4 = arith.constant 0 : index
    %4 = vector.load %arg3[%c0_2, %c0_3, %c0_4] : memref<1x8x32xf32, #tpu.memory_space<vmem>>, vector<1x8x32xf32>
    %5 = vector.shape_cast %4 : vector<1x8x32xf32> to vector<8x32xf32>
    %c0_5 = arith.constant 0 : index
    %c0_6 = arith.constant 0 : index
    %6 = vector.load %arg4[%c0_5, %c0_6] : memref<8x8xf32, #tpu.memory_space<vmem>>, vector<8x8xf32>
    %c0_7 = arith.constant 0 : index
    %c0_8 = arith.constant 0 : index
    %7 = vector.load %arg5[%c0_7, %c0_8] : memref<8x8xf32, #tpu.memory_space<vmem>>, vector<8x8xf32>
    %c0_9 = arith.constant 0 : index
    %c0_10 = arith.constant 0 : index
    %c0_11 = arith.constant 0 : index
    %8 = vector.load %arg6[%c0_9, %c0_10, %c0_11] : memref<1x3x32xf32, #tpu.memory_space<vmem>>, vector<1x3x32xf32>
    %9 = vector.shape_cast %8 : vector<1x3x32xf32> to vector<3x32xf32>
    %c0_12 = arith.constant 0 : index
    %c0_13 = arith.constant 0 : index
    %c0_14 = arith.constant 0 : index
    %10 = vector.load %arg7[%c0_12, %c0_13, %c0_14] : memref<1x3x32xf32, #tpu.memory_space<vmem>>, vector<1x3x32xf32>
    %11 = vector.shape_cast %10 : vector<1x3x32xf32> to vector<3x32xf32>
    %12 = vector.extract_strided_slice %9 {offsets = [0, 0], sizes = [1, 32], strides = [1, 1]} : vector<3x32xf32> to vector<1x32xf32>
    %13 = vector.extract_strided_slice %11 {offsets = [0, 0], sizes = [1, 32], strides = [1, 1]} : vector<3x32xf32> to vector<1x32xf32>
    %cst = arith.constant dense<0.000000e+00> : vector<8xf32>
    %14 = vector.multi_reduction <add>, %3, %cst [1] : vector<8x32xf32> to vector<8xf32>
    %15 = vector.shape_cast %14 : vector<8xf32> to vector<8x1xf32>
    %cst_15 = arith.constant 3.200000e+01 : f32
    %16 = vector.broadcast %cst_15 : f32 to vector<8x1xf32>
    %17 = arith.divf %15, %16 : vector<8x1xf32>
    %18 = vector.broadcast %17 : vector<8x1xf32> to vector<8x32xf32>
    %19 = arith.subf %3, %18 : vector<8x32xf32>
    %20 = arith.mulf %19, %19 : vector<8x32xf32>
    %cst_16 = arith.constant dense<0.000000e+00> : vector<8xf32>
    %21 = vector.multi_reduction <add>, %20, %cst_16 [1] : vector<8x32xf32> to vector<8xf32>
    %22 = vector.shape_cast %21 : vector<8xf32> to vector<8x1xf32>
    %cst_17 = arith.constant 0.0322580636 : f32
    %23 = vector.broadcast %cst_17 : f32 to vector<8x1xf32>
    %24 = arith.mulf %22, %23 : vector<8x1xf32>
    %25 = vector.broadcast %17 : vector<8x1xf32> to vector<8x32xf32>
    %26 = arith.subf %3, %25 : vector<8x32xf32>
    %27 = vector.broadcast %12 : vector<1x32xf32> to vector<8x32xf32>
    %28 = arith.mulf %27, %26 : vector<8x32xf32>
    %29 = math.sqrt %24 : vector<8x1xf32>
    %cst_18 = arith.constant 9.99999997E-7 : f32
    %30 = vector.broadcast %cst_18 : f32 to vector<8x1xf32>
    %31 = arith.addf %29, %30 : vector<8x1xf32>
    %32 = vector.broadcast %31 : vector<8x1xf32> to vector<8x32xf32>
    %33 = arith.divf %28, %32 : vector<8x32xf32>
    %34 = vector.broadcast %13 : vector<1x32xf32> to vector<8x32xf32>
    %35 = arith.addf %33, %34 : vector<8x32xf32>
    %36 = arith.truncf %35 : vector<8x32xf32> to vector<8x32xbf16>
    %37 = arith.truncf %35 : vector<8x32xf32> to vector<8x32xbf16>
    %c0_19 = arith.constant 0 : index
    %c0_20 = arith.constant 0 : index
    %c0_21 = arith.constant 0 : index
    %38 = vector.load %arg8[%c0_19, %c0_20, %c0_21] : memref<1x32x32xf32, #tpu.memory_space<vmem>>, vector<1x32x32xf32>
    %39 = vector.shape_cast %38 : vector<1x32x32xf32> to vector<32x32xf32>
    %40 = arith.truncf %39 : vector<32x32xf32> to vector<32x32xbf16>
    %cst_22 = arith.constant dense<0.000000e+00> : vector<8x32xf32>
    %41 = tpu.matmul %36, %40, %cst_22 {dimension_numbers = #tpu.dot_dimension_numbers<[1], [0], [0], [1], [0, 0, 1, 1], [], []>} : vector<8x32xbf16>, vector<32x32xbf16>, vector<8x32xf32> -> vector<8x32xf32>
    %c0_23 = arith.constant 0 : index
    %c0_24 = arith.constant 0 : index
    %c0_25 = arith.constant 0 : index
    %42 = vector.load %arg9[%c0_23, %c0_24, %c0_25] : memref<1x1x32xf32, #tpu.memory_space<vmem>>, vector<1x1x32xf32>
    %43 = vector.shape_cast %42 : vector<1x1x32xf32> to vector<1x32xf32>
    %44 = vector.broadcast %43 : vector<1x32xf32> to vector<8x32xf32>
    %45 = arith.addf %41, %44 : vector<8x32xf32>
    %cst_26 = arith.constant 0.353553385 : f32
    %46 = vector.broadcast %cst_26 : f32 to vector<8x32xf32>
    %47 = arith.mulf %45, %46 : vector<8x32xf32>
    %c0_27 = arith.constant 0 : index
    %c0_28 = arith.constant 0 : index
    %c0_29 = arith.constant 0 : index
    %48 = vector.load %arg10[%c0_27, %c0_28, %c0_29] : memref<1x32x32xf32, #tpu.memory_space<vmem>>, vector<1x32x32xf32>
    %49 = vector.shape_cast %48 : vector<1x32x32xf32> to vector<32x32xf32>
    %50 = arith.truncf %49 : vector<32x32xf32> to vector<32x32xbf16>
    %cst_30 = arith.constant dense<0.000000e+00> : vector<8x32xf32>
    %51 = tpu.matmul %37, %50, %cst_30 {dimension_numbers = #tpu.dot_dimension_numbers<[1], [0], [0], [1], [0, 0, 1, 1], [], []>} : vector<8x32xbf16>, vector<32x32xbf16>, vector<8x32xf32> -> vector<8x32xf32>
    %c0_31 = arith.constant 0 : index
    %c0_32 = arith.constant 0 : index
    %c0_33 = arith.constant 0 : index
    %52 = vector.load %arg11[%c0_31, %c0_32, %c0_33] : memref<1x1x32xf32, #tpu.memory_space<vmem>>, vector<1x1x32xf32>
    %53 = vector.shape_cast %52 : vector<1x1x32xf32> to vector<1x32xf32>
    %54 = vector.broadcast %53 : vector<1x32xf32> to vector<8x32xf32>
    %55 = arith.addf %51, %54 : vector<8x32xf32>
    %c0_34 = arith.constant 0 : index
    %c0_35 = arith.constant 0 : index
    %c0_36 = arith.constant 0 : index
    %56 = vector.load %arg12[%c0_34, %c0_35, %c0_36] : memref<1x32x32xf32, #tpu.memory_space<vmem>>, vector<1x32x32xf32>
    %57 = vector.shape_cast %56 : vector<1x32x32xf32> to vector<32x32xf32>
    %58 = arith.truncf %57 : vector<32x32xf32> to vector<32x32xbf16>
    %cst_37 = arith.constant dense<0.000000e+00> : vector<8x32xf32>
    %59 = tpu.matmul %37, %58, %cst_37 {dimension_numbers = #tpu.dot_dimension_numbers<[1], [0], [0], [1], [0, 0, 1, 1], [], []>} : vector<8x32xbf16>, vector<32x32xbf16>, vector<8x32xf32> -> vector<8x32xf32>
    %c0_38 = arith.constant 0 : index
    %c0_39 = arith.constant 0 : index
    %c0_40 = arith.constant 0 : index
    %60 = vector.load %arg13[%c0_38, %c0_39, %c0_40] : memref<1x1x32xf32, #tpu.memory_space<vmem>>, vector<1x1x32xf32>
    %61 = vector.shape_cast %60 : vector<1x1x32xf32> to vector<1x32xf32>
    %62 = vector.broadcast %61 : vector<1x32xf32> to vector<8x32xf32>
    %63 = arith.addf %59, %62 : vector<8x32xf32>
    %c0_41 = arith.constant 0 : index
    %c0_42 = arith.constant 0 : index
    %c0_43 = arith.constant 0 : index
    %64 = vector.load %arg14[%c0_41, %c0_42, %c0_43] : memref<1x32x32xf32, #tpu.memory_space<vmem>>, vector<1x32x32xf32>
    %65 = vector.shape_cast %64 : vector<1x32x32xf32> to vector<32x32xf32>
    %66 = arith.truncf %65 : vector<32x32xf32> to vector<32x32xbf16>
    %cst_44 = arith.constant 0.000000e+00 : f32
    %67 = vector.broadcast %cst_44 : f32 to vector<8x32xf32>
    %68 = vector.extract_strided_slice %47 {offsets = [0, 0], sizes = [8, 8], strides = [1, 1]} : vector<8x32xf32> to vector<8x8xf32>
    %69 = arith.truncf %68 : vector<8x8xf32> to vector<8x8xbf16>
    %70 = vector.extract_strided_slice %55 {offsets = [0, 0], sizes = [8, 8], strides = [1, 1]} : vector<8x32xf32> to vector<8x8xf32>
    %71 = arith.truncf %70 : vector<8x8xf32> to vector<8x8xbf16>
    %72 = vector.extract_strided_slice %63 {offsets = [0, 0], sizes = [8, 8], strides = [1, 1]} : vector<8x32xf32> to vector<8x8xf32>
    %73 = arith.truncf %72 : vector<8x8xf32> to vector<8x8xbf16>
    %cst_45 = arith.constant dense<0.000000e+00> : vector<8x8xf32>
    %74 = tpu.matmul %69, %71, %cst_45 {dimension_numbers = #tpu.dot_dimension_numbers<[1], [1], [0], [0], [0, 0, 1, 0], [], []>} : vector<8x8xbf16>, vector<8x8xbf16>, vector<8x8xf32> -> vector<8x8xf32>
    %75 = arith.addf %74, %6 : vector<8x8xf32>
    %cst_46 = arith.constant dense<0xFF800000> : vector<8xf32>
    %76 = vector.multi_reduction <maximumf>, %75, %cst_46 [1] : vector<8x8xf32> to vector<8xf32>
    %77 = vector.shape_cast %76 : vector<8xf32> to vector<8x1xf32>
    %78 = vector.broadcast %77 : vector<8x1xf32> to vector<8x8xf32>
    %79 = arith.subf %75, %78 : vector<8x8xf32>
    %80 = math.exp %79 : vector<8x8xf32>
    %cst_47 = arith.constant dense<0.000000e+00> : vector<8xf32>
    %81 = vector.multi_reduction <add>, %80, %cst_47 [1] : vector<8x8xf32> to vector<8xf32>
    %82 = vector.shape_cast %81 : vector<8xf32> to vector<8x1xf32>
    %83 = tpu.reciprocal %82 {approx = true} : vector<8x1xf32> -> vector<8x1xf32>
    %84 = vector.broadcast %83 : vector<8x1xf32> to vector<8x8xf32>
    %85 = arith.mulf %80, %84 : vector<8x8xf32>
    %86 = arith.truncf %85 : vector<8x8xf32> to vector<8x8xbf16>
    %cst_48 = arith.constant dense<0.000000e+00> : vector<8x8xf32>
    %87 = tpu.matmul %86, %73, %cst_48 {dimension_numbers = #tpu.dot_dimension_numbers<[1], [0], [0], [1], [0, 0, 1, 1], [], []>} : vector<8x8xbf16>, vector<8x8xbf16>, vector<8x8xf32> -> vector<8x8xf32>
    %88 = arith.truncf %87 : vector<8x8xf32> to vector<8x8xbf16>
    %89 = vector.extract_strided_slice %66 {offsets = [0, 0], sizes = [8, 32], strides = [1, 1]} : vector<32x32xbf16> to vector<8x32xbf16>
    %cst_49 = arith.constant dense<0.000000e+00> : vector<8x32xf32>
    %90 = tpu.matmul %88, %89, %cst_49 {dimension_numbers = #tpu.dot_dimension_numbers<[1], [0], [0], [1], [0, 0, 1, 1], [], []>} : vector<8x8xbf16>, vector<8x32xbf16>, vector<8x32xf32> -> vector<8x32xf32>
    %91 = arith.addf %67, %90 : vector<8x32xf32>
    %92 = vector.extract_strided_slice %47 {offsets = [0, 8], sizes = [8, 8], strides = [1, 1]} : vector<8x32xf32> to vector<8x8xf32>
    %93 = arith.truncf %92 : vector<8x8xf32> to vector<8x8xbf16>
    %94 = vector.extract_strided_slice %55 {offsets = [0, 8], sizes = [8, 8], strides = [1, 1]} : vector<8x32xf32> to vector<8x8xf32>
    %95 = arith.truncf %94 : vector<8x8xf32> to vector<8x8xbf16>
    %96 = vector.extract_strided_slice %63 {offsets = [0, 8], sizes = [8, 8], strides = [1, 1]} : vector<8x32xf32> to vector<8x8xf32>
    %97 = arith.truncf %96 : vector<8x8xf32> to vector<8x8xbf16>
    %cst_50 = arith.constant dense<0.000000e+00> : vector<8x8xf32>
    %98 = tpu.matmul %93, %95, %cst_50 {dimension_numbers = #tpu.dot_dimension_numbers<[1], [1], [0], [0], [0, 0, 1, 0], [], []>} : vector<8x8xbf16>, vector<8x8xbf16>, vector<8x8xf32> -> vector<8x8xf32>
    %99 = arith.addf %98, %6 : vector<8x8xf32>
    %cst_51 = arith.constant dense<0xFF800000> : vector<8xf32>
    %100 = vector.multi_reduction <maximumf>, %99, %cst_51 [1] : vector<8x8xf32> to vector<8xf32>
    %101 = vector.shape_cast %100 : vector<8xf32> to vector<8x1xf32>
    %102 = vector.broadcast %101 : vector<8x1xf32> to vector<8x8xf32>
    %103 = arith.subf %99, %102 : vector<8x8xf32>
    %104 = math.exp %103 : vector<8x8xf32>
    %cst_52 = arith.constant dense<0.000000e+00> : vector<8xf32>
    %105 = vector.multi_reduction <add>, %104, %cst_52 [1] : vector<8x8xf32> to vector<8xf32>
    %106 = vector.shape_cast %105 : vector<8xf32> to vector<8x1xf32>
    %107 = tpu.reciprocal %106 {approx = true} : vector<8x1xf32> -> vector<8x1xf32>
    %108 = vector.broadcast %107 : vector<8x1xf32> to vector<8x8xf32>
    %109 = arith.mulf %104, %108 : vector<8x8xf32>
    %110 = arith.truncf %109 : vector<8x8xf32> to vector<8x8xbf16>
    %cst_53 = arith.constant dense<0.000000e+00> : vector<8x8xf32>
    %111 = tpu.matmul %110, %97, %cst_53 {dimension_numbers = #tpu.dot_dimension_numbers<[1], [0], [0], [1], [0, 0, 1, 1], [], []>} : vector<8x8xbf16>, vector<8x8xbf16>, vector<8x8xf32> -> vector<8x8xf32>
    %112 = arith.truncf %111 : vector<8x8xf32> to vector<8x8xbf16>
    %113 = vector.extract_strided_slice %66 {offsets = [8, 0], sizes = [8, 32], strides = [1, 1]} : vector<32x32xbf16> to vector<8x32xbf16>
    %cst_54 = arith.constant dense<0.000000e+00> : vector<8x32xf32>
    %114 = tpu.matmul %112, %113, %cst_54 {dimension_numbers = #tpu.dot_dimension_numbers<[1], [0], [0], [1], [0, 0, 1, 1], [], []>} : vector<8x8xbf16>, vector<8x32xbf16>, vector<8x32xf32> -> vector<8x32xf32>
    %115 = arith.addf %91, %114 : vector<8x32xf32>
    %116 = vector.extract_strided_slice %47 {offsets = [0, 16], sizes = [8, 8], strides = [1, 1]} : vector<8x32xf32> to vector<8x8xf32>
    %117 = arith.truncf %116 : vector<8x8xf32> to vector<8x8xbf16>
    %118 = vector.extract_strided_slice %55 {offsets = [0, 16], sizes = [8, 8], strides = [1, 1]} : vector<8x32xf32> to vector<8x8xf32>
    %119 = arith.truncf %118 : vector<8x8xf32> to vector<8x8xbf16>
    %120 = vector.extract_strided_slice %63 {offsets = [0, 16], sizes = [8, 8], strides = [1, 1]} : vector<8x32xf32> to vector<8x8xf32>
    %121 = arith.truncf %120 : vector<8x8xf32> to vector<8x8xbf16>
    %cst_55 = arith.constant dense<0.000000e+00> : vector<8x8xf32>
    %122 = tpu.matmul %117, %119, %cst_55 {dimension_numbers = #tpu.dot_dimension_numbers<[1], [1], [0], [0], [0, 0, 1, 0], [], []>} : vector<8x8xbf16>, vector<8x8xbf16>, vector<8x8xf32> -> vector<8x8xf32>
    %123 = arith.addf %122, %6 : vector<8x8xf32>
    %cst_56 = arith.constant dense<0xFF800000> : vector<8xf32>
    %124 = vector.multi_reduction <maximumf>, %123, %cst_56 [1] : vector<8x8xf32> to vector<8xf32>
    %125 = vector.shape_cast %124 : vector<8xf32> to vector<8x1xf32>
    %126 = vector.broadcast %125 : vector<8x1xf32> to vector<8x8xf32>
    %127 = arith.subf %123, %126 : vector<8x8xf32>
    %128 = math.exp %127 : vector<8x8xf32>
    %cst_57 = arith.constant dense<0.000000e+00> : vector<8xf32>
    %129 = vector.multi_reduction <add>, %128, %cst_57 [1] : vector<8x8xf32> to vector<8xf32>
    %130 = vector.shape_cast %129 : vector<8xf32> to vector<8x1xf32>
    %131 = tpu.reciprocal %130 {approx = true} : vector<8x1xf32> -> vector<8x1xf32>
    %132 = vector.broadcast %131 : vector<8x1xf32> to vector<8x8xf32>
    %133 = arith.mulf %128, %132 : vector<8x8xf32>
    %134 = arith.truncf %133 : vector<8x8xf32> to vector<8x8xbf16>
    %cst_58 = arith.constant dense<0.000000e+00> : vector<8x8xf32>
    %135 = tpu.matmul %134, %121, %cst_58 {dimension_numbers = #tpu.dot_dimension_numbers<[1], [0], [0], [1], [0, 0, 1, 1], [], []>} : vector<8x8xbf16>, vector<8x8xbf16>, vector<8x8xf32> -> vector<8x8xf32>
    %136 = arith.truncf %135 : vector<8x8xf32> to vector<8x8xbf16>
    %137 = vector.extract_strided_slice %66 {offsets = [16, 0], sizes = [8, 32], strides = [1, 1]} : vector<32x32xbf16> to vector<8x32xbf16>
    %cst_59 = arith.constant dense<0.000000e+00> : vector<8x32xf32>
    %138 = tpu.matmul %136, %137, %cst_59 {dimension_numbers = #tpu.dot_dimension_numbers<[1], [0], [0], [1], [0, 0, 1, 1], [], []>} : vector<8x8xbf16>, vector<8x32xbf16>, vector<8x32xf32> -> vector<8x32xf32>
    %139 = arith.addf %115, %138 : vector<8x32xf32>
    %140 = vector.extract_strided_slice %47 {offsets = [0, 24], sizes = [8, 8], strides = [1, 1]} : vector<8x32xf32> to vector<8x8xf32>
    %141 = arith.truncf %140 : vector<8x8xf32> to vector<8x8xbf16>
    %142 = vector.extract_strided_slice %55 {offsets = [0, 24], sizes = [8, 8], strides = [1, 1]} : vector<8x32xf32> to vector<8x8xf32>
    %143 = arith.truncf %142 : vector<8x8xf32> to vector<8x8xbf16>
    %144 = vector.extract_strided_slice %63 {offsets = [0, 24], sizes = [8, 8], strides = [1, 1]} : vector<8x32xf32> to vector<8x8xf32>
    %145 = arith.truncf %144 : vector<8x8xf32> to vector<8x8xbf16>
    %cst_60 = arith.constant dense<0.000000e+00> : vector<8x8xf32>
    %146 = tpu.matmul %141, %143, %cst_60 {dimension_numbers = #tpu.dot_dimension_numbers<[1], [1], [0], [0], [0, 0, 1, 0], [], []>} : vector<8x8xbf16>, vector<8x8xbf16>, vector<8x8xf32> -> vector<8x8xf32>
    %147 = arith.addf %146, %6 : vector<8x8xf32>
    %cst_61 = arith.constant dense<0xFF800000> : vector<8xf32>
    %148 = vector.multi_reduction <maximumf>, %147, %cst_61 [1] : vector<8x8xf32> to vector<8xf32>
    %149 = vector.shape_cast %148 : vector<8xf32> to vector<8x1xf32>
    %150 = vector.broadcast %149 : vector<8x1xf32> to vector<8x8xf32>
    %151 = arith.subf %147, %150 : vector<8x8xf32>
    %152 = math.exp %151 : vector<8x8xf32>
    %cst_62 = arith.constant dense<0.000000e+00> : vector<8xf32>
    %153 = vector.multi_reduction <add>, %152, %cst_62 [1] : vector<8x8xf32> to vector<8xf32>
    %154 = vector.shape_cast %153 : vector<8xf32> to vector<8x1xf32>
    %155 = tpu.reciprocal %154 {approx = true} : vector<8x1xf32> -> vector<8x1xf32>
    %156 = vector.broadcast %155 : vector<8x1xf32> to vector<8x8xf32>
    %157 = arith.mulf %152, %156 : vector<8x8xf32>
    %158 = arith.truncf %157 : vector<8x8xf32> to vector<8x8xbf16>
    %cst_63 = arith.constant dense<0.000000e+00> : vector<8x8xf32>
    %159 = tpu.matmul %158, %145, %cst_63 {dimension_numbers = #tpu.dot_dimension_numbers<[1], [0], [0], [1], [0, 0, 1, 1], [], []>} : vector<8x8xbf16>, vector<8x8xbf16>, vector<8x8xf32> -> vector<8x8xf32>
    %160 = arith.truncf %159 : vector<8x8xf32> to vector<8x8xbf16>
    %161 = vector.extract_strided_slice %66 {offsets = [24, 0], sizes = [8, 32], strides = [1, 1]} : vector<32x32xbf16> to vector<8x32xbf16>
    %cst_64 = arith.constant dense<0.000000e+00> : vector<8x32xf32>
    %162 = tpu.matmul %160, %161, %cst_64 {dimension_numbers = #tpu.dot_dimension_numbers<[1], [0], [0], [1], [0, 0, 1, 1], [], []>} : vector<8x8xbf16>, vector<8x32xbf16>, vector<8x32xf32> -> vector<8x32xf32>
    %163 = arith.addf %139, %162 : vector<8x32xf32>
    %c0_65 = arith.constant 0 : index
    %c0_66 = arith.constant 0 : index
    %c0_67 = arith.constant 0 : index
    %164 = vector.load %arg15[%c0_65, %c0_66, %c0_67] : memref<1x1x32xf32, #tpu.memory_space<vmem>>, vector<1x1x32xf32>
    %165 = vector.shape_cast %164 : vector<1x1x32xf32> to vector<1x32xf32>
    %166 = vector.broadcast %165 : vector<1x32xf32> to vector<8x32xf32>
    %167 = arith.addf %163, %166 : vector<8x32xf32>
    %168 = arith.addf %3, %167 : vector<8x32xf32>
    %169 = vector.extract_strided_slice %9 {offsets = [1, 0], sizes = [1, 32], strides = [1, 1]} : vector<3x32xf32> to vector<1x32xf32>
    %170 = vector.extract_strided_slice %11 {offsets = [1, 0], sizes = [1, 32], strides = [1, 1]} : vector<3x32xf32> to vector<1x32xf32>
    %cst_68 = arith.constant dense<0.000000e+00> : vector<8xf32>
    %171 = vector.multi_reduction <add>, %168, %cst_68 [1] : vector<8x32xf32> to vector<8xf32>
    %172 = vector.shape_cast %171 : vector<8xf32> to vector<8x1xf32>
    %cst_69 = arith.constant 3.200000e+01 : f32
    %173 = vector.broadcast %cst_69 : f32 to vector<8x1xf32>
    %174 = arith.divf %172, %173 : vector<8x1xf32>
    %175 = vector.broadcast %174 : vector<8x1xf32> to vector<8x32xf32>
    %176 = arith.subf %168, %175 : vector<8x32xf32>
    %177 = arith.mulf %176, %176 : vector<8x32xf32>
    %cst_70 = arith.constant dense<0.000000e+00> : vector<8xf32>
    %178 = vector.multi_reduction <add>, %177, %cst_70 [1] : vector<8x32xf32> to vector<8xf32>
    %179 = vector.shape_cast %178 : vector<8xf32> to vector<8x1xf32>
    %cst_71 = arith.constant 0.0322580636 : f32
    %180 = vector.broadcast %cst_71 : f32 to vector<8x1xf32>
    %181 = arith.mulf %179, %180 : vector<8x1xf32>
    %182 = vector.broadcast %174 : vector<8x1xf32> to vector<8x32xf32>
    %183 = arith.subf %168, %182 : vector<8x32xf32>
    %184 = vector.broadcast %169 : vector<1x32xf32> to vector<8x32xf32>
    %185 = arith.mulf %184, %183 : vector<8x32xf32>
    %186 = math.sqrt %181 : vector<8x1xf32>
    %cst_72 = arith.constant 9.99999997E-7 : f32
    %187 = vector.broadcast %cst_72 : f32 to vector<8x1xf32>
    %188 = arith.addf %186, %187 : vector<8x1xf32>
    %189 = vector.broadcast %188 : vector<8x1xf32> to vector<8x32xf32>
    %190 = arith.divf %185, %189 : vector<8x32xf32>
    %191 = vector.broadcast %170 : vector<1x32xf32> to vector<8x32xf32>
    %192 = arith.addf %190, %191 : vector<8x32xf32>
    %193 = arith.truncf %192 : vector<8x32xf32> to vector<8x32xbf16>
    %194 = arith.truncf %5 : vector<8x32xf32> to vector<8x32xbf16>
    %c0_73 = arith.constant 0 : index
    %c0_74 = arith.constant 0 : index
    %c0_75 = arith.constant 0 : index
    %195 = vector.load %arg16[%c0_73, %c0_74, %c0_75] : memref<1x32x32xf32, #tpu.memory_space<vmem>>, vector<1x32x32xf32>
    %196 = vector.shape_cast %195 : vector<1x32x32xf32> to vector<32x32xf32>
    %197 = arith.truncf %196 : vector<32x32xf32> to vector<32x32xbf16>
    %cst_76 = arith.constant dense<0.000000e+00> : vector<8x32xf32>
    %198 = tpu.matmul %193, %197, %cst_76 {dimension_numbers = #tpu.dot_dimension_numbers<[1], [0], [0], [1], [0, 0, 1, 1], [], []>} : vector<8x32xbf16>, vector<32x32xbf16>, vector<8x32xf32> -> vector<8x32xf32>
    %c0_77 = arith.constant 0 : index
    %c0_78 = arith.constant 0 : index
    %c0_79 = arith.constant 0 : index
    %199 = vector.load %arg17[%c0_77, %c0_78, %c0_79] : memref<1x1x32xf32, #tpu.memory_space<vmem>>, vector<1x1x32xf32>
    %200 = vector.shape_cast %199 : vector<1x1x32xf32> to vector<1x32xf32>
    %201 = vector.broadcast %200 : vector<1x32xf32> to vector<8x32xf32>
    %202 = arith.addf %198, %201 : vector<8x32xf32>
    %cst_80 = arith.constant 0.353553385 : f32
    %203 = vector.broadcast %cst_80 : f32 to vector<8x32xf32>
    %204 = arith.mulf %202, %203 : vector<8x32xf32>
    %c0_81 = arith.constant 0 : index
    %c0_82 = arith.constant 0 : index
    %c0_83 = arith.constant 0 : index
    %205 = vector.load %arg18[%c0_81, %c0_82, %c0_83] : memref<1x32x32xf32, #tpu.memory_space<vmem>>, vector<1x32x32xf32>
    %206 = vector.shape_cast %205 : vector<1x32x32xf32> to vector<32x32xf32>
    %207 = arith.truncf %206 : vector<32x32xf32> to vector<32x32xbf16>
    %cst_84 = arith.constant dense<0.000000e+00> : vector<8x32xf32>
    %208 = tpu.matmul %194, %207, %cst_84 {dimension_numbers = #tpu.dot_dimension_numbers<[1], [0], [0], [1], [0, 0, 1, 1], [], []>} : vector<8x32xbf16>, vector<32x32xbf16>, vector<8x32xf32> -> vector<8x32xf32>
    %c0_85 = arith.constant 0 : index
    %c0_86 = arith.constant 0 : index
    %c0_87 = arith.constant 0 : index
    %209 = vector.load %arg19[%c0_85, %c0_86, %c0_87] : memref<1x1x32xf32, #tpu.memory_space<vmem>>, vector<1x1x32xf32>
    %210 = vector.shape_cast %209 : vector<1x1x32xf32> to vector<1x32xf32>
    %211 = vector.broadcast %210 : vector<1x32xf32> to vector<8x32xf32>
    %212 = arith.addf %208, %211 : vector<8x32xf32>
    %c0_88 = arith.constant 0 : index
    %c0_89 = arith.constant 0 : index
    %c0_90 = arith.constant 0 : index
    %213 = vector.load %arg20[%c0_88, %c0_89, %c0_90] : memref<1x32x32xf32, #tpu.memory_space<vmem>>, vector<1x32x32xf32>
    %214 = vector.shape_cast %213 : vector<1x32x32xf32> to vector<32x32xf32>
    %215 = arith.truncf %214 : vector<32x32xf32> to vector<32x32xbf16>
    %cst_91 = arith.constant dense<0.000000e+00> : vector<8x32xf32>
    %216 = tpu.matmul %194, %215, %cst_91 {dimension_numbers = #tpu.dot_dimension_numbers<[1], [0], [0], [1], [0, 0, 1, 1], [], []>} : vector<8x32xbf16>, vector<32x32xbf16>, vector<8x32xf32> -> vector<8x32xf32>
    %c0_92 = arith.constant 0 : index
    %c0_93 = arith.constant 0 : index
    %c0_94 = arith.constant 0 : index
    %217 = vector.load %arg21[%c0_92, %c0_93, %c0_94] : memref<1x1x32xf32, #tpu.memory_space<vmem>>, vector<1x1x32xf32>
    %218 = vector.shape_cast %217 : vector<1x1x32xf32> to vector<1x32xf32>
    %219 = vector.broadcast %218 : vector<1x32xf32> to vector<8x32xf32>
    %220 = arith.addf %216, %219 : vector<8x32xf32>
    %c0_95 = arith.constant 0 : index
    %c0_96 = arith.constant 0 : index
    %c0_97 = arith.constant 0 : index
    %221 = vector.load %arg22[%c0_95, %c0_96, %c0_97] : memref<1x32x32xf32, #tpu.memory_space<vmem>>, vector<1x32x32xf32>
    %222 = vector.shape_cast %221 : vector<1x32x32xf32> to vector<32x32xf32>
    %223 = arith.truncf %222 : vector<32x32xf32> to vector<32x32xbf16>
    %cst_98 = arith.constant 0.000000e+00 : f32
    %224 = vector.broadcast %cst_98 : f32 to vector<8x32xf32>
    %225 = vector.extract_strided_slice %204 {offsets = [0, 0], sizes = [8, 8], strides = [1, 1]} : vector<8x32xf32> to vector<8x8xf32>
    %226 = arith.truncf %225 : vector<8x8xf32> to vector<8x8xbf16>
    %227 = vector.extract_strided_slice %212 {offsets = [0, 0], sizes = [8, 8], strides = [1, 1]} : vector<8x32xf32> to vector<8x8xf32>
    %228 = arith.truncf %227 : vector<8x8xf32> to vector<8x8xbf16>
    %229 = vector.extract_strided_slice %220 {offsets = [0, 0], sizes = [8, 8], strides = [1, 1]} : vector<8x32xf32> to vector<8x8xf32>
    %230 = arith.truncf %229 : vector<8x8xf32> to vector<8x8xbf16>
    %cst_99 = arith.constant dense<0.000000e+00> : vector<8x8xf32>
    %231 = tpu.matmul %226, %228, %cst_99 {dimension_numbers = #tpu.dot_dimension_numbers<[1], [1], [0], [0], [0, 0, 1, 0], [], []>} : vector<8x8xbf16>, vector<8x8xbf16>, vector<8x8xf32> -> vector<8x8xf32>
    %232 = arith.addf %231, %7 : vector<8x8xf32>
    %cst_100 = arith.constant dense<0xFF800000> : vector<8xf32>
    %233 = vector.multi_reduction <maximumf>, %232, %cst_100 [1] : vector<8x8xf32> to vector<8xf32>
    %234 = vector.shape_cast %233 : vector<8xf32> to vector<8x1xf32>
    %235 = vector.broadcast %234 : vector<8x1xf32> to vector<8x8xf32>
    %236 = arith.subf %232, %235 : vector<8x8xf32>
    %237 = math.exp %236 : vector<8x8xf32>
    %cst_101 = arith.constant dense<0.000000e+00> : vector<8xf32>
    %238 = vector.multi_reduction <add>, %237, %cst_101 [1] : vector<8x8xf32> to vector<8xf32>
    %239 = vector.shape_cast %238 : vector<8xf32> to vector<8x1xf32>
    %240 = tpu.reciprocal %239 {approx = true} : vector<8x1xf32> -> vector<8x1xf32>
    %241 = vector.broadcast %240 : vector<8x1xf32> to vector<8x8xf32>
    %242 = arith.mulf %237, %241 : vector<8x8xf32>
    %243 = arith.truncf %242 : vector<8x8xf32> to vector<8x8xbf16>
    %cst_102 = arith.constant dense<0.000000e+00> : vector<8x8xf32>
    %244 = tpu.matmul %243, %230, %cst_102 {dimension_numbers = #tpu.dot_dimension_numbers<[1], [0], [0], [1], [0, 0, 1, 1], [], []>} : vector<8x8xbf16>, vector<8x8xbf16>, vector<8x8xf32> -> vector<8x8xf32>
    %245 = arith.truncf %244 : vector<8x8xf32> to vector<8x8xbf16>
    %246 = vector.extract_strided_slice %223 {offsets = [0, 0], sizes = [8, 32], strides = [1, 1]} : vector<32x32xbf16> to vector<8x32xbf16>
    %cst_103 = arith.constant dense<0.000000e+00> : vector<8x32xf32>
    %247 = tpu.matmul %245, %246, %cst_103 {dimension_numbers = #tpu.dot_dimension_numbers<[1], [0], [0], [1], [0, 0, 1, 1], [], []>} : vector<8x8xbf16>, vector<8x32xbf16>, vector<8x32xf32> -> vector<8x32xf32>
    %248 = arith.addf %224, %247 : vector<8x32xf32>
    %249 = vector.extract_strided_slice %204 {offsets = [0, 8], sizes = [8, 8], strides = [1, 1]} : vector<8x32xf32> to vector<8x8xf32>
    %250 = arith.truncf %249 : vector<8x8xf32> to vector<8x8xbf16>
    %251 = vector.extract_strided_slice %212 {offsets = [0, 8], sizes = [8, 8], strides = [1, 1]} : vector<8x32xf32> to vector<8x8xf32>
    %252 = arith.truncf %251 : vector<8x8xf32> to vector<8x8xbf16>
    %253 = vector.extract_strided_slice %220 {offsets = [0, 8], sizes = [8, 8], strides = [1, 1]} : vector<8x32xf32> to vector<8x8xf32>
    %254 = arith.truncf %253 : vector<8x8xf32> to vector<8x8xbf16>
    %cst_104 = arith.constant dense<0.000000e+00> : vector<8x8xf32>
    %255 = tpu.matmul %250, %252, %cst_104 {dimension_numbers = #tpu.dot_dimension_numbers<[1], [1], [0], [0], [0, 0, 1, 0], [], []>} : vector<8x8xbf16>, vector<8x8xbf16>, vector<8x8xf32> -> vector<8x8xf32>
    %256 = arith.addf %255, %7 : vector<8x8xf32>
    %cst_105 = arith.constant dense<0xFF800000> : vector<8xf32>
    %257 = vector.multi_reduction <maximumf>, %256, %cst_105 [1] : vector<8x8xf32> to vector<8xf32>
    %258 = vector.shape_cast %257 : vector<8xf32> to vector<8x1xf32>
    %259 = vector.broadcast %258 : vector<8x1xf32> to vector<8x8xf32>
    %260 = arith.subf %256, %259 : vector<8x8xf32>
    %261 = math.exp %260 : vector<8x8xf32>
    %cst_106 = arith.constant dense<0.000000e+00> : vector<8xf32>
    %262 = vector.multi_reduction <add>, %261, %cst_106 [1] : vector<8x8xf32> to vector<8xf32>
    %263 = vector.shape_cast %262 : vector<8xf32> to vector<8x1xf32>
    %264 = tpu.reciprocal %263 {approx = true} : vector<8x1xf32> -> vector<8x1xf32>
    %265 = vector.broadcast %264 : vector<8x1xf32> to vector<8x8xf32>
    %266 = arith.mulf %261, %265 : vector<8x8xf32>
    %267 = arith.truncf %266 : vector<8x8xf32> to vector<8x8xbf16>
    %cst_107 = arith.constant dense<0.000000e+00> : vector<8x8xf32>
    %268 = tpu.matmul %267, %254, %cst_107 {dimension_numbers = #tpu.dot_dimension_numbers<[1], [0], [0], [1], [0, 0, 1, 1], [], []>} : vector<8x8xbf16>, vector<8x8xbf16>, vector<8x8xf32> -> vector<8x8xf32>
    %269 = arith.truncf %268 : vector<8x8xf32> to vector<8x8xbf16>
    %270 = vector.extract_strided_slice %223 {offsets = [8, 0], sizes = [8, 32], strides = [1, 1]} : vector<32x32xbf16> to vector<8x32xbf16>
    %cst_108 = arith.constant dense<0.000000e+00> : vector<8x32xf32>
    %271 = tpu.matmul %269, %270, %cst_108 {dimension_numbers = #tpu.dot_dimension_numbers<[1], [0], [0], [1], [0, 0, 1, 1], [], []>} : vector<8x8xbf16>, vector<8x32xbf16>, vector<8x32xf32> -> vector<8x32xf32>
    %272 = arith.addf %248, %271 : vector<8x32xf32>
    %273 = vector.extract_strided_slice %204 {offsets = [0, 16], sizes = [8, 8], strides = [1, 1]} : vector<8x32xf32> to vector<8x8xf32>
    %274 = arith.truncf %273 : vector<8x8xf32> to vector<8x8xbf16>
    %275 = vector.extract_strided_slice %212 {offsets = [0, 16], sizes = [8, 8], strides = [1, 1]} : vector<8x32xf32> to vector<8x8xf32>
    %276 = arith.truncf %275 : vector<8x8xf32> to vector<8x8xbf16>
    %277 = vector.extract_strided_slice %220 {offsets = [0, 16], sizes = [8, 8], strides = [1, 1]} : vector<8x32xf32> to vector<8x8xf32>
    %278 = arith.truncf %277 : vector<8x8xf32> to vector<8x8xbf16>
    %cst_109 = arith.constant dense<0.000000e+00> : vector<8x8xf32>
    %279 = tpu.matmul %274, %276, %cst_109 {dimension_numbers = #tpu.dot_dimension_numbers<[1], [1], [0], [0], [0, 0, 1, 0], [], []>} : vector<8x8xbf16>, vector<8x8xbf16>, vector<8x8xf32> -> vector<8x8xf32>
    %280 = arith.addf %279, %7 : vector<8x8xf32>
    %cst_110 = arith.constant dense<0xFF800000> : vector<8xf32>
    %281 = vector.multi_reduction <maximumf>, %280, %cst_110 [1] : vector<8x8xf32> to vector<8xf32>
    %282 = vector.shape_cast %281 : vector<8xf32> to vector<8x1xf32>
    %283 = vector.broadcast %282 : vector<8x1xf32> to vector<8x8xf32>
    %284 = arith.subf %280, %283 : vector<8x8xf32>
    %285 = math.exp %284 : vector<8x8xf32>
    %cst_111 = arith.constant dense<0.000000e+00> : vector<8xf32>
    %286 = vector.multi_reduction <add>, %285, %cst_111 [1] : vector<8x8xf32> to vector<8xf32>
    %287 = vector.shape_cast %286 : vector<8xf32> to vector<8x1xf32>
    %288 = tpu.reciprocal %287 {approx = true} : vector<8x1xf32> -> vector<8x1xf32>
    %289 = vector.broadcast %288 : vector<8x1xf32> to vector<8x8xf32>
    %290 = arith.mulf %285, %289 : vector<8x8xf32>
    %291 = arith.truncf %290 : vector<8x8xf32> to vector<8x8xbf16>
    %cst_112 = arith.constant dense<0.000000e+00> : vector<8x8xf32>
    %292 = tpu.matmul %291, %278, %cst_112 {dimension_numbers = #tpu.dot_dimension_numbers<[1], [0], [0], [1], [0, 0, 1, 1], [], []>} : vector<8x8xbf16>, vector<8x8xbf16>, vector<8x8xf32> -> vector<8x8xf32>
    %293 = arith.truncf %292 : vector<8x8xf32> to vector<8x8xbf16>
    %294 = vector.extract_strided_slice %223 {offsets = [16, 0], sizes = [8, 32], strides = [1, 1]} : vector<32x32xbf16> to vector<8x32xbf16>
    %cst_113 = arith.constant dense<0.000000e+00> : vector<8x32xf32>
    %295 = tpu.matmul %293, %294, %cst_113 {dimension_numbers = #tpu.dot_dimension_numbers<[1], [0], [0], [1], [0, 0, 1, 1], [], []>} : vector<8x8xbf16>, vector<8x32xbf16>, vector<8x32xf32> -> vector<8x32xf32>
    %296 = arith.addf %272, %295 : vector<8x32xf32>
    %297 = vector.extract_strided_slice %204 {offsets = [0, 24], sizes = [8, 8], strides = [1, 1]} : vector<8x32xf32> to vector<8x8xf32>
    %298 = arith.truncf %297 : vector<8x8xf32> to vector<8x8xbf16>
    %299 = vector.extract_strided_slice %212 {offsets = [0, 24], sizes = [8, 8], strides = [1, 1]} : vector<8x32xf32> to vector<8x8xf32>
    %300 = arith.truncf %299 : vector<8x8xf32> to vector<8x8xbf16>
    %301 = vector.extract_strided_slice %220 {offsets = [0, 24], sizes = [8, 8], strides = [1, 1]} : vector<8x32xf32> to vector<8x8xf32>
    %302 = arith.truncf %301 : vector<8x8xf32> to vector<8x8xbf16>
    %cst_114 = arith.constant dense<0.000000e+00> : vector<8x8xf32>
    %303 = tpu.matmul %298, %300, %cst_114 {dimension_numbers = #tpu.dot_dimension_numbers<[1], [1], [0], [0], [0, 0, 1, 0], [], []>} : vector<8x8xbf16>, vector<8x8xbf16>, vector<8x8xf32> -> vector<8x8xf32>
    %304 = arith.addf %303, %7 : vector<8x8xf32>
    %cst_115 = arith.constant dense<0xFF800000> : vector<8xf32>
    %305 = vector.multi_reduction <maximumf>, %304, %cst_115 [1] : vector<8x8xf32> to vector<8xf32>
    %306 = vector.shape_cast %305 : vector<8xf32> to vector<8x1xf32>
    %307 = vector.broadcast %306 : vector<8x1xf32> to vector<8x8xf32>
    %308 = arith.subf %304, %307 : vector<8x8xf32>
    %309 = math.exp %308 : vector<8x8xf32>
    %cst_116 = arith.constant dense<0.000000e+00> : vector<8xf32>
    %310 = vector.multi_reduction <add>, %309, %cst_116 [1] : vector<8x8xf32> to vector<8xf32>
    %311 = vector.shape_cast %310 : vector<8xf32> to vector<8x1xf32>
    %312 = tpu.reciprocal %311 {approx = true} : vector<8x1xf32> -> vector<8x1xf32>
    %313 = vector.broadcast %312 : vector<8x1xf32> to vector<8x8xf32>
    %314 = arith.mulf %309, %313 : vector<8x8xf32>
    %315 = arith.truncf %314 : vector<8x8xf32> to vector<8x8xbf16>
    %cst_117 = arith.constant dense<0.000000e+00> : vector<8x8xf32>
    %316 = tpu.matmul %315, %302, %cst_117 {dimension_numbers = #tpu.dot_dimension_numbers<[1], [0], [0], [1], [0, 0, 1, 1], [], []>} : vector<8x8xbf16>, vector<8x8xbf16>, vector<8x8xf32> -> vector<8x8xf32>
    %317 = arith.truncf %316 : vector<8x8xf32> to vector<8x8xbf16>
    %318 = vector.extract_strided_slice %223 {offsets = [24, 0], sizes = [8, 32], strides = [1, 1]} : vector<32x32xbf16> to vector<8x32xbf16>
    %cst_118 = arith.constant dense<0.000000e+00> : vector<8x32xf32>
    %319 = tpu.matmul %317, %318, %cst_118 {dimension_numbers = #tpu.dot_dimension_numbers<[1], [0], [0], [1], [0, 0, 1, 1], [], []>} : vector<8x8xbf16>, vector<8x32xbf16>, vector<8x32xf32> -> vector<8x32xf32>
    %320 = arith.addf %296, %319 : vector<8x32xf32>
    %c0_119 = arith.constant 0 : index
    %c0_120 = arith.constant 0 : index
    %c0_121 = arith.constant 0 : index
    %321 = vector.load %arg23[%c0_119, %c0_120, %c0_121] : memref<1x1x32xf32, #tpu.memory_space<vmem>>, vector<1x1x32xf32>
    %322 = vector.shape_cast %321 : vector<1x1x32xf32> to vector<1x32xf32>
    %323 = vector.broadcast %322 : vector<1x32xf32> to vector<8x32xf32>
    %324 = arith.addf %320, %323 : vector<8x32xf32>
    %325 = arith.addf %168, %324 : vector<8x32xf32>
    %326 = vector.extract_strided_slice %9 {offsets = [2, 0], sizes = [1, 32], strides = [1, 1]} : vector<3x32xf32> to vector<1x32xf32>
    %327 = vector.extract_strided_slice %11 {offsets = [2, 0], sizes = [1, 32], strides = [1, 1]} : vector<3x32xf32> to vector<1x32xf32>
    %cst_122 = arith.constant dense<0.000000e+00> : vector<8xf32>
    %328 = vector.multi_reduction <add>, %325, %cst_122 [1] : vector<8x32xf32> to vector<8xf32>
    %329 = vector.shape_cast %328 : vector<8xf32> to vector<8x1xf32>
    %cst_123 = arith.constant 3.200000e+01 : f32
    %330 = vector.broadcast %cst_123 : f32 to vector<8x1xf32>
    %331 = arith.divf %329, %330 : vector<8x1xf32>
    %332 = vector.broadcast %331 : vector<8x1xf32> to vector<8x32xf32>
    %333 = arith.subf %325, %332 : vector<8x32xf32>
    %334 = arith.mulf %333, %333 : vector<8x32xf32>
    %cst_124 = arith.constant dense<0.000000e+00> : vector<8xf32>
    %335 = vector.multi_reduction <add>, %334, %cst_124 [1] : vector<8x32xf32> to vector<8xf32>
    %336 = vector.shape_cast %335 : vector<8xf32> to vector<8x1xf32>
    %cst_125 = arith.constant 0.0322580636 : f32
    %337 = vector.broadcast %cst_125 : f32 to vector<8x1xf32>
    %338 = arith.mulf %336, %337 : vector<8x1xf32>
    %339 = vector.broadcast %331 : vector<8x1xf32> to vector<8x32xf32>
    %340 = arith.subf %325, %339 : vector<8x32xf32>
    %341 = vector.broadcast %326 : vector<1x32xf32> to vector<8x32xf32>
    %342 = arith.mulf %341, %340 : vector<8x32xf32>
    %343 = math.sqrt %338 : vector<8x1xf32>
    %cst_126 = arith.constant 9.99999997E-7 : f32
    %344 = vector.broadcast %cst_126 : f32 to vector<8x1xf32>
    %345 = arith.addf %343, %344 : vector<8x1xf32>
    %346 = vector.broadcast %345 : vector<8x1xf32> to vector<8x32xf32>
    %347 = arith.divf %342, %346 : vector<8x32xf32>
    %348 = vector.broadcast %327 : vector<1x32xf32> to vector<8x32xf32>
    %349 = arith.addf %347, %348 : vector<8x32xf32>
    %350 = arith.truncf %349 : vector<8x32xf32> to vector<8x32xbf16>
    %c0_127 = arith.constant 0 : index
    %c0_128 = arith.constant 0 : index
    %c0_129 = arith.constant 0 : index
    %351 = vector.load %arg24[%c0_127, %c0_128, %c0_129] : memref<1x32x64xf32, #tpu.memory_space<vmem>>, vector<1x32x64xf32>
    %352 = vector.shape_cast %351 : vector<1x32x64xf32> to vector<32x64xf32>
    %353 = arith.truncf %352 : vector<32x64xf32> to vector<32x64xbf16>
    %cst_130 = arith.constant dense<0.000000e+00> : vector<8x64xf32>
    %354 = tpu.matmul %350, %353, %cst_130 {dimension_numbers = #tpu.dot_dimension_numbers<[1], [0], [0], [1], [0, 0, 1, 1], [], []>} : vector<8x32xbf16>, vector<32x64xbf16>, vector<8x64xf32> -> vector<8x64xf32>
    %c0_131 = arith.constant 0 : index
    %c0_132 = arith.constant 0 : index
    %c0_133 = arith.constant 0 : index
    %355 = vector.load %arg25[%c0_131, %c0_132, %c0_133] : memref<1x1x64xf32, #tpu.memory_space<vmem>>, vector<1x1x64xf32>
    %356 = vector.shape_cast %355 : vector<1x1x64xf32> to vector<1x64xf32>
    %357 = vector.broadcast %356 : vector<1x64xf32> to vector<8x64xf32>
    %358 = arith.addf %354, %357 : vector<8x64xf32>
    %cst_134 = arith.constant 0.000000e+00 : f32
    %359 = vector.broadcast %cst_134 : f32 to vector<8x64xf32>
    %360 = arith.maximumf %358, %359 : vector<8x64xf32>
    %361 = arith.truncf %360 : vector<8x64xf32> to vector<8x64xbf16>
    %c0_135 = arith.constant 0 : index
    %c0_136 = arith.constant 0 : index
    %c0_137 = arith.constant 0 : index
    %362 = vector.load %arg26[%c0_135, %c0_136, %c0_137] : memref<1x64x32xf32, #tpu.memory_space<vmem>>, vector<1x64x32xf32>
    %363 = vector.shape_cast %362 : vector<1x64x32xf32> to vector<64x32xf32>
    %364 = arith.truncf %363 : vector<64x32xf32> to vector<64x32xbf16>
    %cst_138 = arith.constant dense<0.000000e+00> : vector<8x32xf32>
    %365 = tpu.matmul %361, %364, %cst_138 {dimension_numbers = #tpu.dot_dimension_numbers<[1], [0], [0], [1], [0, 0, 1, 1], [], []>} : vector<8x64xbf16>, vector<64x32xbf16>, vector<8x32xf32> -> vector<8x32xf32>
    %c0_139 = arith.constant 0 : index
    %c0_140 = arith.constant 0 : index
    %c0_141 = arith.constant 0 : index
    %366 = vector.load %arg27[%c0_139, %c0_140, %c0_141] : memref<1x1x32xf32, #tpu.memory_space<vmem>>, vector<1x1x32xf32>
    %367 = vector.shape_cast %366 : vector<1x1x32xf32> to vector<1x32xf32>
    %368 = vector.broadcast %367 : vector<1x32xf32> to vector<8x32xf32>
    %369 = arith.addf %365, %368 : vector<8x32xf32>
    %370 = arith.addf %325, %369 : vector<8x32xf32>
    %c0_142 = arith.constant 0 : index
    %c0_143 = arith.constant 0 : index
    %371 = vector.load %arg31[%c0_142, %c0_143] : memref<8x32xf32, #tpu.memory_space<vmem>>, vector<8x32xf32>
    tpu.vector_store %arg31[%c0_142, %c0_143], %370 {strides = array<i32>} : memref<8x32xf32, #tpu.memory_space<vmem>>, vector<8x32xf32>,
    %c1_i32 = arith.constant 1 : i32
    %372 = arith.cmpi eq, %arg1, %c1_i32 : i32
    %373 = arith.extui %372 : i1 to i32
    %c0_i32_144 = arith.constant 0 : i32
    %374 = arith.cmpi ne, %373, %c0_i32_144 : i32
    scf.if %374 {
      %c0_145 = arith.constant 0 : index
      %c0_146 = arith.constant 0 : index
      %375 = vector.load %arg28[%c0_145, %c0_146] : memref<1x32xf32, #tpu.memory_space<vmem>>, vector<1x32xf32>
      %c0_147 = arith.constant 0 : index
      %c0_148 = arith.constant 0 : index
      %376 = vector.load %arg29[%c0_147, %c0_148] : memref<1x32xf32, #tpu.memory_space<vmem>>, vector<1x32xf32>
      %cst_149 = arith.constant dense<0.000000e+00> : vector<8xf32>
      %377 = vector.multi_reduction <add>, %370, %cst_149 [1] : vector<8x32xf32> to vector<8xf32>
      %378 = vector.shape_cast %377 : vector<8xf32> to vector<8x1xf32>
      %cst_150 = arith.constant 3.200000e+01 : f32
      %379 = vector.broadcast %cst_150 : f32 to vector<8x1xf32>
      %380 = arith.divf %378, %379 : vector<8x1xf32>
      %381 = vector.broadcast %380 : vector<8x1xf32> to vector<8x32xf32>
      %382 = arith.subf %370, %381 : vector<8x32xf32>
      %383 = arith.mulf %382, %382 : vector<8x32xf32>
      %cst_151 = arith.constant dense<0.000000e+00> : vector<8xf32>
      %384 = vector.multi_reduction <add>, %383, %cst_151 [1] : vector<8x32xf32> to vector<8xf32>
      %385 = vector.shape_cast %384 : vector<8xf32> to vector<8x1xf32>
      %cst_152 = arith.constant 0.0322580636 : f32
      %386 = vector.broadcast %cst_152 : f32 to vector<8x1xf32>
      %387 = arith.mulf %385, %386 : vector<8x1xf32>
      %388 = vector.broadcast %380 : vector<8x1xf32> to vector<8x32xf32>
      %389 = arith.subf %370, %388 : vector<8x32xf32>
      %390 = vector.broadcast %375 : vector<1x32xf32> to vector<8x32xf32>
      %391 = arith.mulf %390, %389 : vector<8x32xf32>
      %392 = math.sqrt %387 : vector<8x1xf32>
      %cst_153 = arith.constant 9.99999997E-7 : f32
      %393 = vector.broadcast %cst_153 : f32 to vector<8x1xf32>
      %394 = arith.addf %392, %393 : vector<8x1xf32>
      %395 = vector.broadcast %394 : vector<8x1xf32> to vector<8x32xf32>
      %396 = arith.divf %391, %395 : vector<8x32xf32>
      %397 = vector.broadcast %376 : vector<1x32xf32> to vector<8x32xf32>
      %398 = arith.addf %396, %397 : vector<8x32xf32>
      %c0_154 = arith.constant 0 : index
      %c0_155 = arith.constant 0 : index
      %c0_156 = arith.constant 0 : index
      %399 = vector.load %arg30[%c0_154, %c0_155, %c0_156] : memref<1x8x32xf32, #tpu.memory_space<vmem>>, vector<1x8x32xf32>
      %400 = vector.shape_cast %399 : vector<1x8x32xf32> to vector<8x32xf32>
      %401 = vector.shape_cast %398 : vector<8x32xf32> to vector<1x8x32xf32>
      tpu.vector_store %arg30[%c0_154, %c0_155, %c0_156], %401 {strides = array<i32>} : memref<1x8x32xf32, #tpu.memory_space<vmem>>, vector<1x8x32xf32>,
    } else {
    }
    return
  }
  func.func @transform_0(%arg0: i32, %arg1: i32) -> (i32, i32, i32) {
    %c0_i32 = arith.constant 0 : i32
    %c0_i32_0 = arith.constant 0 : i32
    %c0_i32_1 = arith.constant 0 : i32
    return %arg0, %c0_i32, %c0_i32_0 : i32, i32, i32
  }
  func.func @transform_1(%arg0: i32, %arg1: i32) -> (i32, i32, i32) {
    %c0_i32 = arith.constant 0 : i32
    %c0_i32_0 = arith.constant 0 : i32
    %c0_i32_1 = arith.constant 0 : i32
    return %arg0, %c0_i32, %c0_i32_0 : i32, i32, i32
  }
  func.func @transform_2(%arg0: i32, %arg1: i32) -> (i32, i32) {
    %c0_i32 = arith.constant 0 : i32
    %c0_i32_0 = arith.constant 0 : i32
    %c0_i32_1 = arith.constant 0 : i32
    return %c0_i32, %c0_i32_0 : i32, i32
  }
  func.func @transform_3(%arg0: i32, %arg1: i32) -> (i32, i32) {
    %c0_i32 = arith.constant 0 : i32
    %c0_i32_0 = arith.constant 0 : i32
    %c0_i32_1 = arith.constant 0 : i32
    return %c0_i32, %c0_i32_0 : i32, i32
  }
  func.func @transform_4(%arg0: i32, %arg1: i32) -> (i32, i32, i32) {
    %c0_i32 = arith.constant 0 : i32
    %c0_i32_0 = arith.constant 0 : i32
    %c0_i32_1 = arith.constant 0 : i32
    return %arg1, %c0_i32, %c0_i32_0 : i32, i32, i32
  }
  func.func @transform_5(%arg0: i32, %arg1: i32) -> (i32, i32, i32) {
    %c0_i32 = arith.constant 0 : i32
    %c0_i32_0 = arith.constant 0 : i32
    %c0_i32_1 = arith.constant 0 : i32
    return %arg1, %c0_i32, %c0_i32_0 : i32, i32, i32
  }
  func.func @transform_6(%arg0: i32, %arg1: i32) -> (i32, i32, i32) {
    %c0_i32 = arith.constant 0 : i32
    %c0_i32_0 = arith.constant 0 : i32
    %c0_i32_1 = arith.constant 0 : i32
    return %arg1, %c0_i32, %c0_i32_0 : i32, i32, i32
  }
  func.func @transform_7(%arg0: i32, %arg1: i32) -> (i32, i32, i32) {
    %c0_i32 = arith.constant 0 : i32
    %c0_i32_0 = arith.constant 0 : i32
    %c0_i32_1 = arith.constant 0 : i32
    return %arg1, %c0_i32, %c0_i32_0 : i32, i32, i32
  }
  func.func @transform_8(%arg0: i32, %arg1: i32) -> (i32, i32, i32) {
    %c0_i32 = arith.constant 0 : i32
    %c0_i32_0 = arith.constant 0 : i32
    %c0_i32_1 = arith.constant 0 : i32
    return %arg1, %c0_i32, %c0_i32_0 : i32, i32, i32
  }
  func.func @transform_9(%arg0: i32, %arg1: i32) -> (i32, i32, i32) {
    %c0_i32 = arith.constant 0 : i32
    %c0_i32_0 = arith.constant 0 : i32
    %c0_i32_1 = arith.constant 0 : i32
    return %arg1, %c0_i32, %c0_i32_0 : i32, i32, i32
  }
  func.func @transform_10(%arg0: i32, %arg1: i32) -> (i32, i32, i32) {
    %c0_i32 = arith.constant 0 : i32
    %c0_i32_0 = arith.constant 0 : i32
    %c0_i32_1 = arith.constant 0 : i32
    return %arg1, %c0_i32, %c0_i32_0 : i32, i32, i32
  }
  func.func @transform_11(%arg0: i32, %arg1: i32) -> (i32, i32, i32) {
    %c0_i32 = arith.constant 0 : i32
    %c0_i32_0 = arith.constant 0 : i32
    %c0_i32_1 = arith.constant 0 : i32
    return %arg1, %c0_i32, %c0_i32_0 : i32, i32, i32
  }
  func.func @transform_12(%arg0: i32, %arg1: i32) -> (i32, i32, i32) {
    %c0_i32 = arith.constant 0 : i32
    %c0_i32_0 = arith.constant 0 : i32
    %c0_i32_1 = arith.constant 0 : i32
    return %arg1, %c0_i32, %c0_i32_0 : i32, i32, i32
  }
  func.func @transform_13(%arg0: i32, %arg1: i32) -> (i32, i32, i32) {
    %c0_i32 = arith.constant 0 : i32
    %c0_i32_0 = arith.constant 0 : i32
    %c0_i32_1 = arith.constant 0 : i32
    return %arg1, %c0_i32, %c0_i32_0 : i32, i32, i32
  }
  func.func @transform_14(%arg0: i32, %arg1: i32) -> (i32, i32, i32) {
    %c0_i32 = arith.constant 0 : i32
    %c0_i32_0 = arith.constant 0 : i32
    %c0_i32_1 = arith.constant 0 : i32
    return %arg1, %c0_i32, %c0_i32_0 : i32, i32, i32
  }
  func.func @transform_15(%arg0: i32, %arg1: i32) -> (i32, i32, i32) {
    %c0_i32 = arith.constant 0 : i32
    %c0_i32_0 = arith.constant 0 : i32
    %c0_i32_1 = arith.constant 0 : i32
    return %arg1, %c0_i32, %c0_i32_0 : i32, i32, i32
  }
  func.func @transform_16(%arg0: i32, %arg1: i32) -> (i32, i32, i32) {
    %c0_i32 = arith.constant 0 : i32
    %c0_i32_0 = arith.constant 0 : i32
    %c0_i32_1 = arith.constant 0 : i32
    return %arg1, %c0_i32, %c0_i32_0 : i32, i32, i32
  }
  func.func @transform_17(%arg0: i32, %arg1: i32) -> (i32, i32, i32) {
    %c0_i32 = arith.constant 0 : i32
    %c0_i32_0 = arith.constant 0 : i32
    %c0_i32_1 = arith.constant 0 : i32
    return %arg1, %c0_i32, %c0_i32_0 : i32, i32, i32
  }
  func.func @transform_18(%arg0: i32, %arg1: i32) -> (i32, i32, i32) {
    %c0_i32 = arith.constant 0 : i32
    %c0_i32_0 = arith.constant 0 : i32
    %c0_i32_1 = arith.constant 0 : i32
    return %arg1, %c0_i32, %c0_i32_0 : i32, i32, i32
  }
  func.func @transform_19(%arg0: i32, %arg1: i32) -> (i32, i32, i32) {
    %c0_i32 = arith.constant 0 : i32
    %c0_i32_0 = arith.constant 0 : i32
    %c0_i32_1 = arith.constant 0 : i32
    return %arg1, %c0_i32, %c0_i32_0 : i32, i32, i32
  }
  func.func @transform_20(%arg0: i32, %arg1: i32) -> (i32, i32, i32) {
    %c0_i32 = arith.constant 0 : i32
    %c0_i32_0 = arith.constant 0 : i32
    %c0_i32_1 = arith.constant 0 : i32
    return %arg1, %c0_i32, %c0_i32_0 : i32, i32, i32
  }
  func.func @transform_21(%arg0: i32, %arg1: i32) -> (i32, i32, i32) {
    %c0_i32 = arith.constant 0 : i32
    %c0_i32_0 = arith.constant 0 : i32
    %c0_i32_1 = arith.constant 0 : i32
    return %arg1, %c0_i32, %c0_i32_0 : i32, i32, i32
  }
  func.func @transform_22(%arg0: i32, %arg1: i32) -> (i32, i32, i32) {
    %c0_i32 = arith.constant 0 : i32
    %c0_i32_0 = arith.constant 0 : i32
    %c0_i32_1 = arith.constant 0 : i32
    return %arg1, %c0_i32, %c0_i32_0 : i32, i32, i32
  }
  func.func @transform_23(%arg0: i32, %arg1: i32) -> (i32, i32, i32) {
    %c0_i32 = arith.constant 0 : i32
    %c0_i32_0 = arith.constant 0 : i32
    %c0_i32_1 = arith.constant 0 : i32
    return %arg1, %c0_i32, %c0_i32_0 : i32, i32, i32
  }
  func.func @transform_24(%arg0: i32, %arg1: i32) -> (i32, i32, i32) {
    %c0_i32 = arith.constant 0 : i32
    %c0_i32_0 = arith.constant 0 : i32
    %c0_i32_1 = arith.constant 0 : i32
    return %arg1, %c0_i32, %c0_i32_0 : i32, i32, i32
  }
  func.func @transform_25(%arg0: i32, %arg1: i32) -> (i32, i32, i32) {
    %c0_i32 = arith.constant 0 : i32
    %c0_i32_0 = arith.constant 0 : i32
    %c0_i32_1 = arith.constant 0 : i32
    return %arg1, %c0_i32, %c0_i32_0 : i32, i32, i32
  }
  func.func @transform_26(%arg0: i32, %arg1: i32) -> (i32, i32) {
    %c0_i32 = arith.constant 0 : i32
    %c0_i32_0 = arith.constant 0 : i32
    %c0_i32_1 = arith.constant 0 : i32
    return %c0_i32, %c0_i32_0 : i32, i32
  }
  func.func @transform_27(%arg0: i32, %arg1: i32) -> (i32, i32) {
    %c0_i32 = arith.constant 0 : i32
    %c0_i32_0 = arith.constant 0 : i32
    %c0_i32_1 = arith.constant 0 : i32
    return %c0_i32, %c0_i32_0 : i32, i32
  }
  func.func @transform_28(%arg0: i32, %arg1: i32) -> (i32, i32, i32) {
    %c0_i32 = arith.constant 0 : i32
    %c0_i32_0 = arith.constant 0 : i32
    %c0_i32_1 = arith.constant 0 : i32
    return %arg0, %c0_i32, %c0_i32_0 : i32, i32, i32
  }
}

</mosaic_0001>

<bundles_post_ra>
// kernel: tpu_custom_call.1
= control target key start
LH: loop header
LB: loop body
LE: loop exit
PB: predicated region body
PF: predicated region fallthrough
CT: control target
= control target key end

     0   :  { %s6329_s0 = inlined_call_operand.hbm [shape: f32[2,8,32], index: 0, kind: input, shape index: {}]   ;;  %s6330_s1 = inlined_call_operand.hbm [shape: f32[2,8,32], index: 1, kind: input, shape index: {}]   ;;  %s6331_s2 = inlined_call_operand.hbm [shape: f32[8,8], index: 2, kind: input, shape index: {}]   ;;  %s6332_s3 = inlined_call_operand.hbm [shape: f32[8,8], index: 3, kind: input, shape index: {}]   ;;  %s6333_s4 = inlined_call_operand.vmem [shape: f32[2,3,32], index: 4, kind: input, shape index: {}]   ;;  %s6334_s5 = inlined_call_operand.vmem [shape: f32[2,3,32], index: 5, kind: input, shape index: {}]   ;;  %s6335_s6 = inlined_call_operand.vmem [shape: f32[2,32,32], index: 6, kind: input, shape index: {}]   ;;  %s6336_s7 = inlined_call_operand.hbm [shape: f32[2,1,32], index: 7, kind: input, shape index: {}]   ;;  %s6337_s8 = inlined_call_operand.vmem [shape: f32[2,32,32], index: 8, kind: input, shape index: {}]   ;;  %s6338_s9 = inlined_call_operand.hbm [shape: f32[2,1,32], index: 9, kind: input, shape index: {}]   ;;  %s6339_s10 = inlined_call_operand.vmem [shape: f32[2,32,32], index: 10, kind: input, shape index: {}]   ;;  %s6340_s11 = inlined_call_operand.hbm [shape: f32[2,1,32], index: 11, kind: input, shape index: {}]   ;;  %s6341_s12 = inlined_call_operand.hbm [shape: f32[2,32,32], index: 12, kind: input, shape index: {}]   ;;  %s6342_s13 = inlined_call_operand.hbm [shape: f32[2,1,32], index: 13, kind: input, shape index: {}]   ;;  %s6343_s14 = inlined_call_operand.hbm [shape: f32[2,32,32], index: 14, kind: input, shape index: {}]   ;;  %s6344_s15 = inlined_call_operand.hbm [shape: f32[2,1,32], index: 15, kind: input, shape index: {}]   ;;  %s6345_s16 = inlined_call_operand.hbm [shape: f32[2,32,32], index: 16, kind: input, shape index: {}]   ;;  %s6346_s17 = inlined_call_operand.hbm [shape: f32[2,1,32], index: 17, kind: input, shape index: {}]   ;;  %s6347_s18 = inlined_call_operand.hbm [shape: f32[2,32,32], index: 18, kind: input, shape index: {}]   ;;  %s6348_s19 = inlined_call_operand.hbm [shape: f32[2,1,32], index: 19, kind: input, shape index: {}]   ;;  %s6349_s20 = inlined_call_operand.vmem [shape: f32[2,32,32], index: 20, kind: input, shape index: {}]   ;;  %s6350_s21 = inlined_call_operand.hbm [shape: f32[2,1,32], index: 21, kind: input, shape index: {}]   ;;  %s6351_s22 = inlined_call_operand.hbm [shape: f32[2,32,64], index: 22, kind: input, shape index: {}]   ;;  %s6352_s23 = inlined_call_operand.vmem [shape: f32[2,1,64], index: 23, kind: input, shape index: {}]   ;;  %s6353_s24 = inlined_call_operand.vmem [shape: f32[2,64,32], index: 24, kind: input, shape index: {}]   ;;  %s6354_s25 = inlined_call_operand.vmem [shape: f32[2,1,32], index: 25, kind: input, shape index: {}]   ;;  %s6355_s26 = inlined_call_operand.vmem [shape: f32[1,32], index: 26, kind: input, shape index: {}]   ;;  %s6356_s27 = inlined_call_operand.vmem [shape: f32[1,32], index: 27, kind: input, shape index: {}]   ;;  %s6357_s28 = inlined_call_operand.hbm [shape: f32[2,8,32], index: 28, kind: output, shape index: {}]  }
   0x1   :  { %6396 = sst [smem:[#allocation65_spill]] %s6329_s0 }
   0x2   :  { %6397 = sst [smem:[#allocation66_spill]] %s6330_s1 }
   0x3   :  { %6398 = sst [smem:[#allocation67_spill]] %s6331_s2 }
   0x4   :  { %6399 = sst [smem:[#allocation68_spill]] %s6332_s3 }
   0x5   :  { %6400 = sst [smem:[#allocation69_spill]] %s6333_s4 }
   0x6   :  { %6401 = sst [smem:[#allocation70_spill]] %s6334_s5 }
   0x7   :  { %6402 = sst [smem:[#allocation71_spill]] %s6335_s6 }
   0x8   :  { %6403 = sst [smem:[#allocation72_spill]] %s6336_s7 }
   0x9   :  { %6404 = sst [smem:[#allocation73_spill]] %s6337_s8 }
   0xa   :  { %6405 = sst [smem:[#allocation74_spill]] %s6338_s9 }
   0xb   :  { %6406 = sst [smem:[#allocation75_spill]] %s6339_s10 }
   0xc   :  { %6407 = sst [smem:[#allocation76_spill]] %s6340_s11 }
   0xd   :  { %6408 = sst [smem:[#allocation77_spill]] %s6341_s12 }
   0xe   :  { %6409 = sst [smem:[#allocation78_spill]] %s6342_s13 }
   0xf   :  { %6410 = sst [smem:[#allocation79_spill]] %s6343_s14 }
  0x10   :  { %6411 = sst [smem:[#allocation80_spill]] %s6344_s15 }
  0x11   :  { %6412 = sst [smem:[#allocation81_spill]] %s6345_s16 }
  0x12   :  { %6413 = sst [smem:[#allocation82_spill]] %s6346_s17 }
  0x13   :  { %6414 = sst [smem:[#allocation83_spill]] %s6347_s18 }
  0x14   :  { %6415 = sst [smem:[#allocation84_spill]] %s6348_s19 }
  0x15   :  { %6416 = sst [smem:[#allocation85_spill]] %s6349_s20 }
  0x16   :  { %6417 = sst [smem:[#allocation86_spill]] %s6350_s21 }
  0x17   :  { %6418 = sst [smem:[#allocation87_spill]] %s6351_s22 }
  0x18   :  { %6419 = sst [smem:[#allocation88_spill]] %s6352_s23 }
  0x19   :  { %6420 = sst [smem:[#allocation89_spill]] %s6353_s24 }
  0x1a   :  { %6421 = sst [smem:[#allocation90_spill]] %s6354_s25 }
  0x1b   :  { %6422 = sst [smem:[#allocation91_spill]] %s6355_s26 }
  0x1c   :  { %6423 = sst [smem:[#allocation92_spill]] %s6356_s27 }
  0x1d   :  { %6424 = sst [smem:[#allocation93_spill]] %s6357_s28 }
  0x1e   :  { %33 = vsyncpa [#allocation4], 0 }
  0x1f   :  { %35 = vsyncpa [#allocation4 + $0x1], 0 }
  0x20   :  { %36 = vsyncpa [#allocation7], 0 }
  0x21   :  { %38 = vsyncpa [#allocation7 + $0x1], 0 }
  0x22   :  { %39 = vsyncpa [#allocation10], 0 }
  0x23   :  { %40 = vsyncpa [#allocation5], 0 }
  0x24   :  { %42 = vsyncpa [#allocation5 + $0x1], 0  ;;  %s5311_s8 = smov 0   ;;  %s5313_s5 = smov 0  }
  0x25   :  { %s5315_s9 = smov 0   ;;  %s5317_s30 = smov 0  }
  0x26   :  { %s5319_s3 = smov 0   ;;  %s5321_s6 = smov 0  }
  0x27   :  { %s5323_s10 = smov 0   ;;  %s5325_s0 = smov 0  }
  0x28   :  { %s5327_s11 = smov 0   ;;  %s5329_s29 = smov 0  }
  0x29   :  { %s5331_s2 = smov 0  }
  0x2a LB: > { %6425 = sst [smem:[#allocation43_spill]] %s5103_s5  ;;  %s5367_s7 = sadd.s32 4294967295, %s5139_s2   ;;  %s5139_s2 = sphi %s5331_s2, %s48_s2   ;;  %s5135_s29 = sphi %s5329_s29, %s6537_s29   ;;  %s5131_s11 = sphi %s5327_s11, %s6536_s11   ;;  %s5127_s0 = sphi %s5325_s0, %s6535_s0   ;;  %s5123_s10 = sphi %s5323_s10, %s6534_s10   ;;  %s5119_s6 = sphi %s5321_s6, %s6533_s6   ;;  %s5115_s3 = sphi %s5319_s3, %s6532_s3   ;;  %s5111_s30 = sphi %s5317_s30, %s6531_s30   ;;  %s5107_s9 = sphi %s5315_s9, %s6530_s9   ;;  %s5103_s5 = sphi %s5313_s5, %s6529_s5   ;;  %s5099_s8 = sphi %s5311_s8, %s6528_s8  }
  0x2b   : > { %6426 = sst [smem:[#allocation44_spill]] %s5107_s9  ;;  %s3909_s12 = sadd.s32 4294967294, %s5139_s2  }
  0x2c   : > { %6427 = sst [smem:[#allocation45_spill]] %s5111_s30  ;;  %s57_s1 = sadd.s32 1, %s5131_s11 }
  0x2d   : > { %6428 = sst [smem:[#allocation46_spill]] %s5115_s3  ;;  %s60_s4 = sadd.s32 1, %s5135_s29 }
  0x2e   : > { %6429 = sst [smem:[#allocation47_spill]] %s5119_s6  ;;  %p58_p0 = scmp.ge.s32.totalorder %s57_s1, 2 }
  0x2f   : > { %6430 = sst [smem:[#allocation48_spill]] %s5123_s10  ;;  %s67_s28 = sadd.s32 1, %s5119_s6 }
  0x30   : > { %6431 = sst [smem:[#allocation49_spill]] %s5127_s0  ;;  %p6363_p1 = scmp.ne.s32.totalorder %s5119_s6, %s5115_s3 }
  0x31   : > { %6432 = sst [smem:[#allocation50_spill]] %s5131_s11  ;;  %p75_p2 = scmp.eq.s32.totalorder %s5139_s2, 0 }
  0x32   : > { %6433 = sst [smem:[#allocation51_spill]] %s5135_s29  ;;  %s6539_s1 = smov (%p58_p0, %s57_s1), 0 }
  0x33   : > { %6434 = sst [smem:[#allocation52_spill]] %s5139_s2  ;;  %s6541_s4 = smov (!%p58_p0, %s60_s4), %s5135_s29 }
  0x34   : > { %6435 = sst [smem:[#allocation53_spill]] %s5367_s7  ;;  %p5384_p3 = por %p75_p2, %p6363_p1 }
  0x35   : > { %6436 = sst [smem:[#allocation54_spill]] %s6539_s1  ;;  %p6362_p4 = scmp.ne.s32.totalorder %s5115_s3, %s5111_s30 }
  0x36   : > { %s6437_s0 = scalar_select %p5384_p3, 1, 0 }
  0x37   : > { %p62_p5 = scmp.ge.s32.totalorder %s6541_s4, 2  ;;  %p6370_p6 = scmp.eq.s32.totalorder %s5367_s7, 0 }
  0x38   : > { %s236_s27 = ssub.s32 %s5131_s11, %s6539_s1  ;;  %s239_s26 = sadd.s32 1, %s5107_s9 }
  0x39   : > { %s6543_s4 = smov (%p62_p5, %s6541_s4), 0  ;;  %p5401_p7 = por %p6370_p6, %p6362_p4 }
  0x3a   : > { %6438 = sst [smem:[#allocation55_spill]] %s6543_s4  ;;  %p237_p8 = scmp.eq.s32.totalorder %s236_s27, 0 }
  0x3b   : > { %s6439_s25 = scalar_select %p5401_p7, 1, 0 }
  0x3c   : > { %s64_s24 = ssub.s32 %s5135_s29, %s6543_s4  ;;  %p246_p9 = scmp.ne.s32.totalorder %s5107_s9, %s5103_s5 }
  0x3d   : > { %6440 = sst [smem:[#allocation56_spill]] %s6439_s25  ;;  %p65_p10 = scmp.eq.s32.totalorder %s64_s24, 0 }
  0x3e   : > { %p252_p11 = scmp.ne.s32.totalorder %s5103_s5, %s5099_s8  ;;  %p5419_p12 = por %p246_p9, %p75_p2 }
  0x3f   : > { %s5412_s1 = scalar_select %p237_p8, %s5107_s9, %s239_s26  }
  0x40   : > { %s5415_s23 = scalar_select %p65_p10, %s5119_s6, %s67_s28  }
  0x41   : > { %6441 = sst [smem:[#allocation57_spill]] %s5412_s1  ;;  %p5425_p13 = por %p252_p11, %p6370_p6 }
  0x42   : > { %6442 = sst [smem:[#allocation58_spill]] %s5415_s23  ;;  %p786_p0 = scmp.eq.s32.totalorder %s5367_s7, 3 }
  0x43   : > { %s6443_s20 = scalar_select %p5419_p12, 1, 0 }
  0x44   : > { %s6444_s10 = scalar_select %p5425_p13, 1, 0 }
  0x45   : > { %p792_p5 = scmp.eq.s32.totalorder %s3909_s12, 3  ;;  %p3910_p4 = scmp.ge.s32.totalorder %s5139_s2, 1 }
  0x46   : > { %6445 = sst [smem:[#allocation59_spill]] %s6444_s10  ;;  %p799_p1 = scmp.lt.s32.totalorder %s5139_s2, 5 }
  0x47   : > { %p6446_p7 = scmp.ne.s32.totalorder %s5119_s6, %s5115_s3  ;;  %p6449_p10 = scmp.ne.s32.totalorder %s5115_s3, %s5111_s30 }
  0x48   : > { %p5446_p2 = pnand %p3910_p4, %p799_p1  ;;  %s5141_s28 = smov [#allocation8]  }
  0x49   : > { %p5435_p8 = por %p786_p0, %p6446_p7  ;;  %p5442_p3 = por %p792_p5, %p6449_p10 }
  0x4a   : > { %s6452_s27 = scalar_select %p5446_p2, 1, 0 }
  0x4b   : > { %s6447_s24 = scalar_select %p5435_p8, 1, 0 }
  0x4c   : > { %s6450_s26 = scalar_select %p5442_p3, 1, 0 }
  0x4d   : > { %6448 = sst [smem:[#allocation60_spill]] %s6447_s24  ;;  %p4350_p9 = pneg %p5446_p2 }
  0x4e   : > { %6451 = sst [smem:[#allocation61_spill]] %s6450_s26  ;;  %s812_s8 = sshll.u32 %s5141_s28, 4  ;;  %s813_s8 = int_to_ptr.vmem [resolvable:$true] %s812_s8 }
  0x4f   : > { %6453 = sst [smem:[#allocation62_spill]] %s6452_s27  ;;  %s5142_s12 = smov [#allocation9]  }
  0x50   : > { %s823_s4 = sshll.u32 %s5142_s12, 4  ;;  %p5454_p7 = pnand %p4350_p9, %p6370_p6  ;;  %s824_s4 = int_to_ptr.vmem [resolvable:$true] %s823_s4 }
  0x51   : > { %s4524_s1 = scalar_lea.vmem %s813_s8, 128  ;;  %p4532_p5 = scmp.lt.s32.totalorder %s813_s8, %s813_s8 }
  0x52   : > { %p4515_p1 = pneg %p5454_p7  ;;  %p4525_p4 = scmp.ne.s32.totalorder %s813_s8, %s4524_s1 }
  0x53   : > { %p4533_p10 = scmp.lt.s32.totalorder %s4524_s1, %s4524_s1 }
  0x54   : > { %p4527_p11 = pnand %p4525_p4, %p4515_p1 }
  0x55   : > { %p4534_p3 = por %p4533_p10, %p4532_p5 }
  0x56   : > { %p4528_p0 = pneg %p4527_p11 }
  0x58   : > { %p4535_p8 = pnand %p4534_p3, %p4528_p0 }
  0x5a   : > { %4538 = shalt.err (!%p4535_p8)
}
  0x5b   : > { %s6455_s26 = sld [smem:[#allocation67_spill]]  ;;  %s4550_s30 = scalar_lea.vmem %s824_s4, 128 }
  0x5c   : > { %p4551_p9 = scmp.ne.s32.totalorder %s824_s4, %s4550_s30  ;;  %p4558_p4 = scmp.lt.s32.totalorder %s824_s4, %s824_s4 }
  0x5d   : > { %p4559_p11 = scmp.lt.s32.totalorder %s4550_s30, %s4550_s30 }
  0x5e   : > { %p4553_p6 = pnand %p4551_p9, %p4515_p1 }
  0x5f   : > { %p4560_p2 = por %p4559_p11, %p4558_p4 }
  0x60   : > { %p4554_p13 = pneg %p4553_p6 }
  0x61   : > { %4353 = dma.hbm_to_vmem [thread:$0]  (!%p5454_p7), %s6455_s26, 128, %s813_s8, [#allocation7]  }
  0x62   : > { %p4561_p12 = pnand %p4560_p2, %p4554_p13 }
  0x64   : > { %4564 = shalt.err (!%p4561_p12)
}
  0x65   : > { %s6456_s10 = sld [smem:[#allocation68_spill]]  ;;  %p3913_p3 = scmp.ge.s32.totalorder %s5139_s2, 4 }
  0x66   : > { %s840_s26 = sand.u32 (!%p3913_p3), 1, %s5139_s2   ;;  %s842_s8 = sand.u32 (!%p3913_p3), 1, %s5119_s6  }
  0x67   : > { %836 = sbr.rel (%p3913_p3) target bundleno = 309 (0x135), region = 32  ;;  %s3914_s28 = sshll.u32 (!%p3913_p3), %s842_s8, 3 }
  0x68   : > { %s3915_s30 = sshll.u32 (!%p3913_p3), %s5135_s29, 7  ;;  %s6457_s25 = sld [smem:[#allocation65_spill]] (!%p3913_p3) }
  0x69   : > { %s844_s23 = scalar_lea.vmem (!%p3913_p3), [#allocation3], %s3914_s28  ;;  %s5483_s24 = scalar_lea.sflag (!%p3913_p3), [#allocation4], %s840_s26 }
  0x6a   : > { %s851_s7 = sshll.u32 (!%p3913_p3), %s844_s23, 4  ;;  %p6458_p12 = scmp.ne.s32.totalorder (!%p3913_p3), %s6437_s0, 0  ;;  %s852_s7 = int_to_ptr.vmem [resolvable:$true] %s851_s7 }
  0x6b   : > { %4356 = dma.hbm_to_vmem [thread:$0]  (!%p5454_p7), %s6456_s10, 128, %s824_s4, [#allocation10]  }
  0x6c   : > { %s4577_s10 = scalar_lea.vmem %s852_s7, 128  ;;  %s5143_s4 = smov [#allocation3]  }
  0x6d   : > { %p4578_p6 = scmp.ne.s32.totalorder %s852_s7, %s4577_s10  ;;  %s4581_s1 = sshll.u32 %s5143_s4, 4  ;;  %s4582_s1 = int_to_ptr.vmem [resolvable:$false] %s4581_s1 }
  0x6e   : > { %s849_s3 = scalar_lea.hbm %s6457_s25, %s3915_s30  ;;  %s4583_s6 = scalar_lea.vmem %s4582_s1, 256 }
  0x6f   : > { %p4579_p13 = pnand %p4578_p6, %p6458_p12  ;;  %p4584_p2 = scmp.lt.s32.totalorder %s852_s7, %s4582_s1 }
  0x70   : > { %p4585_p7 = scmp.lt.s32.totalorder %s4583_s6, %s4577_s10 }
  0x71   : > { %p4580_p8 = pneg %p4579_p13 }
  0x72   : > { %p4586_p1 = por %p4585_p7, %p4584_p2 }
  0x74   : > { %p4587_p0 = pnand %p4586_p1, %p4580_p8 }
  0x76   : > { %4590 = shalt.err (!%p4587_p0)
}
  0x77   : > { %4314 = dma.hbm_to_vmem [thread:$0]  (%p6458_p12), %s849_s3, 128, %s852_s7, %s5483_s24  }
  0x78   : > { %s6459_s8 = sld [smem:[#allocation66_spill]]  ;;  %s862_s23 = scalar_lea.vmem [#allocation6], %s3914_s28 }
  0x79   : > { %s869_s29 = sshll.u32 %s862_s23, 4  ;;  %s5494_s4 = sand.u32 1, %s5107_s9   ;;  %s870_s29 = int_to_ptr.vmem [resolvable:$true] %s869_s29 }
  0x7a   : > { %s5496_s1 = scalar_lea.sflag [#allocation7], %s840_s26  ;;  %s4603_s6 = scalar_lea.vmem %s870_s29, 128 }
  0x7b   : > { %p4604_p5 = scmp.ne.s32.totalorder %s870_s29, %s4603_s6  ;;  %s5144_s10 = smov [#allocation6]  }
  0x7c   : > { %s4607_s2 = sshll.u32 %s5144_s10, 4  ;;  %s4608_s2 = int_to_ptr.vmem [resolvable:$false] %s4607_s2 }
  0x7d   : > { %p4605_p10 = pnand %p4604_p5, %p6458_p12  ;;  %s4609_s3 = scalar_lea.vmem %s4608_s2, 256 }
  0x7e   : > { %s867_s12 = scalar_lea.hbm %s6459_s8, %s3915_s30  ;;  %p4610_p4 = scmp.lt.s32.totalorder %s870_s29, %s4608_s2 }
  0x7f   : > { %p4606_p9 = pneg %p4605_p10  ;;  %p4611_p11 = scmp.lt.s32.totalorder %s4609_s3, %s4603_s6 }
  0x81   : > { %p4612_p3 = por %p4611_p11, %p4610_p4 }
  0x83   : > { %p4613_p6 = pnand %p4612_p3, %p4606_p9 }
  0x85   : > { %4616 = shalt.err (!%p4613_p6)
}
  0x86   : > { %4315 = dma.hbm_to_vmem [thread:$0]  (%p6458_p12), %s867_s12, 128, %s870_s29, %s5496_s1  }
  0x87   : > { %s5504_s7 = sshll.u32 %s5131_s11, 4  ;;  %s901_s26 = scalar_lea.vmem [#allocation11], %s5494_s4 }
  0x88   : > { %s908_s28 = sshll.u32 %s901_s26, 4  ;;  %s6460_s5 = sld [smem:[#allocation72_spill]]  ;;  %s909_s28 = int_to_ptr.vmem [resolvable:$true] %s908_s28 }
  0x89   : > { %s4629_s8 = scalar_lea.vmem %s909_s28, 16  ;;  %p6461_p8 = scmp.ne.s32.totalorder %s6443_s20, 0 }
  0x8a   : > { %p4630_p13 = scmp.ne.s32.totalorder %s909_s28, %s4629_s8  ;;  %s5145_s0 = smov [#allocation11]  }
  0x8b   : > { %s4633_s23 = sshll.u32 %s5145_s0, 4  ;;  %s4634_s23 = int_to_ptr.vmem [resolvable:$false] %s4633_s23 }
  0x8c   : > { %p4631_p2 = pnand %p4630_p13, %p6461_p8  ;;  %s4635_s6 = scalar_lea.vmem %s4634_s23, 32 }
  0x8d   : > { %p4636_p12 = scmp.lt.s32.totalorder %s909_s28, %s4634_s23  ;;  %p4637_p1 = scmp.lt.s32.totalorder %s4635_s6, %s4629_s8 }
  0x8e   : > { %s906_s2 = scalar_lea.hbm %s6460_s5, %s5504_s7  ;;  %p4632_p7 = pneg %p4631_p2 }
  0x8f   : > { %p4638_p0 = por %p4637_p1, %p4636_p12 }
  0x91   : > { %p4639_p5 = pnand %p4638_p0, %p4632_p7 }
  0x93   : > { %4642 = shalt.err (!%p4639_p5)
}
  0x94   : > { %4316 = dma.hbm_to_vmem [thread:$0]  (%p6461_p8), %s906_s2, 16, %s909_s28, %s5483_s24  }
  0x95   : > { %s6462_s10 = sld [smem:[#allocation74_spill]]  ;;  %s926_s26 = scalar_lea.vmem [#allocation12], %s5494_s4 }
  0x96   : > { %s933_s30 = sshll.u32 %s926_s26, 4  ;;  %s6463_s8 = sld [smem:[#allocation76_spill]]  ;;  %s934_s30 = int_to_ptr.vmem [resolvable:$true] %s933_s30 }
  0x97   : > { %s4655_s6 = scalar_lea.vmem %s934_s30, 16  ;;  %s5146_s9 = smov [#allocation12]  }
  0x98   : > { %p4656_p10 = scmp.ne.s32.totalorder %s934_s30, %s4655_s6  ;;  %s4659_s27 = sshll.u32 %s5146_s9, 4  ;;  %s4660_s27 = int_to_ptr.vmem [resolvable:$false] %s4659_s27 }
  0x99   : > { %s4661_s28 = scalar_lea.vmem %s4660_s27, 32  ;;  %p4662_p11 = scmp.lt.s32.totalorder %s934_s30, %s4660_s27 }
  0x9a   : > { %p4657_p9 = pnand %p4656_p10, %p6461_p8  ;;  %p4663_p3 = scmp.lt.s32.totalorder %s4661_s28, %s4655_s6 }
  0x9b   : > { %s931_s3 = scalar_lea.hbm %s6462_s10, %s5504_s7 }
  0x9c   : > { %s956_s0 = scalar_lea.hbm %s6463_s8, %s5504_s7  ;;  %p4658_p4 = pneg %p4657_p9 }
  0x9d   : > { %p4664_p6 = por %p4663_p3, %p4662_p11 }
  0x9f   : > { %p4665_p13 = pnand %p4664_p6, %p4658_p4 }
  0xa1   : > { %4668 = shalt.err (!%p4665_p13)
}
  0xa2   : > { %4317 = dma.hbm_to_vmem [thread:$0]  (%p6461_p8), %s931_s3, 16, %s934_s30, %s5496_s1  }
  0xa3   : > { %s951_s2 = scalar_lea.vmem [#allocation13], %s5494_s4  ;;  %s5532_s12 = sshll.u32 %s5494_s4, 5 }
  0xa4   : > { %s958_s29 = sshll.u32 %s951_s2, 4  ;;  %s5147_s27 = smov [#allocation13]   ;;  %s959_s29 = int_to_ptr.vmem [resolvable:$true] %s958_s29 }
  0xa5   : > { %s4681_s9 = scalar_lea.vmem %s959_s29, 16  ;;  %s4685_s10 = sshll.u32 %s5147_s27, 4  ;;  %s4686_s10 = int_to_ptr.vmem [resolvable:$false] %s4685_s10 }
  0xa6   : > { %p4682_p2 = scmp.ne.s32.totalorder %s959_s29, %s4681_s9  ;;  %s4687_s26 = scalar_lea.vmem %s4686_s10, 32 }
  0xa7   : > { %p4688_p1 = scmp.lt.s32.totalorder %s959_s29, %s4686_s10  ;;  %p4689_p0 = scmp.lt.s32.totalorder %s4687_s26, %s4681_s9 }
  0xa8   : > { %p4683_p7 = pnand %p4682_p2, %p6461_p8 }
  0xa9   : > { %p4690_p5 = por %p4689_p0, %p4688_p1 }
  0xaa   : > { %p4684_p12 = pneg %p4683_p7 }
  0xac   : > { %p4691_p10 = pnand %p4690_p5, %p4684_p12 }
  0xae   : > { %4694 = shalt.err (!%p4691_p10)
}
  0xaf   : > { %4318 = dma.hbm_to_vmem [thread:$0]  (%p6461_p8), %s956_s0, 16, %s959_s29, %s5483_s24  }
  0xb0   : > { %s5545_s25 = sshll.u32 %s5131_s11, 9  ;;  %s969_s5 = scalar_lea.vmem [#allocation14], %s5532_s12 }
  0xb1   : > { %s976_s8 = sshll.u32 %s969_s5, 4  ;;  %s6465_s2 = sld [smem:[#allocation77_spill]]  ;;  %s977_s8 = int_to_ptr.vmem [resolvable:$true] %s976_s8 }
  0xb2   : > { %s4707_s27 = scalar_lea.vmem %s977_s8, 512  ;;  %s5148_s10 = smov [#allocation14]  }
  0xb3   : > { %p4708_p9 = scmp.ne.s32.totalorder %s977_s8, %s4707_s27  ;;  %s4711_s26 = sshll.u32 %s5148_s10, 4  ;;  %s4712_s26 = int_to_ptr.vmem [resolvable:$false] %s4711_s26 }
  0xb4   : > { %s4713_s3 = scalar_lea.vmem %s4712_s26, 1024  ;;  %p4714_p3 = scmp.lt.s32.totalorder %s977_s8, %s4712_s26 }
  0xb5   : > { %p4709_p4 = pnand %p4708_p9, %p6461_p8  ;;  %p4715_p6 = scmp.lt.s32.totalorder %s4713_s3, %s4707_s27 }
  0xb7   : > { %s975_s9 = scalar_lea.hbm %s6465_s2, %s5545_s25  ;;  %p4710_p11 = pneg %p4709_p4 }
  0xb8   : > { %p4716_p13 = por %p4715_p6, %p4714_p3 }
  0xba   : > { %p4717_p2 = pnand %p4716_p13, %p4710_p11 }
  0xbc   : > { %4720 = shalt.err (!%p4717_p2)
}
  0xbd   : > { %s5149_s0 = smov 128   ;;  %s5150_s29 = smov 8  }
  0xbe   : > { %4319 = dma.hbm_to_vmem [thread:$0]  (%p6461_p8), %s975_s9, 512, %s977_s8, %s5496_s1, %s5149_s0, %s5149_s0, %s5150_s29  }
  0xbf   : > { %s6466_s13 = sld [smem:[#allocation78_spill]]  ;;  %s989_s28 = scalar_lea.vmem [#allocation15], %s5494_s4 }
  0xc0   : > { %s996_s2 = sshll.u32 %s989_s28, 4  ;;  %s6467_s14 = sld [smem:[#allocation79_spill]]  ;;  %s997_s2 = int_to_ptr.vmem [resolvable:$true] %s996_s2 }
  0xc1   : > { %s4733_s3 = scalar_lea.vmem %s997_s2, 16  ;;  %s5151_s23 = smov [#allocation15]  }
  0xc2   : > { %p4734_p7 = scmp.ne.s32.totalorder %s997_s2, %s4733_s3  ;;  %s4737_s11 = sshll.u32 %s5151_s23, 4  ;;  %s4738_s11 = int_to_ptr.vmem [resolvable:$false] %s4737_s11 }
  0xc3   : > { %s4739_s8 = scalar_lea.vmem %s4738_s11, 32  ;;  %p4740_p0 = scmp.lt.s32.totalorder %s997_s2, %s4738_s11 }
  0xc4   : > { %p4735_p12 = pnand %p4734_p7, %p6461_p8  ;;  %p4741_p5 = scmp.lt.s32.totalorder %s4739_s8, %s4733_s3 }
  0xc5   : > { %s994_s6 = scalar_lea.hbm %s6466_s13, %s5504_s7 }
  0xc6   : > { %s1013_s26 = scalar_lea.hbm %s6467_s14, %s5545_s25  ;;  %p4736_p1 = pneg %p4735_p12 }
  0xc7   : > { %p4742_p10 = por %p4741_p5, %p4740_p0 }
  0xc9   : > { %p4743_p9 = pnand %p4742_p10, %p4736_p1 }
  0xcb   : > { %4746 = shalt.err (!%p4743_p9)
}
  0xcc   : > { %4320 = dma.hbm_to_vmem [thread:$0]  (%p6461_p8), %s994_s6, 16, %s997_s2, %s5483_s24  }
  0xcd   : > { %s1007_s9 = scalar_lea.vmem [#allocation16], %s5532_s12  ;;  %s6468_s15 = sld [smem:[#allocation80_spill]] }
  0xce   : > { %s1014_s30 = sshll.u32 %s1007_s9, 4  ;;  %s5152_s11 = smov [#allocation16]   ;;  %s1015_s30 = int_to_ptr.vmem [resolvable:$true] %s1014_s30 }
  0xcf   : > { %s4759_s27 = scalar_lea.vmem %s1015_s30, 512  ;;  %s4763_s10 = sshll.u32 %s5152_s11, 4  ;;  %s4764_s10 = int_to_ptr.vmem [resolvable:$false] %s4763_s10 }
  0xd0   : > { %p4760_p4 = scmp.ne.s32.totalorder %s1015_s30, %s4759_s27  ;;  %s4765_s3 = scalar_lea.vmem %s4764_s10, 1024 }
  0xd1   : > { %p4766_p6 = scmp.lt.s32.totalorder %s1015_s30, %s4764_s10  ;;  %p4767_p13 = scmp.lt.s32.totalorder %s4765_s3, %s4759_s27 }
  0xd2   : > { %p4761_p11 = pnand %p4760_p4, %p6461_p8 }
  0xd3   : > { %s1032_s23 = scalar_lea.hbm %s6468_s15, %s5504_s7  ;;  %p4768_p2 = por %p4767_p13, %p4766_p6 }
  0xd4   : > { %p4762_p3 = pneg %p4761_p11 }
  0xd6   : > { %p4769_p7 = pnand %p4768_p2, %p4762_p3 }
  0xd8   : > { %4772 = shalt.err (!%p4769_p7)
}
  0xd9   : > { %4321 = dma.hbm_to_vmem [thread:$0]  (%p6461_p8), %s1013_s26, 512, %s1015_s30, %s5496_s1, %s5149_s0, %s5149_s0, %s5150_s29  }
  0xda   : > { %s1027_s8 = scalar_lea.vmem [#allocation17], %s5494_s4  ;;  %s6469_s16 = sld [smem:[#allocation81_spill]] }
  0xdb   : > { %s1034_s9 = sshll.u32 %s1027_s8, 4  ;;  %s5153_s10 = smov [#allocation17]   ;;  %s1035_s9 = int_to_ptr.vmem [resolvable:$true] %s1034_s9 }
  0xdc   : > { %s4785_s11 = scalar_lea.vmem %s1035_s9, 16  ;;  %s4789_s3 = sshll.u32 %s5153_s10, 4  ;;  %s4790_s3 = int_to_ptr.vmem [resolvable:$false] %s4789_s3 }
  0xdd   : > { %p4786_p12 = scmp.ne.s32.totalorder %s1035_s9, %s4785_s11  ;;  %s4791_s6 = scalar_lea.vmem %s4790_s3, 32 }
  0xde   : > { %p4792_p5 = scmp.lt.s32.totalorder %s1035_s9, %s4790_s3  ;;  %p4793_p10 = scmp.lt.s32.totalorder %s4791_s6, %s4785_s11 }
  0xdf   : > { %p4787_p1 = pnand %p4786_p12, %p6461_p8 }
  0xe0   : > { %s1051_s27 = scalar_lea.hbm %s6469_s16, %s5545_s25  ;;  %p4794_p9 = por %p4793_p10, %p4792_p5 }
  0xe1   : > { %p4788_p0 = pneg %p4787_p1 }
  0xe3   : > { %p4795_p4 = pnand %p4794_p9, %p4788_p0 }
  0xe5   : > { %4798 = shalt.err (!%p4795_p4)
}
  0xe6   : > { %4322 = dma.hbm_to_vmem [thread:$0]  (%p6461_p8), %s1032_s23, 16, %s1035_s9, %s5483_s24  }
  0xe7   : > { %s1045_s2 = scalar_lea.vmem [#allocation18], %s5532_s12  ;;  %s6470_s17 = sld [smem:[#allocation82_spill]] }
  0xe8   : > { %s1052_s8 = sshll.u32 %s1045_s2, 4  ;;  %s5154_s3 = smov [#allocation18]   ;;  %s1053_s8 = int_to_ptr.vmem [resolvable:$true] %s1052_s8 }
  0xe9   : > { %s4811_s10 = scalar_lea.vmem %s1053_s8, 512  ;;  %s4815_s6 = sshll.u32 %s5154_s3, 4  ;;  %s4816_s6 = int_to_ptr.vmem [resolvable:$false] %s4815_s6 }
  0xea   : > { %p4812_p11 = scmp.ne.s32.totalorder %s1053_s8, %s4811_s10  ;;  %s4817_s26 = scalar_lea.vmem %s4816_s6, 1024 }
  0xeb   : > { %p4818_p13 = scmp.lt.s32.totalorder %s1053_s8, %s4816_s6  ;;  %p4819_p2 = scmp.lt.s32.totalorder %s4817_s26, %s4811_s10 }
  0xec   : > { %p4813_p3 = pnand %p4812_p11, %p6461_p8 }
  0xed   : > { %s1070_s11 = scalar_lea.hbm %s6470_s17, %s5504_s7  ;;  %p4820_p7 = por %p4819_p2, %p4818_p13 }
  0xee   : > { %p4814_p6 = pneg %p4813_p3 }
  0xf0   : > { %p4821_p12 = pnand %p4820_p7, %p4814_p6 }
  0xf2   : > { %4824 = shalt.err (!%p4821_p12)
}
  0xf3   : > { %4323 = dma.hbm_to_vmem [thread:$0]  (%p6461_p8), %s1051_s27, 512, %s1053_s8, %s5496_s1, %s5149_s0, %s5149_s0, %s5150_s29  }
  0xf4   : > { %s1065_s30 = scalar_lea.vmem [#allocation19], %s5494_s4  ;;  %s6471_s18 = sld [smem:[#allocation83_spill]] }
  0xf5   : > { %s1072_s2 = sshll.u32 %s1065_s30, 4  ;;  %s5155_s6 = smov [#allocation19]   ;;  %s1073_s2 = int_to_ptr.vmem [resolvable:$true] %s1072_s2 }
  0xf6   : > { %s4837_s3 = scalar_lea.vmem %s1073_s2, 16  ;;  %s4841_s26 = sshll.u32 %s5155_s6, 4  ;;  %s4842_s26 = int_to_ptr.vmem [resolvable:$false] %s4841_s26 }
  0xf7   : > { %p4838_p1 = scmp.ne.s32.totalorder %s1073_s2, %s4837_s3  ;;  %s4843_s23 = scalar_lea.vmem %s4842_s26, 32 }
  0xf8   : > { %p4844_p10 = scmp.lt.s32.totalorder %s1073_s2, %s4842_s26  ;;  %p4845_p9 = scmp.lt.s32.totalorder %s4843_s23, %s4837_s3 }
  0xf9   : > { %p4839_p0 = pnand %p4838_p1, %p6461_p8 }
  0xfa   : > { %s1089_s10 = scalar_lea.hbm %s6471_s18, %s5545_s25  ;;  %p4846_p4 = por %p4845_p9, %p4844_p10 }
  0xfb   : > { %p4840_p5 = pneg %p4839_p0 }
  0xfd   : > { %p4847_p11 = pnand %p4846_p4, %p4840_p5 }
  0xff   : > { %4850 = shalt.err (!%p4847_p11)
}
 0x100   : > { %4324 = dma.hbm_to_vmem [thread:$0]  (%p6461_p8), %s1070_s11, 16, %s1073_s2, %s5483_s24  }
 0x101   : > { %s1083_s9 = scalar_lea.vmem [#allocation20], %s5532_s12  ;;  %s6472_s19 = sld [smem:[#allocation84_spill]] }
 0x102   : > { %s1090_s30 = sshll.u32 %s1083_s9, 4  ;;  %s5156_s26 = smov [#allocation20]   ;;  %s1091_s30 = int_to_ptr.vmem [resolvable:$true] %s1090_s30 }
 0x103   : > { %s4863_s6 = scalar_lea.vmem %s1091_s30, 512  ;;  %s4867_s23 = sshll.u32 %s5156_s26, 4  ;;  %s4868_s23 = int_to_ptr.vmem [resolvable:$false] %s4867_s23 }
 0x104   : > { %p4864_p3 = scmp.ne.s32.totalorder %s1091_s30, %s4863_s6  ;;  %s4869_s27 = scalar_lea.vmem %s4868_s23, 1024 }
 0x105   : > { %p4870_p2 = scmp.lt.s32.totalorder %s1091_s30, %s4868_s23  ;;  %p4871_p7 = scmp.lt.s32.totalorder %s4869_s27, %s4863_s6 }
 0x106   : > { %p4865_p6 = pnand %p4864_p3, %p6461_p8 }
 0x107   : > { %s1108_s3 = scalar_lea.hbm %s6472_s19, %s5504_s7  ;;  %p4872_p12 = por %p4871_p7, %p4870_p2 }
 0x108   : > { %p4866_p13 = pneg %p4865_p6 }
 0x10a   : > { %p4873_p1 = pnand %p4872_p12, %p4866_p13 }
 0x10c   : > { %4876 = shalt.err (!%p4873_p1)
}
 0x10d   : > { %4325 = dma.hbm_to_vmem [thread:$0]  (%p6461_p8), %s1089_s10, 512, %s1091_s30, %s5496_s1, %s5149_s0, %s5149_s0, %s5150_s29  }
 0x10e   : > { %s1103_s8 = scalar_lea.vmem [#allocation21], %s5494_s4  ;;  %s6473_s21 = sld [smem:[#allocation86_spill]] }
 0x10f   : > { %s1110_s9 = sshll.u32 %s1103_s8, 4  ;;  %s5157_s23 = smov [#allocation21]   ;;  %s1111_s9 = int_to_ptr.vmem [resolvable:$true] %s1110_s9 }
 0x110   : > { %s4889_s26 = scalar_lea.vmem %s1111_s9, 16  ;;  %s4893_s27 = sshll.u32 %s5157_s23, 4  ;;  %s4894_s27 = int_to_ptr.vmem [resolvable:$false] %s4893_s27 }
 0x111   : > { %p4890_p0 = scmp.ne.s32.totalorder %s1111_s9, %s4889_s26  ;;  %s4895_s11 = scalar_lea.vmem %s4894_s27, 32 }
 0x112   : > { %p4896_p9 = scmp.lt.s32.totalorder %s1111_s9, %s4894_s27  ;;  %p4897_p4 = scmp.lt.s32.totalorder %s4895_s11, %s4889_s26 }
 0x113   : > { %p4891_p5 = pnand %p4890_p0, %p6461_p8 }
 0x114   : > { %s1133_s6 = scalar_lea.hbm %s6473_s21, %s5504_s7  ;;  %p4898_p11 = por %p4897_p4, %p4896_p9 }
 0x115   : > { %p4892_p10 = pneg %p4891_p5 }
 0x117   : > { %p4899_p3 = pnand %p4898_p11, %p4892_p10 }
 0x119   : > { %4902 = shalt.err (!%p4899_p3)
}
 0x11a   : > { %4326 = dma.hbm_to_vmem [thread:$0]  (%p6461_p8), %s1108_s3, 16, %s1111_s9, %s5483_s24  }
 0x11b   : > { %s1128_s2 = scalar_lea.vmem [#allocation22], %s5494_s4  ;;  %s6474_s22 = sld [smem:[#allocation87_spill]] }
 0x11c   : > { %s1135_s8 = sshll.u32 %s1128_s2, 4  ;;  %s5158_s27 = smov [#allocation22]   ;;  %s1136_s8 = int_to_ptr.vmem [resolvable:$true] %s1135_s8 }
 0x11d   : > { %s4915_s23 = scalar_lea.vmem %s1136_s8, 16  ;;  %s4919_s11 = sshll.u32 %s5158_s27, 4  ;;  %s4920_s11 = int_to_ptr.vmem [resolvable:$false] %s4919_s11 }
 0x11e   : > { %p4916_p6 = scmp.ne.s32.totalorder %s1136_s8, %s4915_s23  ;;  %s4921_s10 = scalar_lea.vmem %s4920_s11, 32 }
 0x11f   : > { %p4922_p7 = scmp.lt.s32.totalorder %s1136_s8, %s4920_s11  ;;  %p4923_p12 = scmp.lt.s32.totalorder %s4921_s10, %s4915_s23 }
 0x120   : > { %p4917_p13 = pnand %p4916_p6, %p6461_p8 }
 0x121   : > { %s1152_s26 = scalar_lea.hbm %s6474_s22, %s5545_s25  ;;  %p4924_p1 = por %p4923_p12, %p4922_p7 }
 0x122   : > { %p4918_p2 = pneg %p4917_p13 }
 0x124   : > { %p4925_p0 = pnand %p4924_p1, %p4918_p2 }
 0x126   : > { %4928 = shalt.err (!%p4925_p0)
}
 0x127   : > { %4327 = dma.hbm_to_vmem [thread:$0]  (%p6461_p8), %s1133_s6, 16, %s1136_s8, %s5496_s1  }
 0x128   : > { %s1146_s9 = scalar_lea.vmem [#allocation23], %s5532_s12  ;;  %s5159_s5 = smov [#allocation23]  }
 0x129   : > { %s1153_s30 = sshll.u32 %s1146_s9, 4  ;;  %s4945_s28 = sshll.u32 %s5159_s5, 4  ;;  %s1154_s30 = int_to_ptr.vmem [resolvable:$true] %s1153_s30  ;;  %s4946_s28 = int_to_ptr.vmem [resolvable:$false] %s4945_s28 }
 0x12a   : > { %s4941_s2 = scalar_lea.vmem %s1154_s30, 512  ;;  %s4947_s23 = scalar_lea.vmem %s4946_s28, 1024 }
 0x12b   : > { %p4942_p5 = scmp.ne.s32.totalorder %s1154_s30, %s4941_s2  ;;  %p4948_p4 = scmp.lt.s32.totalorder %s1154_s30, %s4946_s28 }
 0x12c   : > { %p4949_p11 = scmp.lt.s32.totalorder %s4947_s23, %s4941_s2 }
 0x12d   : > { %p4943_p10 = pnand %p4942_p5, %p6461_p8 }
 0x12e   : > { %p4950_p3 = por %p4949_p11, %p4948_p4 }
 0x12f   : > { %p4944_p9 = pneg %p4943_p10 }
 0x131   : > { %p4951_p6 = pnand %p4950_p3, %p4944_p9 }
 0x133   : > { %4954 = shalt.err (!%p4951_p6)
}
 0x134   : > { %4328 = dma.hbm_to_vmem [thread:$0]  (%p6461_p8), %s1152_s26, 512, %s1154_s30, %s5483_s24, %s5149_s0, %s5149_s0, %s5150_s29  }
 0x135 PF: > { %s6475_s12 = sld [smem:[#allocation62_spill]] }
 0x13b   : > { %p6476_p13 = scmp.ne.s32.totalorder %s6475_s12, 0 }
 0x13d   : > { %1185 = sbr.rel (%p6476_p13) target bundleno = 7037 (0x1b7d), region = 132 }
 0x142   : > { %s6477_s6 = sld [smem:[#allocation53_spill]] }
 0x143   : > { %s6478_s8 = sld [smem:[#allocation46_spill]] }
 0x144   : > { %s6479_s27 = sld [smem:[#allocation56_spill]] }
 0x148   : > { %s1187_s11 = sand.u32 1, %s6477_s6  }
 0x149   : > { %s6393_s20 = sand.u32 1, %s6478_s8   ;;  %s5710_s4 = scalar_lea.sflag [#allocation4], %s1187_s11 }
 0x14a   : > { %s5708_s10 = sshll.u32 %s6393_s20, 3  ;;  %p6480_p2 = scmp.ne.s32.totalorder %s6479_s27, 0 }
 0x14c   : > { %5026 = dma.done.wait (%p6480_p2), %s5710_s4, 128  }
 0x14d   : > { %5028 = vsyncadd (%p6480_p2), %s5710_s4, 4294967168  ;;  %s5719_s24 = scalar_lea.sflag [#allocation7], %s1187_s11 }
 0x14e   : > { %5030 = dma.done.wait (%p6480_p2), %s5719_s24, 128  }
 0x14f   : > { %5032 = vsyncadd (%p6480_p2), %s5719_s24, 4294967168  ;;  %p6481_p8 = scmp.eq.s32.totalorder %s6477_s6, 0 }
 0x151   : > { %5034 = dma.done.wait (%p6481_p8), [#allocation7], 128   ;;  %p6482_p7 = pmov %p6481_p8 }
 0x153   : > { %5036 = vsyncadd (%p6482_p7), [#allocation7], 4294967168  ;;  %p6483_p12 = pmov %p6482_p7 }
 0x154   : > { %p6484_p1 = pmov %p6482_p7 }
 0x155   : > { %5038 = dma.done.wait (%p6483_p12), [#allocation10], 128  }
 0x156   : > { %5040 = vsyncadd (%p6484_p1), [#allocation10], 4294967168  ;;  %s6485_s0 = sld [smem:[#allocation43_spill]] }
 0x157   : > { %s6486_s29 = sld [smem:[#allocation59_spill]] }
 0x15c   : > { %s5737_s26 = sand.u32 1, %s6485_s0  }
 0x15d   : > { %p6487_p0 = scmp.ne.s32.totalorder %s6486_s29, 0 }
 0x15f   : > { %5042 = dma.done.wait (%p6487_p0), %s5710_s4, 16  }
 0x160   : > { %5044 = vsyncadd (%p6487_p0), %s5710_s4, 4294967280 }
 0x161   : > { %5046 = dma.done.wait (%p6487_p0), %s5719_s24, 16  }
 0x162   : > { %5048 = vsyncadd (%p6487_p0), %s5719_s24, 4294967280 }
 0x163   : > { %5050 = dma.done.wait (%p6487_p0), %s5710_s4, 16  }
 0x164   : > { %5052 = vsyncadd (%p6487_p0), %s5710_s4, 4294967280  ;;  %s3946_s5 = sshll.u32 %s5737_s26, 5 }
 0x165   : > { %s5761_s28 = scalar_lea.vmem [#allocation14], %s3946_s5 }
 0x166   : > { %5054 = dma.done.wait (%p6487_p0), %s5719_s24, 512  }
 0x167   : > { %5056 = vsyncadd (%p6487_p0), %s5719_s24, 4294966784 }
 0x168   : > { %5058 = dma.done.wait (%p6487_p0), %s5710_s4, 16  }
 0x169   : > { %5060 = vsyncadd (%p6487_p0), %s5710_s4, 4294967280  ;;  %s5776_s1 = scalar_lea.vmem [#allocation16], %s3946_s5 }
 0x16a   : > { %5062 = dma.done.wait (%p6487_p0), %s5719_s24, 512  }
 0x16b   : > { %5064 = vsyncadd (%p6487_p0), %s5719_s24, 4294966784 }
 0x16c   : > { %5066 = dma.done.wait (%p6487_p0), %s5710_s4, 16  }
 0x16d   : > { %5068 = vsyncadd (%p6487_p0), %s5710_s4, 4294967280  ;;  %s5791_s12 = scalar_lea.vmem [#allocation18], %s3946_s5 }
 0x16e   : > { %5070 = dma.done.wait (%p6487_p0), %s5719_s24, 512  }
 0x16f   : > { %5072 = vsyncadd (%p6487_p0), %s5719_s24, 4294966784 }
 0x170   : > { %5074 = dma.done.wait (%p6487_p0), %s5710_s4, 16  }
 0x171   : > { %5076 = vsyncadd (%p6487_p0), %s5710_s4, 4294967280  ;;  %s5806_s8 = scalar_lea.vmem [#allocation20], %s3946_s5 }
 0x172   : > { %6488 = sst [smem:[#allocation63_spill]] %s5806_s8 }
 0x173   : > { %5078 = dma.done.wait (%p6487_p0), %s5719_s24, 512  }
 0x174   : > { %5080 = vsyncadd (%p6487_p0), %s5719_s24, 4294966784 }
 0x175   : > { %5082 = dma.done.wait (%p6487_p0), %s5710_s4, 16  }
 0x176   : > { %5084 = vsyncadd (%p6487_p0), %s5710_s4, 4294967280 }
 0x177   : > { %5086 = dma.done.wait (%p6487_p0), %s5719_s24, 16  }
 0x178   : > { %5088 = vsyncadd (%p6487_p0), %s5719_s24, 4294967280  ;;  %s5828_s0 = scalar_lea.vmem [#allocation23], %s3946_s5 }
 0x179   : > { %6489 = sst [smem:[#allocation64_spill]] %s5828_s0 }
 0x17a   : > { %5090 = dma.done.wait (%p6487_p0), %s5710_s4, 512  }
 0x17b   : > { %5092 = vsyncadd (%p6487_p0), %s5710_s4, 4294966784  ;;  %s6490_s20 = sld [smem:[#allocation48_spill]] }
 0x17c   : > { %s6491_s6 = sld [smem:[#allocation69_spill]] }
 0x17d   : > { %s6492_s23 = sld [smem:[#allocation70_spill]] }
 0x17e   : > { %s6493_s3 = sld [smem:[#allocation71_spill]] }
 0x17f   : > { %s6494_s16 = sld [smem:[#allocation73_spill]] }
 0x180   : > { %s6495_s7 = sld [smem:[#allocation75_spill]] }
 0x181   : > { %p1491_p5 = scmp.lt.s32.totalorder %s6490_s20, 1  ;;  %s6496_s29 = sld [smem:[#allocation85_spill]] }
 0x182   : > { %s6497_s9 = sld [smem:[#allocation88_spill]]  ;;  %p3964_p10 = scmp.ne.s32.totalorder %s6490_s20, 0 }
 0x183   : > { %s5838_s11 = scalar_select %p1491_p5, %s6490_s20, 1 }
 0x184   : > { %s6498_s14 = sld [smem:[#allocation89_spill]]  ;;  %s6500_s21 = scalar_lea.vmem (!%p3964_p10), [#allocation3], %s5708_s10 }
 0x185   : > { %s3952_s24 = sshll.u32 %s5838_s11, 2  ;;  %s4019_s5 = sshll.u32 %s5838_s11, 5 }
 0x186   : > { %s5845_s25 = scalar_lea.vmem %s6491_s6, %s3952_s24  ;;  %s5850_s2 = scalar_lea.vmem %s6492_s23, %s3952_s24 }
 0x187   : > { %s5855_s13 = scalar_lea.vmem %s6493_s3, %s4019_s5  ;;  %s5860_s17 = scalar_lea.vmem %s6494_s16, %s4019_s5 }
 0x188   : > { %s5865_s6 = scalar_lea.vmem %s6495_s7, %s4019_s5  ;;  %s5870_s23 = scalar_lea.vmem %s6496_s29, %s4019_s5 }
 0x189   : > { %s1521_s3 = scalar_lea.vmem %s6497_s9, %s5838_s11  ;;  %s4023_s30 = sshll.u32 %s5838_s11, 6 }
 0x18a   : > { %s5880_s15 = scalar_lea.vmem %s6498_s14, %s4023_s30  ;;  %s6499_s18 = sld [smem:[#allocation90_spill]] }
 0x18b   : > { %s1490_s7 = scalar_lea.vmem [#allocation24], %s5708_s10 }
 0x18c   : > { %1534 = sbr.rel (%p3964_p10) target bundleno = 403 (0x193), region = 204 }
 0x190   : > { %s1529_s19 = scalar_lea.vmem %s6499_s18, %s5838_s11 }
 0x191   : > { %v1535_v0 = vld [vmem:[%s6500_s21] sm:$0xff]  ;;  %vm1536_vm0 = vcmask 261120  }
 0x192   : > { %1537 = vst.msk [vmem:[#allocation2] sm:$0xff] %vm1536_vm0, %v1535_v0 }
 0x193 PF: > { %vm1544_vm1 = vcmask 261120   ;;  %v1579_v8 = vld [vmem:[%s5855_s13 + $0x10] sm:$0xff]  ;;  %v1580_v9 = vld [vmem:[%s5855_s13 + $0x18] sm:$0xff]  ;;  %v5160_v11 = vmov 0.0   ;;  %v1577_v14 = vld [vmem:[%s5855_s13] sm:$0xff]  ;;  %vm5161_vm2 = vmmov 0   ;;  %v1556_v26 = vlaneseq }
 0x194   : > { %v1636_v10 = vld [vmem:[%s5860_s17 + $0x10] sm:$0xff]  ;;  %4098 = vmatprep.subr.bf16.mxu0 %v5160_v11  ;;  %4106 = vmatprep.subr.bf16.mxu1 %v5160_v11  ;;  %v1582_v12 = vpack.c.bf16 %v1580_v9, %v1579_v8  ;;  %v1637_v13 = vld [vmem:[%s5860_s17 + $0x18] sm:$0xff]  ;;  %v1578_v15 = vld [vmem:[%s5855_s13 + $0x8] sm:$0xff]  ;;  %s6501_s13 = scalar_lea.vmem [#allocation11], %s5737_s26  ;;  %vm1749_vm5 = vcmask 64512   ;;  %s5162_s22 = smov 120  }
 0x195   : > { %v1639_v16 = vpack.c.bf16 %v1637_v13, %v1636_v10  ;;  %v1634_v17 = vld [vmem:[%s5860_s17] sm:$0xff]  ;;  %v1635_v18 = vld [vmem:[%s5860_s17 + $0x8] sm:$0xff]  ;;  %4102 = vmatprep.mubr.msk.bf16.mxu0 %vm5161_vm2, %v5160_v11  ;;  %4110 = vmatprep.mubr.msk.bf16.mxu1 %vm5161_vm2, %v5160_v11  ;;  %v1581_v19 = vpack.c.bf16 %v1578_v15, %v1577_v14  ;;  %v5914_v30 = vshrl.u32 %v1556_v26, 7  ;;  %v1689_v39 = vld [vmem:[%s5865_s6 + $0x10] sm:$0xff]  ;;  %s6502_s17 = scalar_lea.vmem [#allocation12], %s5737_s26  ;;  %s6503_s20 = scalar_lea.vmem [#allocation13], %s5737_s26 }
 0x196   : > { %4099 = vmatpush3.bf16.msra.mxu0 %v1582_v12  ;;  %v1638_v20 = vpack.c.bf16 %v1635_v18, %v1634_v17  ;;  %v5918_v32 = vld [vmem:[%s5845_s25] sm:$0x7]  ;;  %v1690_v40 = vld [vmem:[%s5865_s6 + $0x18] sm:$0xff]  ;;  %v1688_v45 = vld [vmem:[%s5865_s6 + $0x8] sm:$0xff]  ;;  %vm1811_vm6 = vcmask 1043456   ;;  %s5163_s8 = smov 112  }
 0x197   : > { %4107 = vmatpush3.bf16.msra.mxu1 %v1639_v16  ;;  %4100 = vmatprep.subr.bf16.mxu0 %v5160_v11  ;;  %v1558_v31 = vsub.s32 0, %v5914_v30  ;;  %v5922_v34 = vld [vmem:[%s5850_s2] sm:$0x7]  ;;  %v1692_v42 = vpack.c.bf16 %v1690_v40, %v1689_v39  ;;  %v5971_v12 = vld [vmem:[#allocation8] sm:$0xff]  ;;  %s5164_s0 = smov 104   ;;  %s6505_s5 = scalar_lea.vmem [#allocation6], %s5708_s10 }
 0x198   : > { %4108 = vmatprep.subr.bf16.mxu1 %v5160_v11  ;;  %v1687_v44 = vld [vmem:[%s5865_s6] sm:$0xff]  ;;  %s6508_s6 = sld [smem:[#allocation63_spill]]  ;;  %s6509_s27 = scalar_lea.vmem [#allocation21], %s5737_s26  ;;  %vm3346_vm11 = vcmask 523264  }
 0x199   : > { %v5890_v1 = vld [vmem:[#allocation2] sm:$0xff]  ;;  %v1559_v33 = vrot.slane %v5918_v32, %v1558_v31  ;;  %v1574_v36 = vrot.slane %v5922_v34, %v1558_v31  ;;  %v1691_v46 = vpack.c.bf16 %v1688_v45, %v1687_v44  ;;  %s6510_s29 = scalar_lea.vmem [#allocation22], %s5737_s26 }
 0x19a   : > { %v1545_v2 = vsel %vm1544_vm1, %v5890_v1, 0.0  ;;  %4101 = vmatpush3.bf16.msra.mxu0 %v1581_v19  ;;  %v3965_v47 = vld [vmem:[%s6501_s13] ss:$0 sm:$0xff] }
 0x19b   : > { %1546 = vadd.xlane.f32.xlu0 %v1545_v2  ;;  %4109 = vmatpush3.bf16.msra.mxu1 %v1638_v20  ;;  %v3967_v48 = vld [vmem:[%s6502_s17] ss:$0 sm:$0xff] }
 0x19c   : > { %4114 = vmatprep.subr.bf16.mxu0 %v5160_v11  ;;  %4122 = vmatprep.subr.bf16.mxu1 %v5160_v11  ;;  %v3969_v62 = vld [vmem:[%s6503_s20] ss:$0 sm:$0xff] }
 0x224   : > { %v1547_v3 = vpop.xlane.xlu0 %1546 }
 0x225   : > { %v1549_v4 = vmul.f32 0.03125, %v1547_v3 }
 0x227   : > { %v1550_v5 = vsub.f32 %v5890_v1, %v1549_v4 }
 0x229   : > { %v1551_v6 = vmul.f32 %v1550_v5, %v1550_v5  ;;  %v1560_v35 = vmul.f32 %v1559_v33, %v1550_v5 }
 0x22b   : > { %v1552_v7 = vsel %vm1544_vm1, %v1551_v6, 0.0 }
 0x22c   : > { %1553 = vadd.xlane.f32.xlu0 %v1552_v7 }
 0x2b5   : > { %v1554_v21 = vpop.xlane.xlu0 %1553 }
 0x2b6   : > { %v1555_v22 = vmul.f32 0.032258064, %v1554_v21 }
 0x2b8   : > { %4463 = vrsqrt.f32 %v1555_v22  ;;  %vm1563_vm3 = vcmp.eq.f32.partialorder %v1555_v22, inf  ;;  %v1566_v25 = vand.u32 2147483648, %v1555_v22  ;;  %vm1565_vm4 = vcmp.eq.f32.partialorder %v1555_v22, 0.0 }
 0x2c5   : > { %v4464_v23 = vpop.eup %4463 }
 0x2c6   : > { %v1562_v24 = vmul.f32 %v4464_v23, %v1555_v22 }
 0x2c8   : > { %v1564_v27 = vsel %vm1563_vm3, %v1555_v22, %v1562_v24 }
 0x2c9   : > { %v1567_v28 = vsel %vm1565_vm4, %v1566_v25, %v1564_v27 }
 0x2ca   : > { %v1568_v29 = vadd.f32 1e-06, %v1567_v28 }
 0x2cc   : > { %4465 = vrcp.f32 %v1568_v29 }
 0x2d9   : > { %v4466_v37 = vpop.eup %4465 }
 0x2da   : > { %v1570_v38 = vmul.f32 %v4466_v37, %v1560_v35 }
 0x2dc   : > { %v1575_v41 = vadd.f32 %v1574_v36, %v1570_v38 }
 0x2de   : > { %v1576_v43 = vpack.c.bf16 %v1575_v41, %v1575_v41 }
 0x2e0   : > { %4103 = vmatmul.mubr.msk.bf16.vlgmr.msra.gmra.mxu0 %vm1544_vm1, %v1576_v43  ;;  %4111 = vmatmul.mubr.msk.bf16.vlgmr.msra.gmra.mxu1 %vm1544_vm1, %v1576_v43 }
 0x2e1   : > { %4115 = vmatpush3.bf16.msra.mxu0 %v1692_v42  ;;  %4118 = vmatprep.mubr.msk.bf16.mxu0 %vm5161_vm2, %v5160_v11  ;;  %v1740_v42 = vld [vmem:[%s5761_s28] sm:$0xff] }
 0x2e2   : > { %4116 = vmatprep.subr.bf16.mxu0 %v5160_v11  ;;  %4124 = vmatprep.mubr.msk.bf16.mxu1 %vm5161_vm2, %v5160_v11 }
 0x2e5   : > { %4117 = vmatpush3.bf16.msra.mxu0 %v1691_v46 }
 0x2e6   : > { %4128 = vmatprep.subr.bf16.mxu0 %v5160_v11 }
 0x2e8   : > { %4119 = vmatmul.mubr.msk.bf16.vlgmr.msra.gmra.mxu0 %vm1544_vm1, %v1576_v43  ;;  %v1741_v43 = vld [vmem:[%s5761_s28 + $0x8] sm:$0xff] }
 0x2e9   : > { %4130 = vmatprep.mubr.msk.bf16.mxu0 %vm5161_vm2, %v5160_v11  ;;  %v1744_v44 = vpack.c.bf16 %v1741_v43, %v1740_v42 }
 0x2eb   : > { %v1971_v45 = vrot.slane %v1744_v44, 4 }
 0x2ed   : > { %v1976_v46 = vsel %vm1811_vm6, %v1971_v45, 0 }
 0x3a0   : > { %v1627_v49 = vpop.f32.mrf.mxu0  ;;  %v1681_v50 = vpop.f32.mrf.mxu1 }
 0x3a1   : > { %v1628_v51 = vadd.f32 %v3965_v47, %v1627_v49  ;;  %v1682_v52 = vadd.f32 %v3967_v48, %v1681_v50 }
 0x3a2   : > { %v4104_v53 = vpop.f32.mrf.mxu0  ;;  %v4112_v54 = vpop.f32.mrf.mxu1 }
 0x3a3   : > { %v1633_v55 = vmul.f32 0.35355338, %v1628_v51  ;;  %v5944_v56 = vpack.c.bf16 %v1682_v52, %v1682_v52  ;;  %v2022_v53 = vsel %vm1811_vm6, %v1744_v44, 0 }
 0x3a4   : > { %v1630_v57 = vpop.f32.mrf.mxu0  ;;  %v1684_v58 = vpop.f32.mrf.mxu1 }
 0x3a5   : > { %1860 = vrot.lane.b32.xlu1 %v5944_v56, %s5162_s22  ;;  %v1754_v59 = vsel %vm1749_vm5, %v5944_v56, 0  ;;  %v5952_v63 = vpack.c.bf16 %v1633_v55, %v1633_v55 }
 0x3a6   : > { %v4105_v60 = vpop.f32.mrf.mxu0  ;;  %v4113_v61 = vpop.f32.mrf.mxu1  ;;  %4123 = vmatpush3.bf16.xpose.msra.mxu1 %v1754_v59 }
 0x3a7   : > { %4134 = vmatprep.subr.bf16.mxu1 %v5160_v11 }
 0x3a8   : > { %v1734_v0 = vpop.f32.mrf.mxu0 }
 0x3a9   : > { %v1735_v2 = vadd.f32 %v3969_v62, %v1734_v0  ;;  %1857 = vrot.lane.b32.xlu1 %v5952_v63, %s5162_s22 }
 0x3aa   : > { %v4120_v3 = vpop.f32.mrf.mxu0 }
 0x3ab   : > { %v5957_v4 = vpack.c.bf16 %v1735_v2, %v1735_v2 }
 0x3ac   : > { %v1737_v5 = vpop.f32.mrf.mxu0 }
 0x3ad   : > { %4125 = vmatmul.mubr.msk.bf16.vlgmr.msra.gmra.mxu1 %vm1749_vm5, %v5952_v63  ;;  %v1813_v6 = vsel %vm1811_vm6, %v5957_v4, 0 }
 0x3ae   : > { %v4121_v7 = vpop.f32.mrf.mxu0  ;;  %4129 = vmatpush3.bf16.msra.mxu0 %v1813_v6  ;;  %4136 = vmatprep.mubr.msk.bf16.mxu1 %vm5161_vm2, %v5160_v11 }
 0x3af   : > { %4140 = vmatprep.subr.bf16.mxu0 %v5160_v11 }
 0x417   : > { %v1861_v8 = vpop.permute.xlu1 %1860 }
 0x418   : > { %v1866_v9 = vsel %vm1749_vm5, %v1861_v8, 0 }
 0x419   : > { %4135 = vmatpush3.bf16.xpose.msra.mxu1 %v1866_v9 }
 0x41a   : > { %4146 = vmatprep.subr.bf16.mxu1 %v5160_v11 }
 0x41b   : > { %v1858_v10 = vpop.permute.xlu1 %1857 }
 0x420   : > { %4137 = vmatmul.mubr.msk.bf16.vlgmr.msra.gmra.mxu1 %vm1749_vm5, %v1858_v10 }
 0x421   : > { %4148 = vmatprep.mubr.msk.bf16.mxu1 %vm5161_vm2, %v5160_v11  ;;  %4147 = vmatpush3.bf16.msra.mxu1 %v1976_v46 }
 0x422   : > { %4158 = vmatprep.subr.bf16.mxu1 %v5160_v11 }
 0x46d   : > { %v1790_v13 = vpop.f32.mrf.mxu1 }
 0x46e   : > { %v1791_v14 = vadd.f32 %v1790_v13, %v5971_v12 }
 0x46f   : > { %v4126_v15 = vpop.f32.mrf.mxu1 }
 0x470   : > { %v1796_v16 = vsel %vm1749_vm5, %v1791_v14, -inf }
 0x471   : > { %1797 = vmax.xlane.f32.xlu0 %v1796_v16  ;;  %v1793_v17 = vpop.f32.mrf.mxu1 }
 0x473   : > { %v4127_v18 = vpop.f32.mrf.mxu1 }
 0x4e0   : > { %v1902_v19 = vpop.f32.mrf.mxu1 }
 0x4e1   : > { %v1903_v20 = vadd.f32 %v1902_v19, %v5971_v12 }
 0x4e2   : > { %v4138_v21 = vpop.f32.mrf.mxu1 }
 0x4e3   : > { %v1908_v22 = vsel %vm1749_vm5, %v1903_v20, -inf }
 0x4e4   : > { %1909 = vmax.xlane.f32.xlu1 %v1908_v22  ;;  %v1905_v23 = vpop.f32.mrf.mxu1 }
 0x4e6   : > { %v4139_v24 = vpop.f32.mrf.mxu1 }
 0x4f5   : > { %2064 = vrot.lane.b32.xlu1 %v5952_v63, %s5163_s8 }
 0x4fa   : > { %v1798_v25 = vpop.xlane.xlu0 %1797 }
 0x4fb   : > { %v1799_v26 = vsub.f32 %v1791_v14, %v1798_v25 }
 0x4fd   : > { %v1800_v27 = vmul.f32 1.442695, %v1799_v26 }
 0x4ff   : > { %4467 = vpow2.f32 %v1800_v27 }
 0x50c   : > { %v4468_v28 = vpop.eup %4467 }
 0x50d   : > { %v1802_v29 = vsel %vm1749_vm5, %v4468_v28, 0.0 }
 0x50e   : > { %1803 = vadd.xlane.f32.xlu0 %v1802_v29 }
 0x56d   : > { %v1910_v31 = vpop.xlane.xlu1 %1909 }
 0x56e   : > { %v1911_v33 = vsub.f32 %v1903_v20, %v1910_v31 }
 0x570   : > { %v1912_v35 = vmul.f32 1.442695, %v1911_v33 }
 0x571   : > { %v2065_v6 = vpop.permute.xlu1 %2064 }
 0x572   : > { %4469 = vpow2.f32 %v1912_v35 }
 0x57f   : > { %v4470_v36 = vpop.eup %4469 }
 0x580   : > { %v1914_v37 = vsel %vm1749_vm5, %v4470_v36, 0.0 }
 0x581   : > { %1915 = vadd.xlane.f32.xlu0 %v1914_v37 }
 0x597   : > { %v1804_v38 = vpop.xlane.xlu0 %1803  ;;  %1921 = vrot.lane.b32.xlu0 %v5957_v4, %s5162_s22 }
 0x598   : > { %4471 = vrcp.f32 %v1804_v38 }
 0x59b   : > { %2066 = vrot.lane.b32.xlu0 %v5944_v56, %s5163_s8 }
 0x5a5   : > { %v4472_v39 = vpop.eup %4471 }
 0x5a6   : > { %v1806_v40 = vmul.f32 %v4472_v39, %v4468_v28  ;;  %v1743_v39 = vld [vmem:[%s5761_s28 + $0x18] sm:$0xff] }
 0x5a8   : > { %v1807_v41 = vpack.c.bf16 %v1806_v40, %v1806_v40 }
 0x5aa   : > { %4131 = vmatmul.mubr.msk.bf16.vlgmr.msra.gmra.mxu0 %vm1749_vm5, %v1807_v41 }
 0x5ab   : > { %4142 = vmatprep.mubr.msk.bf16.mxu0 %vm5161_vm2, %v5160_v11 }
 0x60a   : > { %v1916_v47 = vpop.xlane.xlu0 %1915 }
 0x60b   : > { %4473 = vrcp.f32 %v1916_v47 }
 0x60e   : > { %v1922_v48 = vpop.permute.xlu0 %1921 }
 0x60f   : > { %v1927_v49 = vsel %vm1811_vm6, %v1922_v48, 0 }
 0x610   : > { %4141 = vmatpush3.bf16.msra.mxu0 %v1927_v49 }
 0x611   : > { %4152 = vmatprep.subr.bf16.mxu0 %v5160_v11 }
 0x612   : > { %v2067_v60 = vpop.permute.xlu0 %2066 }
 0x613   : > { %v2072_v2 = vsel %vm1749_vm5, %v2067_v60, 0 }
 0x618   : > { %v4474_v50 = vpop.eup %4473 }
 0x619   : > { %v1918_v51 = vmul.f32 %v4474_v50, %v4470_v36 }
 0x61b   : > { %v1919_v52 = vpack.c.bf16 %v1918_v51, %v1918_v51 }
 0x61d   : > { %4143 = vmatmul.mubr.msk.bf16.vlgmr.msra.gmra.mxu0 %vm1749_vm5, %v1919_v52 }
 0x61e   : > { %4153 = vmatpush3.bf16.msra.mxu0 %v2022_v53  ;;  %4154 = vmatprep.mubr.msk.bf16.mxu0 %vm5161_vm2, %v5160_v11 }
 0x61f   : > { %4164 = vmatprep.subr.bf16.mxu0 %v5160_v11 }
 0x66a   : > { %v1849_v54 = vpop.f32.mrf.mxu0 }
 0x66b   : > { %v1855_v55 = vpack.c.bf16 %v1849_v54, %v1849_v54 }
 0x66c   : > { %v4132_v57 = vpop.f32.mrf.mxu0 }
 0x66d   : > { %4155 = vmatmul.mubr.msk.bf16.vlgmr.msra.gmra.mxu0 %vm1749_vm5, %v1855_v55 }
 0x66e   : > { %v1852_v58 = vpop.f32.mrf.mxu0  ;;  %4166 = vmatprep.mubr.msk.bf16.mxu0 %vm5161_vm2, %v5160_v11 }
 0x670   : > { %v4133_v59 = vpop.f32.mrf.mxu0 }
 0x6dd   : > { %v1963_v61 = vpop.f32.mrf.mxu0 }
 0x6de   : > { %v1969_v62 = vpack.c.bf16 %v1963_v61, %v1963_v61 }
 0x6df   : > { %v4144_v0 = vpop.f32.mrf.mxu0 }
 0x6e0   : > { %4149 = vmatmul.mubr.msk.bf16.vlgmr.msra.gmra.mxu1 %vm1749_vm5, %v1969_v62 }
 0x6e1   : > { %4159 = vmatpush3.bf16.xpose.msra.mxu1 %v2072_v2  ;;  %v1966_v3 = vpop.f32.mrf.mxu0  ;;  %4160 = vmatprep.mubr.msk.bf16.mxu1 %vm5161_vm2, %v5160_v11 }
 0x6e2   : > { %4170 = vmatprep.subr.bf16.mxu1 %v5160_v11 }
 0x6e3   : > { %v4145_v5 = vpop.f32.mrf.mxu0 }
 0x6e8   : > { %4161 = vmatmul.mubr.msk.bf16.vlgmr.msra.gmra.mxu1 %vm1749_vm5, %v2065_v6 }
 0x6e9   : > { %4172 = vmatprep.mubr.msk.bf16.mxu1 %vm5161_vm2, %v5160_v11 }
 0x72d   : > { %v6010_v7 = vpop.f32.mrf.mxu0 }
 0x72f   : > { %v4156_v8 = vpop.f32.mrf.mxu0 }
 0x731   : > { %v2061_v9 = vpop.f32.mrf.mxu0 }
 0x733   : > { %v4157_v10 = vpop.f32.mrf.mxu0 }
 0x7a0   : > { %v6012_v13 = vpop.f32.mrf.mxu1 }
 0x7a1   : > { %v2059_v60 = vadd.f32 %v6010_v7, %v6012_v13 }
 0x7a2   : > { %v4150_v14 = vpop.f32.mrf.mxu1 }
 0x7a4   : > { %v2015_v15 = vpop.f32.mrf.mxu1 }
 0x7a6   : > { %v4151_v16 = vpop.f32.mrf.mxu1 }
 0x7a8   : > { %v2108_v17 = vpop.f32.mrf.mxu1 }
 0x7a9   : > { %v2109_v18 = vadd.f32 %v2108_v17, %v5971_v12 }
 0x7aa   : > { %v4162_v19 = vpop.f32.mrf.mxu1 }
 0x7ab   : > { %v2114_v20 = vsel %vm1749_vm5, %v2109_v18, -inf }
 0x7ac   : > { %2115 = vmax.xlane.f32.xlu0 %v2114_v20  ;;  %v2111_v21 = vpop.f32.mrf.mxu1 }
 0x7ae   : > { %v4163_v22 = vpop.f32.mrf.mxu1 }
 0x7c2   : > { %2126 = vrot.lane.b32.xlu0 %v5957_v4, %s5163_s8 }
 0x7c6   : > { %2222 = vrot.lane.b32.xlu0 %v5952_v63, %s5164_s0 }
 0x835   : > { %v2116_v23 = vpop.xlane.xlu0 %2115 }
 0x836   : > { %v2117_v24 = vsub.f32 %v2109_v18, %v2116_v23 }
 0x838   : > { %v2118_v25 = vmul.f32 1.442695, %v2117_v24 }
 0x839   : > { %v2127_v26 = vpop.permute.xlu0 %2126 }
 0x83a   : > { %4475 = vpow2.f32 %v2118_v25  ;;  %v2132_v27 = vsel %vm1811_vm6, %v2127_v26, 0 }
 0x83b   : > { %4165 = vmatpush3.bf16.msra.mxu0 %v2132_v27 }
 0x83c   : > { %4176 = vmatprep.subr.bf16.mxu0 %v5160_v11 }
 0x83d   : > { %v2223_v38 = vpop.permute.xlu0 %2222 }
 0x847   : > { %v4476_v28 = vpop.eup %4475 }
 0x848   : > { %v2120_v29 = vsel %vm1749_vm5, %v4476_v28, 0.0 }
 0x849   : > { %2121 = vadd.xlane.f32.xlu1 %v2120_v29 }
 0x85a   : > { %2224 = vrot.lane.b32.xlu1 %v5944_v56, %s5164_s0  ;;  %v1742_v56 = vld [vmem:[%s5761_s28 + $0x10] sm:$0xff]  ;;  %s6504_s28 = scalar_lea.vmem [#allocation15], %s5737_s26 }
 0x85b   : > { %v1745_v40 = vpack.c.bf16 %v1743_v39, %v1742_v56  ;;  %v3983_v18 = vld [vmem:[%s6504_s28] ss:$0 sm:$0xff] }
 0x85c   : > { %v2423_v56 = vld [vmem:[%s5776_s1] sm:$0xff] }
 0x85d   : > { %v2179_v41 = vsel %vm1811_vm6, %v1745_v40, 0  ;;  %v2334_v0 = vrot.slane %v1745_v40, 4  ;;  %v1539_v40 = vld [vmem:[%s6505_s5] sm:$0xff] }
 0x85e   : > { %4171 = vmatpush3.bf16.msra.mxu1 %v2179_v41 }
 0x85f   : > { %4182 = vmatprep.subr.bf16.mxu1 %v5160_v11  ;;  %v2339_v3 = vsel %vm1811_vm6, %v2334_v0, 0 }
 0x8d2   : > { %v2122_v63 = vpop.xlane.xlu1 %2121 }
 0x8d3   : > { %4477 = vrcp.f32 %v2122_v63 }
 0x8d6   : > { %v2225_v35 = vpop.permute.xlu1 %2224 }
 0x8d7   : > { %v2230_v37 = vsel %vm1749_vm5, %v2225_v35, 0  ;;  %v2480_v35 = vld [vmem:[%s5791_s12] sm:$0xff] }
 0x8e0   : > { %v4478_v31 = vpop.eup %4477 }
 0x8e1   : > { %v2124_v33 = vmul.f32 %v4478_v31, %v4476_v28  ;;  %v2482_v31 = vld [vmem:[%s5791_s12 + $0x10] sm:$0xff] }
 0x8e3   : > { %v2125_v36 = vpack.c.bf16 %v2124_v33, %v2124_v33 }
 0x8e5   : > { %4167 = vmatmul.mubr.msk.bf16.vlgmr.msra.gmra.mxu0 %vm1749_vm5, %v2125_v36  ;;  %v2481_v36 = vld [vmem:[%s5791_s12 + $0x8] sm:$0xff] }
 0x8e6   : > { %4177 = vmatpush3.bf16.xpose.msra.mxu0 %v2230_v37  ;;  %4178 = vmatprep.mubr.msk.bf16.mxu0 %vm5161_vm2, %v5160_v11  ;;  %v2425_v37 = vld [vmem:[%s5776_s1 + $0x10] sm:$0xff]  ;;  %v2484_v39 = vpack.c.bf16 %v2481_v36, %v2480_v35 }
 0x8e7   : > { %4188 = vmatprep.subr.bf16.mxu0 %v5160_v11 }
 0x8ed   : > { %4179 = vmatmul.mubr.msk.bf16.vlgmr.msra.gmra.mxu0 %vm1749_vm5, %v2223_v38  ;;  %v2426_v38 = vld [vmem:[%s5776_s1 + $0x18] sm:$0xff] }
 0x8ee   : > { %4190 = vmatprep.mubr.msk.bf16.mxu0 %vm5161_vm2, %v5160_v11  ;;  %4189 = vmatpush3.bf16.msra.mxu0 %v2339_v3  ;;  %v2428_v41 = vpack.c.bf16 %v2426_v38, %v2425_v37 }
 0x8ef   : > { %4202 = vmatprep.subr.bf16.mxu0 %v5160_v11 }
 0x9a5   : > { %v2168_v42 = vpop.f32.mrf.mxu0 }
 0x9a6   : > { %v2174_v43 = vpack.c.bf16 %v2168_v42, %v2168_v42  ;;  %v2424_v42 = vld [vmem:[%s5776_s1 + $0x8] sm:$0xff]  ;;  %s6506_s1 = scalar_lea.vmem [#allocation19], %s5737_s26 }
 0x9a7   : > { %v4168_v44 = vpop.f32.mrf.mxu0 }
 0x9a8   : > { %4173 = vmatmul.mubr.msk.bf16.vlgmr.msra.gmra.mxu1 %vm1749_vm5, %v2174_v43  ;;  %v2427_v43 = vpack.c.bf16 %v2424_v42, %v2423_v56  ;;  %v6077_v44 = vpack.c.bf16 %v1539_v40, %v1539_v40 }
 0x9a9   : > { %v2171_v45 = vpop.f32.mrf.mxu0  ;;  %4184 = vmatprep.mubr.msk.bf16.mxu1 %vm5161_vm2, %v5160_v11 }
 0x9ab   : > { %v4169_v46 = vpop.f32.mrf.mxu0 }
 0x9ad   : > { %v2266_v47 = vpop.f32.mrf.mxu0 }
 0x9ae   : > { %v2267_v48 = vadd.f32 %v2266_v47, %v5971_v12 }
 0x9af   : > { %v4180_v49 = vpop.f32.mrf.mxu0 }
 0x9b0   : > { %v2272_v50 = vsel %vm1749_vm5, %v2267_v48, -inf }
 0x9b1   : > { %2273 = vmax.xlane.f32.xlu0 %v2272_v50  ;;  %v2269_v51 = vpop.f32.mrf.mxu0 }
 0x9b3   : > { %v4181_v52 = vpop.f32.mrf.mxu0 }
 0x9c7   : > { %2284 = vrot.lane.b32.xlu0 %v5957_v4, %s5164_s0 }
 0xa3a   : > { %v2274_v53 = vpop.xlane.xlu0 %2273 }
 0xa3b   : > { %v2275_v54 = vsub.f32 %v2267_v48, %v2274_v53  ;;  %v2403_v53 = vsub.s32 1, %v5914_v30 }
 0xa3d   : > { %v2276_v55 = vmul.f32 1.442695, %v2275_v54  ;;  %v2404_v54 = vrot.slane %v5918_v32, %v2403_v53 }
 0xa3e   : > { %v2285_v57 = vpop.permute.xlu0 %2284 }
 0xa3f   : > { %4479 = vpow2.f32 %v2276_v55  ;;  %v2290_v58 = vsel %vm1811_vm6, %v2285_v57, 0  ;;  %v2419_v55 = vrot.slane %v5922_v34, %v2403_v53 }
 0xa40   : > { %4183 = vmatpush3.bf16.msra.mxu1 %v2290_v58 }
 0xa41   : > { %4194 = vmatprep.subr.bf16.mxu1 %v5160_v11 }
 0xa4c   : > { %v4480_v12 = vpop.eup %4479 }
 0xa4d   : > { %v2278_v59 = vsel %vm1749_vm5, %v4480_v12, 0.0 }
 0xa4e   : > { %2279 = vadd.xlane.f32.xlu1 %v2278_v59 }
 0xa68   : > { %v2215_v61 = vpop.f32.mrf.mxu1 }
 0xa69   : > { %v2221_v62 = vadd.f32 %v2215_v61, %v2059_v60  ;;  %v3986_v61 = vld [vmem:[%s6506_s1] ss:$0 sm:$0xff] }
 0xa6a   : > { %v4174_v4 = vpop.f32.mrf.mxu1 }
 0xa6c   : > { %v2218_v2 = vpop.f32.mrf.mxu1 }
 0xa6e   : > { %v4175_v5 = vpop.f32.mrf.mxu1 }
 0xad7   : > { %v2280_v6 = vpop.xlane.xlu1 %2279 }
 0xad8   : > { %4481 = vrcp.f32 %v2280_v6 }
 0xae5   : > { %v4482_v8 = vpop.eup %4481 }
 0xae6   : > { %v2282_v9 = vmul.f32 %v4482_v8, %v4480_v12 }
 0xae8   : > { %v2283_v10 = vpack.c.bf16 %v2282_v9, %v2282_v9 }
 0xaea   : > { %4185 = vmatmul.mubr.msk.bf16.vlgmr.msra.gmra.mxu1 %vm1749_vm5, %v2283_v10 }
 0xaeb   : > { %4198 = vmatprep.mubr.msk.bf16.mxu1 %vm5161_vm2, %v5160_v11  ;;  %4195 = vmatpush3.bf16.msra.mxu1 %v2428_v41 }
 0xaec   : > { %4196 = vmatprep.subr.bf16.mxu1 %v5160_v11 }
 0xaef   : > { %4197 = vmatpush3.bf16.msra.mxu1 %v2427_v43 }
 0xaf0   : > { %4210 = vmatprep.subr.bf16.mxu1 %v5160_v11 }
 0xbaa   : > { %v2326_v7 = vpop.f32.mrf.mxu1 }
 0xbab   : > { %v2332_v13 = vpack.c.bf16 %v2326_v7, %v2326_v7 }
 0xbac   : > { %v4186_v14 = vpop.f32.mrf.mxu1 }
 0xbad   : > { %4191 = vmatmul.mubr.msk.bf16.vlgmr.msra.gmra.mxu0 %vm1749_vm5, %v2332_v13 }
 0xbae   : > { %v2329_v15 = vpop.f32.mrf.mxu1  ;;  %4206 = vmatprep.mubr.msk.bf16.mxu0 %vm5161_vm2, %v5160_v11 }
 0xbb0   : > { %v4187_v16 = vpop.f32.mrf.mxu1 }
 0xc6d   : > { %v2375_v17 = vpop.f32.mrf.mxu0 }
 0xc6e   : > { %v2381_v19 = vadd.f32 %v2375_v17, %v2221_v62  ;;  %v2538_v17 = vld [vmem:[%s6508_s6 + $0x10] sm:$0xff] }
 0xc6f   : > { %v4192_v20 = vpop.f32.mrf.mxu0 }
 0xc70   : > { %v2389_v21 = vadd.f32 %v3983_v18, %v2381_v19  ;;  %v2539_v18 = vld [vmem:[%s6508_s6 + $0x18] sm:$0xff]  ;;  %v2536_v19 = vld [vmem:[%s6508_s6] sm:$0xff] }
 0xc71   : > { %v2378_v22 = vpop.f32.mrf.mxu0  ;;  %v2541_v20 = vpack.c.bf16 %v2539_v18, %v2538_v17 }
 0xc72   : > { %v6060_v23 = vadd.f32 %v2389_v21, %v5890_v1  ;;  %v2483_v1 = vld [vmem:[%s5791_s12 + $0x18] sm:$0xff]  ;;  %s6507_s12 = scalar_lea.vmem [#allocation17], %s5737_s26  ;;  %v2537_v21 = vld [vmem:[%s6508_s6 + $0x8] sm:$0xff] }
 0xc73   : > { %v4193_v24 = vpop.f32.mrf.mxu0  ;;  %v2485_v33 = vpack.c.bf16 %v2483_v1, %v2482_v31  ;;  %v3984_v5 = vld [vmem:[%s6507_s12] ss:$0 sm:$0xff]  ;;  %v2540_v22 = vpack.c.bf16 %v2537_v21, %v2536_v19 }
 0xc74   : > { %v2391_v25 = vsel %vm1544_vm1, %v6060_v23, 0.0 }
 0xc75   : > { %2392 = vadd.xlane.f32.xlu1 %v2391_v25  ;;  %4203 = vmatpush3.bf16.msra.mxu0 %v2485_v33  ;;  %v6126_v25 = vld [vmem:[#allocation9] sm:$0xff] }
 0xc76   : > { %4204 = vmatprep.subr.bf16.mxu0 %v5160_v11 }
 0xc79   : > { %4205 = vmatpush3.bf16.msra.mxu0 %v2484_v39 }
 0xc7a   : > { %4218 = vmatprep.subr.bf16.mxu0 %v5160_v11 }
 0xc7c   : > { %4207 = vmatmul.mubr.msk.bf16.vlgmr.msra.gmra.mxu0 %vm1544_vm1, %v6077_v44 }
 0xc7d   : > { %4220 = vmatprep.mubr.msk.bf16.mxu0 %vm5161_vm2, %v5160_v11 }
 0xcfe   : > { %v2393_v26 = vpop.xlane.xlu1 %2392 }
 0xcff   : > { %v2394_v27 = vmul.f32 0.03125, %v2393_v26 }
 0xd01   : > { %v2395_v28 = vsub.f32 %v6060_v23, %v2394_v27 }
 0xd03   : > { %v2396_v29 = vmul.f32 %v2395_v28, %v2395_v28  ;;  %v2405_v57 = vmul.f32 %v2404_v54, %v2395_v28 }
 0xd05   : > { %v2397_v63 = vsel %vm1544_vm1, %v2396_v29, 0.0 }
 0xd06   : > { %2398 = vadd.xlane.f32.xlu1 %v2397_v63 }
 0xd3c   : > { %v2530_v62 = vpop.f32.mrf.mxu0 }
 0xd3d   : > { %v2531_v4 = vadd.f32 %v3986_v61, %v2530_v62  ;;  %v2590_v61 = vld [vmem:[%s5870_s23 + $0x8] sm:$0xff] }
 0xd3e   : > { %v4208_v0 = vpop.f32.mrf.mxu0 }
 0xd3f   : > { %v6094_v2 = vpack.c.bf16 %v2531_v4, %v2531_v4 }
 0xd40   : > { %v2533_v32 = vpop.f32.mrf.mxu0 }
 0xd41   : > { %2707 = vrot.lane.b32.xlu0 %v6094_v2, %s5162_s22  ;;  %v2602_v3 = vsel %vm1749_vm5, %v6094_v2, 0 }
 0xd42   : > { %v4209_v34 = vpop.f32.mrf.mxu0  ;;  %4219 = vmatpush3.bf16.xpose.msra.mxu0 %v2602_v3 }
 0xd43   : > { %4230 = vmatprep.subr.bf16.mxu0 %v5160_v11 }
 0xd8f   : > { %v2399_v45 = vpop.xlane.xlu1 %2398 }
 0xd90   : > { %v2400_v46 = vmul.f32 0.032258064, %v2399_v45 }
 0xd92   : > { %4483 = vrsqrt.f32 %v2400_v46  ;;  %vm2408_vm7 = vcmp.eq.f32.partialorder %v2400_v46, inf  ;;  %v2411_v49 = vand.u32 2147483648, %v2400_v46  ;;  %vm2410_vm8 = vcmp.eq.f32.partialorder %v2400_v46, 0.0 }
 0xd9f   : > { %v4484_v47 = vpop.eup %4483 }
 0xda0   : > { %v2407_v48 = vmul.f32 %v4484_v47, %v2400_v46  ;;  %v3988_v47 = vld [vmem:[%s6509_s27] ss:$0 sm:$0xff] }
 0xda2   : > { %v2409_v50 = vsel %vm2408_vm7, %v2400_v46, %v2407_v48 }
 0xda3   : > { %v2412_v51 = vsel %vm2410_vm8, %v2411_v49, %v2409_v50 }
 0xda4   : > { %v2413_v52 = vadd.f32 1e-06, %v2412_v51 }
 0xda6   : > { %4485 = vrcp.f32 %v2413_v52 }
 0xdb3   : > { %v4486_v58 = vpop.eup %4485  ;;  %v2708_v10 = vpop.permute.xlu0 %2707 }
 0xdb4   : > { %v2415_v12 = vmul.f32 %v4486_v58, %v2405_v57  ;;  %v2713_v15 = vsel %vm1749_vm5, %v2708_v10, 0 }
 0xdb6   : > { %v2420_v59 = vadd.f32 %v2419_v55, %v2415_v12 }
 0xdb8   : > { %v2421_v60 = vpack.c.bf16 %v2420_v59, %v2420_v59 }
 0xdba   : > { %4199 = vmatmul.mubr.msk.bf16.vlgmr.msra.gmra.mxu1 %vm1544_vm1, %v2421_v60  ;;  %v2589_v60 = vld [vmem:[%s5870_s23] sm:$0xff] }
 0xdbb   : > { %4214 = vmatprep.mubr.msk.bf16.mxu1 %vm5161_vm2, %v5160_v11  ;;  %4211 = vmatpush3.bf16.msra.mxu1 %v2541_v20  ;;  %v2593_v62 = vpack.c.bf16 %v2590_v61, %v2589_v60 }
 0xdbc   : > { %4212 = vmatprep.subr.bf16.mxu1 %v5160_v11 }
 0xdbd   : > { %v2818_v4 = vrot.slane %v2593_v62, 4 }
 0xdbf   : > { %4213 = vmatpush3.bf16.msra.mxu1 %v2540_v22  ;;  %v2823_v0 = vsel %vm1811_vm6, %v2818_v4, 0 }
 0xdc0   : > { %4224 = vmatprep.subr.bf16.mxu1 %v5160_v11 }
 0xdc2   : > { %4215 = vmatmul.mubr.msk.bf16.vlgmr.msra.gmra.mxu1 %vm1544_vm1, %v6077_v44 }
 0xdc3   : > { %4226 = vmatprep.mubr.msk.bf16.mxu1 %vm5161_vm2, %v5160_v11 }
 0xe7a   : > { %v2473_v6 = vpop.f32.mrf.mxu1 }
 0xe7b   : > { %v2474_v8 = vadd.f32 %v3984_v5, %v2473_v6 }
 0xe7c   : > { %v4200_v9 = vpop.f32.mrf.mxu1 }
 0xe7d   : > { %v2479_v7 = vmul.f32 0.35355338, %v2474_v8  ;;  %v2869_v9 = vsel %vm1811_vm6, %v2593_v62, 0 }
 0xe7e   : > { %v2476_v13 = vpop.f32.mrf.mxu1 }
 0xe7f   : > { %v6103_v14 = vpack.c.bf16 %v2479_v7, %v2479_v7 }
 0xe80   : > { %v4201_v16 = vpop.f32.mrf.mxu1 }
 0xe81   : > { %2704 = vrot.lane.b32.xlu1 %v6103_v14, %s5162_s22  ;;  %4221 = vmatmul.mubr.msk.bf16.vlgmr.msra.gmra.mxu0 %vm1749_vm5, %v6103_v14 }
 0xe82   : > { %4231 = vmatpush3.bf16.xpose.msra.mxu0 %v2713_v15  ;;  %4232 = vmatprep.mubr.msk.bf16.mxu0 %vm5161_vm2, %v5160_v11  ;;  %v2583_v41 = vpop.f32.mrf.mxu1 }
 0xe83   : > { %4242 = vmatprep.subr.bf16.mxu0 %v5160_v11  ;;  %v2584_v48 = vadd.f32 %v3988_v47, %v2583_v41 }
 0xe84   : > { %v4216_v42 = vpop.f32.mrf.mxu1 }
 0xe85   : > { %v6137_v49 = vpack.c.bf16 %v2584_v48, %v2584_v48 }
 0xe86   : > { %v2586_v43 = vpop.f32.mrf.mxu1 }
 0xe87   : > { %v2660_v50 = vsel %vm1811_vm6, %v6137_v49, 0 }
 0xe88   : > { %v4217_v44 = vpop.f32.mrf.mxu1  ;;  %4225 = vmatpush3.bf16.msra.mxu1 %v2660_v50 }
 0xe89   : > { %4236 = vmatprep.subr.bf16.mxu1 %v5160_v11 }
 0xef3   : > { %v2705_v24 = vpop.permute.xlu1 %2704 }
 0xef4   : > { %4233 = vmatmul.mubr.msk.bf16.vlgmr.msra.gmra.mxu0 %vm1749_vm5, %v2705_v24 }
 0xef5   : > { %4244 = vmatprep.mubr.msk.bf16.mxu0 %vm5161_vm2, %v5160_v11  ;;  %4243 = vmatpush3.bf16.msra.mxu0 %v2823_v0 }
 0xef6   : > { %4254 = vmatprep.subr.bf16.mxu0 %v5160_v11 }
 0xf41   : > { %v2638_v26 = vpop.f32.mrf.mxu0 }
 0xf42   : > { %v2639_v27 = vadd.f32 %v2638_v26, %v6126_v25 }
 0xf43   : > { %v4222_v28 = vpop.f32.mrf.mxu0 }
 0xf44   : > { %v2644_v29 = vsel %vm1749_vm5, %v2639_v27, -inf }
 0xf45   : > { %2645 = vmax.xlane.f32.xlu0 %v2644_v29  ;;  %v2641_v63 = vpop.f32.mrf.mxu0 }
 0xf47   : > { %v4223_v31 = vpop.f32.mrf.mxu0 }
 0xfb4   : > { %v2749_v1 = vpop.f32.mrf.mxu0 }
 0xfb5   : > { %v2750_v33 = vadd.f32 %v2749_v1, %v6126_v25 }
 0xfb6   : > { %v4234_v35 = vpop.f32.mrf.mxu0 }
 0xfb7   : > { %v2755_v36 = vsel %vm1749_vm5, %v2750_v33, -inf }
 0xfb8   : > { %2756 = vmax.xlane.f32.xlu1 %v2755_v36  ;;  %v2752_v37 = vpop.f32.mrf.mxu0 }
 0xfba   : > { %v4235_v38 = vpop.f32.mrf.mxu0 }
 0xfc9   : > { %2913 = vrot.lane.b32.xlu1 %v6094_v2, %s5163_s8 }
 0xfce   : > { %v2646_v56 = vpop.xlane.xlu0 %2645 }
 0xfcf   : > { %v2647_v39 = vsub.f32 %v2639_v27, %v2646_v56 }
 0xfd1   : > { %v2648_v40 = vmul.f32 1.442695, %v2647_v39 }
 0xfd3   : > { %4487 = vpow2.f32 %v2648_v40 }
 0xfe0   : > { %v4488_v45 = vpop.eup %4487 }
 0xfe1   : > { %v2650_v46 = vsel %vm1749_vm5, %v4488_v45, 0.0 }
 0xfe2   : > { %2651 = vadd.xlane.f32.xlu0 %v2650_v46 }
0x1041   : > { %v2757_v51 = vpop.xlane.xlu1 %2756 }
0x1042   : > { %v2758_v52 = vsub.f32 %v2750_v33, %v2757_v51 }
0x1044   : > { %v2759_v53 = vmul.f32 1.442695, %v2758_v52 }
0x1045   : > { %v2914_v17 = vpop.permute.xlu1 %2913 }
0x1046   : > { %4489 = vpow2.f32 %v2759_v53  ;;  %v2919_v21 = vsel %vm1749_vm5, %v2914_v17, 0 }
0x1053   : > { %v4490_v54 = vpop.eup %4489 }
0x1054   : > { %v2761_v55 = vsel %vm1749_vm5, %v4490_v54, 0.0 }
0x1055   : > { %2762 = vadd.xlane.f32.xlu0 %v2761_v55  ;;  %v2592_v55 = vld [vmem:[%s5870_s23 + $0x18] sm:$0xff] }
0x106b   : > { %v2652_v57 = vpop.xlane.xlu0 %2651  ;;  %2768 = vrot.lane.b32.xlu0 %v6137_v49, %s5162_s22 }
0x106c   : > { %4491 = vrcp.f32 %v2652_v57 }
0x106f   : > { %2911 = vrot.lane.b32.xlu0 %v6103_v14, %s5163_s8 }
0x1079   : > { %v4492_v58 = vpop.eup %4491 }
0x107a   : > { %v2654_v12 = vmul.f32 %v4492_v58, %v4488_v45 }
0x107c   : > { %v2655_v59 = vpack.c.bf16 %v2654_v12, %v2654_v12 }
0x107e   : > { %4227 = vmatmul.mubr.msk.bf16.vlgmr.msra.gmra.mxu1 %vm1749_vm5, %v2655_v59 }
0x107f   : > { %4238 = vmatprep.mubr.msk.bf16.mxu1 %vm5161_vm2, %v5160_v11 }
0x10de   : > { %v2763_v32 = vpop.xlane.xlu0 %2762 }
0x10df   : > { %4493 = vrcp.f32 %v2763_v32 }
0x10e2   : > { %v2769_v34 = vpop.permute.xlu0 %2768 }
0x10e3   : > { %v2774_v3 = vsel %vm1811_vm6, %v2769_v34, 0 }
0x10e4   : > { %4237 = vmatpush3.bf16.msra.mxu1 %v2774_v3 }
0x10e5   : > { %4248 = vmatprep.subr.bf16.mxu1 %v5160_v11 }
0x10e6   : > { %v2912_v26 = vpop.permute.xlu0 %2911 }
0x10ec   : > { %v4494_v5 = vpop.eup %4493 }
0x10ed   : > { %v2765_v6 = vmul.f32 %v4494_v5, %v4490_v54 }
0x10ef   : > { %v2766_v8 = vpack.c.bf16 %v2765_v6, %v2765_v6 }
0x10f1   : > { %4239 = vmatmul.mubr.msk.bf16.vlgmr.msra.gmra.mxu1 %vm1749_vm5, %v2766_v8 }
0x10f2   : > { %4249 = vmatpush3.bf16.msra.mxu1 %v2869_v9  ;;  %4250 = vmatprep.mubr.msk.bf16.mxu1 %vm5161_vm2, %v5160_v11 }
0x10f3   : > { %4260 = vmatprep.subr.bf16.mxu1 %v5160_v11 }
0x113e   : > { %v2696_v10 = vpop.f32.mrf.mxu1 }
0x113f   : > { %v2702_v7 = vpack.c.bf16 %v2696_v10, %v2696_v10 }
0x1140   : > { %v4228_v13 = vpop.f32.mrf.mxu1 }
0x1141   : > { %4251 = vmatmul.mubr.msk.bf16.vlgmr.msra.gmra.mxu1 %vm1749_vm5, %v2702_v7 }
0x1142   : > { %v2699_v15 = vpop.f32.mrf.mxu1  ;;  %4262 = vmatprep.mubr.msk.bf16.mxu1 %vm5161_vm2, %v5160_v11 }
0x1144   : > { %v4229_v16 = vpop.f32.mrf.mxu1 }
0x11b1   : > { %v2810_v18 = vpop.f32.mrf.mxu1 }
0x11b2   : > { %v2816_v19 = vpack.c.bf16 %v2810_v18, %v2810_v18 }
0x11b3   : > { %v4240_v20 = vpop.f32.mrf.mxu1 }
0x11b4   : > { %4245 = vmatmul.mubr.msk.bf16.vlgmr.msra.gmra.mxu0 %vm1749_vm5, %v2816_v19 }
0x11b5   : > { %4255 = vmatpush3.bf16.xpose.msra.mxu0 %v2919_v21  ;;  %v2813_v22 = vpop.f32.mrf.mxu1  ;;  %4256 = vmatprep.mubr.msk.bf16.mxu0 %vm5161_vm2, %v5160_v11 }
0x11b6   : > { %4266 = vmatprep.subr.bf16.mxu0 %v5160_v11 }
0x11b7   : > { %v4241_v24 = vpop.f32.mrf.mxu1 }
0x11bc   : > { %4257 = vmatmul.mubr.msk.bf16.vlgmr.msra.gmra.mxu0 %vm1749_vm5, %v2912_v26 }
0x11bd   : > { %4268 = vmatprep.mubr.msk.bf16.mxu0 %vm5161_vm2, %v5160_v11 }
0x1201   : > { %v6172_v27 = vpop.f32.mrf.mxu1 }
0x1203   : > { %v4252_v28 = vpop.f32.mrf.mxu1 }
0x1205   : > { %v2908_v29 = vpop.f32.mrf.mxu1 }
0x1207   : > { %v4253_v63 = vpop.f32.mrf.mxu1 }
0x1274   : > { %v6174_v31 = vpop.f32.mrf.mxu0 }
0x1276   : > { %v4246_v1 = vpop.f32.mrf.mxu0 }
0x1278   : > { %v2862_v33 = vpop.f32.mrf.mxu0 }
0x127a   : > { %v4247_v35 = vpop.f32.mrf.mxu0 }
0x127b   : > { %v4002_v35 = vld [vmem:[%s6510_s29] ss:$0 sm:$0xff] }
0x127c   : > { %v2955_v36 = vpop.f32.mrf.mxu0 }
0x127d   : > { %v2956_v37 = vadd.f32 %v2955_v36, %v6126_v25 }
0x127e   : > { %v4258_v38 = vpop.f32.mrf.mxu0 }
0x127f   : > { %v2961_v56 = vsel %vm1749_vm5, %v2956_v37, -inf }
0x1280   : > { %2962 = vmax.xlane.f32.xlu0 %v2961_v56  ;;  %v2958_v39 = vpop.f32.mrf.mxu0 }
0x1282   : > { %v4259_v40 = vpop.f32.mrf.mxu0 }
0x1296   : > { %2973 = vrot.lane.b32.xlu0 %v6137_v49, %s5163_s8 }
0x129a   : > { %3069 = vrot.lane.b32.xlu0 %v6103_v14, %s5164_s0 }
0x1309   : > { %v2963_v41 = vpop.xlane.xlu0 %2962 }
0x130a   : > { %v2964_v42 = vsub.f32 %v2956_v37, %v2963_v41 }
0x130c   : > { %v2965_v43 = vmul.f32 1.442695, %v2964_v42 }
0x130d   : > { %v2974_v44 = vpop.permute.xlu0 %2973 }
0x130e   : > { %4495 = vpow2.f32 %v2965_v43  ;;  %v2979_v45 = vsel %vm1811_vm6, %v2974_v44, 0 }
0x130f   : > { %4261 = vmatpush3.bf16.msra.mxu1 %v2979_v45 }
0x1310   : > { %4272 = vmatprep.subr.bf16.mxu1 %v5160_v11 }
0x1311   : > { %v3070_v54 = vpop.permute.xlu0 %3069 }
0x131b   : > { %v4496_v46 = vpop.eup %4495 }
0x131c   : > { %v2967_v47 = vsel %vm1749_vm5, %v4496_v46, 0.0 }
0x131d   : > { %2968 = vadd.xlane.f32.xlu1 %v2967_v47 }
0x132e   : > { %3071 = vrot.lane.b32.xlu1 %v6094_v2, %s5164_s0  ;;  %v2591_v2 = vld [vmem:[%s5870_s23 + $0x10] sm:$0xff]  ;;  %s6511_s23 = sld [smem:[#allocation64_spill]] }
0x132f   : > { %v2594_v57 = vpack.c.bf16 %v2592_v55, %v2591_v2  ;;  %v3332_v55 = vld [vmem:[%s5880_s15 + $0x28] sm:$0xff] }
0x1331   : > { %v3026_v58 = vsel %vm1811_vm6, %v2594_v57, 0  ;;  %v3181_v17 = vrot.slane %v2594_v57, 4 }
0x1332   : > { %4267 = vmatpush3.bf16.msra.mxu0 %v3026_v58 }
0x1333   : > { %4278 = vmatprep.subr.bf16.mxu0 %v5160_v11  ;;  %v3186_v19 = vsel %vm1811_vm6, %v3181_v17, 0  ;;  %v3328_v17 = vld [vmem:[%s5880_s15 + $0x8] sm:$0xff] }
0x1334   : > { %v3271_v47 = vld [vmem:[%s6511_s23 + $0x10] sm:$0xff] }
0x13a6   : > { %v2969_v14 = vpop.xlane.xlu1 %2968 }
0x13a7   : > { %4497 = vrcp.f32 %v2969_v14  ;;  %v3269_v14 = vld [vmem:[%s6511_s23] sm:$0xff] }
0x13aa   : > { %v3072_v51 = vpop.permute.xlu1 %3071 }
0x13ab   : > { %v3077_v53 = vsel %vm1749_vm5, %v3072_v51, 0 }
0x13b4   : > { %v4498_v48 = vpop.eup %4497 }
0x13b5   : > { %v2971_v50 = vmul.f32 %v4498_v48, %v4496_v46 }
0x13b7   : > { %v2972_v52 = vpack.c.bf16 %v2971_v50, %v2971_v50  ;;  %v3270_v50 = vld [vmem:[%s6511_s23 + $0x8] sm:$0xff] }
0x13b8   : > { %v3273_v51 = vpack.c.bf16 %v3270_v50, %v3269_v14 }
0x13b9   : > { %4263 = vmatmul.mubr.msk.bf16.vlgmr.msra.gmra.mxu1 %vm1749_vm5, %v2972_v52  ;;  %v3333_v52 = vld [vmem:[%s5880_s15 + $0x30] sm:$0xff] }
0x13ba   : > { %4273 = vmatpush3.bf16.xpose.msra.mxu1 %v3077_v53  ;;  %4274 = vmatprep.mubr.msk.bf16.mxu1 %vm5161_vm2, %v5160_v11  ;;  %v3334_v53 = vld [vmem:[%s5880_s15 + $0x38] sm:$0xff] }
0x13bb   : > { %4284 = vmatprep.subr.bf16.mxu1 %v5160_v11  ;;  %v3338_v2 = vpack.c.bf16 %v3334_v53, %v3333_v52 }
0x13c1   : > { %4275 = vmatmul.mubr.msk.bf16.vlgmr.msra.gmra.mxu1 %vm1749_vm5, %v3070_v54  ;;  %v3331_v54 = vld [vmem:[%s5880_s15 + $0x20] sm:$0xff] }
0x13c2   : > { %4286 = vmatprep.mubr.msk.bf16.mxu1 %vm5161_vm2, %v5160_v11  ;;  %4285 = vmatpush3.bf16.msra.mxu1 %v3186_v19  ;;  %v3337_v57 = vpack.c.bf16 %v3332_v55, %v3331_v54  ;;  %v4003_v19 = vld [vmem:[%s1521_s3] ss:$0 sm:$0xff]  ;;  %s6514_s3 = sld [smem:[#allocation48_spill]] }
0x13c3   : > { %4298 = vmatprep.subr.bf16.mxu1 %v5160_v11 }
0x13c8   : > { %p4007_p9 = scmp.ne.s32.totalorder %s6514_s3, 1 }
0x13c9   : > { %s6515_s14 = sld [smem:[#allocation91_spill]] (!%p4007_p9) }
0x13ca   : > { %s6516_s18 = sld [smem:[#allocation92_spill]] (!%p4007_p9) }
0x1479   : > { %v3015_v12 = vpop.f32.mrf.mxu1 }
0x147a   : > { %v3021_v59 = vpack.c.bf16 %v3015_v12, %v3015_v12 }
0x147b   : > { %v4264_v60 = vpop.f32.mrf.mxu1 }
0x147c   : > { %4269 = vmatmul.mubr.msk.bf16.vlgmr.msra.gmra.mxu0 %vm1749_vm5, %v3021_v59 }
0x147d   : > { %v3018_v61 = vpop.f32.mrf.mxu1  ;;  %4280 = vmatprep.mubr.msk.bf16.mxu0 %vm5161_vm2, %v5160_v11 }
0x147f   : > { %v4265_v62 = vpop.f32.mrf.mxu1 }
0x1481   : > { %v3113_v4 = vpop.f32.mrf.mxu1 }
0x1482   : > { %v3114_v0 = vadd.f32 %v3113_v4, %v6126_v25  ;;  %v2906_v25 = vadd.f32 %v6172_v27, %v6174_v31 }
0x1483   : > { %v4276_v32 = vpop.f32.mrf.mxu1 }
0x1484   : > { %v3119_v34 = vsel %vm1749_vm5, %v3114_v0, -inf  ;;  %v3250_v32 = vsub.s32 2, %v5914_v30  ;;  %v3327_v30 = vld [vmem:[%s5880_s15] sm:$0xff] }
0x1485   : > { %3120 = vmax.xlane.f32.xlu1 %v3119_v34  ;;  %v3116_v3 = vpop.f32.mrf.mxu1  ;;  %v4507_v34 = vld [vmem:[%s5845_s25] sm:$0x7] }
0x1486   : > { %v3251_v3 = vrot.slane %v4507_v34, %v3250_v32 }
0x1487   : > { %v4277_v5 = vpop.f32.mrf.mxu1 }
0x1488   : > { %v4508_v5 = vld [vmem:[%s5850_s2] sm:$0x7] }
0x150e   : > { %v3121_v6 = vpop.xlane.xlu1 %3120 }
0x150f   : > { %v3122_v8 = vsub.f32 %v3114_v0, %v3121_v6  ;;  %v3266_v6 = vrot.slane %v4508_v5, %v3250_v32 }
0x1511   : > { %v3123_v9 = vmul.f32 1.442695, %v3122_v8 }
0x1513   : > { %4499 = vpow2.f32 %v3123_v9 }
0x1520   : > { %v4500_v10 = vpop.eup %4499 }
0x1521   : > { %v3125_v7 = vsel %vm1749_vm5, %v4500_v10, 0.0 }
0x1522   : > { %3126 = vadd.xlane.f32.xlu0 %v3125_v7 }
0x1538   : > { %3131 = vrot.lane.b32.xlu0 %v6137_v49, %s5164_s0 }
0x153c   : > { %v3062_v13 = vpop.f32.mrf.mxu0 }
0x153d   : > { %v3068_v15 = vadd.f32 %v3062_v13, %v2906_v25  ;;  %v3329_v13 = vld [vmem:[%s5880_s15 + $0x10] sm:$0xff] }
0x153e   : > { %v4270_v16 = vpop.f32.mrf.mxu0 }
0x1540   : > { %v3065_v18 = vpop.f32.mrf.mxu0 }
0x1541   : > { %v3335_v18 = vpack.c.bf16 %v3328_v17, %v3327_v30 }
0x1542   : > { %v4271_v20 = vpop.f32.mrf.mxu0 }
0x15ab   : > { %v3127_v21 = vpop.xlane.xlu0 %3126 }
0x15ac   : > { %4501 = vrcp.f32 %v3127_v21 }
0x15af   : > { %v3132_v22 = vpop.permute.xlu0 %3131 }
0x15b0   : > { %v3137_v24 = vsel %vm1811_vm6, %v3132_v22, 0 }
0x15b1   : > { %4279 = vmatpush3.bf16.msra.mxu0 %v3137_v24 }
0x15b2   : > { %4290 = vmatprep.subr.bf16.mxu0 %v5160_v11 }
0x15b9   : > { %v4502_v49 = vpop.eup %4501 }
0x15ba   : > { %v3129_v26 = vmul.f32 %v4502_v49, %v4500_v10 }
0x15bc   : > { %v3130_v27 = vpack.c.bf16 %v3129_v26, %v3129_v26 }
0x15be   : > { %4281 = vmatmul.mubr.msk.bf16.vlgmr.msra.gmra.mxu0 %vm1749_vm5, %v3130_v27 }
0x15bf   : > { %4294 = vmatprep.mubr.msk.bf16.mxu0 %vm5161_vm2, %v5160_v11 }
0x167e   : > { %v3173_v28 = vpop.f32.mrf.mxu0 }
0x167f   : > { %v3179_v29 = vpack.c.bf16 %v3173_v28, %v3173_v28 }
0x1680   : > { %v4282_v63 = vpop.f32.mrf.mxu0 }
0x1681   : > { %4287 = vmatmul.mubr.msk.bf16.vlgmr.msra.gmra.mxu1 %vm1749_vm5, %v3179_v29 }
0x1682   : > { %v3176_v31 = vpop.f32.mrf.mxu0  ;;  %4306 = vmatprep.mubr.msk.bf16.mxu1 %vm5161_vm2, %v5160_v11  ;;  %4299 = vmatpush3.bf16.msra.mxu1 %v3338_v2 }
0x1683   : > { %4300 = vmatprep.subr.bf16.mxu1 %v5160_v11 }
0x1684   : > { %v4283_v1 = vpop.f32.mrf.mxu0 }
0x1686   : > { %4301 = vmatpush3.bf16.msra.mxu1 %v3337_v57 }
0x1687   : > { %4302 = vmatprep.subr.bf16.mxu1 %v5160_v11 }
0x1741   : > { %v3222_v33 = vpop.f32.mrf.mxu1 }
0x1742   : > { %v3228_v36 = vadd.f32 %v3222_v33, %v3068_v15  ;;  %v3330_v15 = vld [vmem:[%s5880_s15 + $0x18] sm:$0xff] }
0x1743   : > { %v4288_v37 = vpop.f32.mrf.mxu1  ;;  %v3336_v16 = vpack.c.bf16 %v3330_v15, %v3329_v13 }
0x1744   : > { %v3236_v38 = vadd.f32 %v4002_v35, %v3228_v36 }
0x1745   : > { %v3225_v56 = vpop.f32.mrf.mxu1  ;;  %4303 = vmatpush3.bf16.msra.mxu1 %v3336_v16 }
0x1746   : > { %v6222_v39 = vadd.f32 %v3236_v38, %v6060_v23  ;;  %v3272_v23 = vld [vmem:[%s6511_s23 + $0x18] sm:$0xff]  ;;  %4304 = vmatprep.subr.bf16.mxu1 %v5160_v11 }
0x1747   : > { %v4289_v40 = vpop.f32.mrf.mxu1  ;;  %v3274_v48 = vpack.c.bf16 %v3272_v23, %v3271_v47 }
0x1748   : > { %v3238_v41 = vsel %vm1544_vm1, %v6222_v39, 0.0 }
0x1749   : > { %3239 = vadd.xlane.f32.xlu1 %v3238_v41  ;;  %4291 = vmatpush3.bf16.msra.mxu0 %v3274_v48 }
0x174a   : > { %4292 = vmatprep.subr.bf16.mxu0 %v5160_v11  ;;  %4305 = vmatpush3.bf16.msra.mxu1 %v3335_v18  ;;  %v4005_v11 = vld [vmem:[%s1529_s19] ss:$0 sm:$0xff] }
0x174d   : > { %4293 = vmatpush3.bf16.msra.mxu0 %v3273_v51 }
0x17d2   : > { %v3240_v42 = vpop.xlane.xlu1 %3239 }
0x17d3   : > { %v3241_v43 = vmul.f32 0.03125, %v3240_v42 }
0x17d5   : > { %v3242_v44 = vsub.f32 %v6222_v39, %v3241_v43 }
0x17d7   : > { %v3243_v45 = vmul.f32 %v3242_v44, %v3242_v44  ;;  %v3252_v8 = vmul.f32 %v3251_v3, %v3242_v44 }
0x17d9   : > { %v3244_v46 = vsel %vm1544_vm1, %v3243_v45, 0.0 }
0x17da   : > { %3245 = vadd.xlane.f32.xlu1 %v3244_v46 }
0x1863   : > { %v3246_v58 = vpop.xlane.xlu1 %3245 }
0x1864   : > { %v3247_v12 = vmul.f32 0.032258064, %v3246_v58 }
0x1866   : > { %4503 = vrsqrt.f32 %v3247_v12  ;;  %vm3255_vm9 = vcmp.eq.f32.partialorder %v3247_v12, inf  ;;  %v3258_v61 = vand.u32 2147483648, %v3247_v12  ;;  %vm3257_vm10 = vcmp.eq.f32.partialorder %v3247_v12, 0.0 }
0x1873   : > { %v4504_v59 = vpop.eup %4503 }
0x1874   : > { %v3254_v60 = vmul.f32 %v4504_v59, %v3247_v12 }
0x1876   : > { %v3256_v62 = vsel %vm3255_vm9, %v3247_v12, %v3254_v60 }
0x1877   : > { %v3259_v4 = vsel %vm3257_vm10, %v3258_v61, %v3256_v62 }
0x1878   : > { %v3260_v0 = vadd.f32 1e-06, %v3259_v4 }
0x187a   : > { %4505 = vrcp.f32 %v3260_v0 }
0x1887   : > { %v4506_v9 = vpop.eup %4505 }
0x1888   : > { %v3262_v10 = vmul.f32 %v4506_v9, %v3252_v8 }
0x188a   : > { %v3267_v7 = vadd.f32 %v3266_v6, %v3262_v10 }
0x188c   : > { %v3268_v25 = vpack.c.bf16 %v3267_v7, %v3267_v7 }
0x188e   : > { %4295 = vmatmul.mubr.msk.bf16.vlgmr.msra.gmra.mxu0 %vm1544_vm1, %v3268_v25 }
0x194e   : > { %v3319_v20 = vpop.f32.mrf.mxu0 }
0x194f   : > { %v3320_v21 = vadd.f32 %v4003_v19, %v3319_v20 }
0x1950   : > { %v4296_v22 = vpop.f32.mrf.mxu0 }
0x1951   : > { %v3325_v24 = vmax.f32 %v3320_v21, 0.0 }
0x1952   : > { %v3322_v49 = vpop.f32.mrf.mxu0 }
0x1953   : > { %v3326_v26 = vpack.c.bf16 %v3325_v24, %v3325_v24 }
0x1954   : > { %v4297_v27 = vpop.f32.mrf.mxu0 }
0x1955   : > { %4307 = vmatmul.mubr.msk.bf16.vlgmr.msra.gmra.mxu1 %vm3346_vm11, %v3326_v26 }
0x1a15   : > { %v3384_v28 = vpop.f32.mrf.mxu1 }
0x1a16   : > { %v3385_v29 = vadd.f32 %v4005_v11, %v3384_v28 }
0x1a17   : > { %v4308_v63 = vpop.f32.mrf.mxu1  ;;  %3395 = sbr.rel (%p4007_p9) target bundleno = 7009 (0x1b61), region = 208 }
0x1a18   : > { %v3390_v31 = vadd.f32 %v3385_v29, %v6222_v39 }
0x1a19   : > { %v3387_v1 = vpop.f32.mrf.mxu1 }
0x1a1a   : > { %3391 = vst.msk [vmem:[#allocation2] sm:$0xff] %vm1544_vm1, %v3390_v31 }
0x1a1b   : > { %v4309_v33 = vpop.f32.mrf.mxu1 }
0x1a1c   : > { %v3398_v35 = vsel %vm1544_vm1, %v3390_v31, 0.0  ;;  %v4008_v23 = vld [vmem:[%s6515_s14] ss:$0 sm:$0xff] }
0x1a1d   : > { %3399 = vadd.xlane.f32.xlu0 %v3398_v35  ;;  %v4009_v50 = vld [vmem:[%s6516_s18] ss:$0 sm:$0xff] }
0x1aa6   : > { %v3400_v36 = vpop.xlane.xlu0 %3399 }
0x1aa7   : > { %v3401_v37 = vmul.f32 0.03125, %v3400_v36 }
0x1aa9   : > { %v3402_v38 = vsub.f32 %v3390_v31, %v3401_v37 }
0x1aab   : > { %v3403_v56 = vmul.f32 %v3402_v38, %v3402_v38  ;;  %v3414_v14 = vmul.f32 %v4008_v23, %v3402_v38 }
0x1aad   : > { %v3404_v40 = vsel %vm1544_vm1, %v3403_v56, 0.0 }
0x1aae   : > { %3405 = vadd.xlane.f32.xlu0 %v3404_v40 }
0x1b37   : > { %v3406_v41 = vpop.xlane.xlu0 %3405 }
0x1b38   : > { %v3407_v42 = vmul.f32 0.032258064, %v3406_v41 }
0x1b3a   : > { %4509 = vrsqrt.f32 %v3407_v42  ;;  %vm3417_vm12 = vcmp.eq.f32.partialorder %v3407_v42, inf  ;;  %v3420_v44 = vand.u32 2147483648, %v3407_v42  ;;  %vm3419_vm13 = vcmp.eq.f32.partialorder %v3407_v42, 0.0 }
0x1b47   : > { %v4510_v39 = vpop.eup %4509 }
0x1b48   : > { %v3416_v43 = vmul.f32 %v4510_v39, %v3407_v42 }
0x1b4a   : > { %v3418_v45 = vsel %vm3417_vm12, %v3407_v42, %v3416_v43 }
0x1b4b   : > { %v3421_v46 = vsel %vm3419_vm13, %v3420_v44, %v3418_v45 }
0x1b4c   : > { %v3422_v47 = vadd.f32 1e-06, %v3421_v46 }
0x1b4e   : > { %4511 = vrcp.f32 %v3422_v47 }
0x1b5b   : > { %v4512_v48 = vpop.eup %4511 }
0x1b5c   : > { %v3424_v51 = vmul.f32 %v4512_v48, %v3414_v14 }
0x1b5e   : > { %v3431_v52 = vadd.f32 %v4009_v50, %v3424_v51 }
0x1b60   : > { %3432 = vst.msk [vmem:[%s1490_s7] sm:$0xff] %vm1544_vm1, %v3431_v52 }
0x1b61 PF: > { %s6517_s19 = sld [smem:[#allocation49_spill]]  ;;  %s3447_s5 = sshll.u32 %s1490_s7, 4  ;;  %s3448_s5 = int_to_ptr.vmem [resolvable:$true] %s3447_s5 }
0x1b62   : > { %s6518_s21 = sld [smem:[#allocation46_spill]]  ;;  %s4955_s6 = scalar_lea.vmem %s3448_s5, 128 }
0x1b63   : > { %s6519_s13 = sld [smem:[#allocation60_spill]]  ;;  %p4956_p4 = scmp.ne.s32.totalorder %s3448_s5, %s4955_s6 }
0x1b64   : > { %s6520_s8 = sld [smem:[#allocation93_spill]]  ;;  %s5165_s27 = smov [#allocation24]  }
0x1b65   : > { %s4959_s29 = sshll.u32 %s5165_s27, 4  ;;  %s4960_s29 = int_to_ptr.vmem [resolvable:$false] %s4959_s29 }
0x1b66   : > { %s4961_s23 = scalar_lea.vmem %s4960_s29, 256  ;;  %p4962_p13 = scmp.lt.s32.totalorder %s3448_s5, %s4960_s29 }
0x1b67   : > { %s4011_s17 = sshll.u32 %s6517_s19, 7  ;;  %p4963_p2 = scmp.lt.s32.totalorder %s4961_s23, %s4955_s6 }
0x1b68   : > { %s6522_s1 = sand.u32 1, %s6518_s21  }
0x1b69   : > { %s3434_s12 = scalar_lea.sflag [#allocation5], %s6522_s1  ;;  %p6523_p11 = scmp.ne.s32.totalorder %s6519_s13, 0 }
0x1b6a   : > { %s6521_s28 = smov %s6520_s8  ;;  %s3445_s0 = scalar_lea.hbm %s6520_s8, %s4011_s17 }
0x1b6b   : > { %p4957_p3 = pnand %p4956_p4, %p6523_p11  ;;  %p4964_p8 = por %p4963_p2, %p4962_p13 }
0x1b6d   : > { %p4958_p6 = pneg %p4957_p3 }
0x1b6f   : > { %p4965_p7 = pnand %p4964_p8, %p4958_p6 }
0x1b71   : > { %4968 = shalt.err (!%p4965_p7)
}
0x1b72   : > { %s4969_s25 = scalar_lea.hbm %s3445_s0, 128  ;;  %s4973_s26 = scalar_lea.hbm %s6521_s28, 256 }
0x1b73   : > { %p4970_p12 = scmp.ne.s32.totalorder %s3445_s0, %s4969_s25  ;;  %p4974_p5 = scmp.lt.s32.totalorder %s3445_s0, %s6521_s28 }
0x1b74   : > { %p4975_p10 = scmp.lt.s32.totalorder %s4973_s26, %s4969_s25 }
0x1b75   : > { %p4971_p1 = pnand %p4970_p12, %p6523_p11 }
0x1b76   : > { %p4976_p9 = por %p4975_p10, %p4974_p5 }
0x1b77   : > { %p4972_p0 = pneg %p4971_p1 }
0x1b79   : > { %p4977_p4 = pnand %p4976_p9, %p4972_p0 }
0x1b7b   : > { %4980 = shalt.err (!%p4977_p4)
}
0x1b7c   : > { %4348 = dma.vmem_to_hbm [thread:$0]  (%p6523_p11), %s3448_s5, 128, %s3445_s0, %s3434_s12  }
0x1b7d PF: > { %s6524_s4 = sld [smem:[#allocation52_spill]] }
0x1b7e   : > { %s6525_s9 = sld [smem:[#allocation45_spill]] }
0x1b7f   : > { %s6526_s3 = sld [smem:[#allocation61_spill]] }
0x1b83   : > { %p4365_p3 = scmp.ge.s32.totalorder %s6524_s4, 2 }
0x1b84   : > { %s3459_s11 = sand.u32 1, %s6525_s9  }
0x1b85   : > { %p6527_p6 = scmp.ne.s32.totalorder %s6526_s3, 0  ;;  %s3460_s30 = scalar_lea.sflag [#allocation5], %s3459_s11 }
0x1b87   : > { %p4358_p13 = pnand %p4365_p3, %p6527_p6 }
0x1b89   : > { %p4359_p2 = pneg %p4358_p13 }
0x1b8b   : > { %5094 = dma.done.wait (%p4359_p2), %s3460_s30, 128  }
0x1b8c   : > { %5096 = vsyncadd (%p4359_p2), %s3460_s30, 4294967168  ;;  %s48_s2 = sadd.s32 1, %s6524_s4   ;;  %s6528_s8 = sld [smem:[#allocation43_spill]] }
0x1b8d   : > { %p45_p8 = scmp.ge.s32.totalorder %s48_s2, 6   ;;  %s6529_s5 = sld [smem:[#allocation44_spill]] }
0x1b8e   : > { %s6530_s9 = sld [smem:[#allocation57_spill]] }
0x1b8f   : > { %s6531_s30 = sld [smem:[#allocation46_spill]] }
0x1b90   : > { %s6532_s3 = sld [smem:[#allocation47_spill]] }
0x1b91   : > { %s6533_s6 = sld [smem:[#allocation58_spill]]  ;;  %47 = sbr.rel (!%p45_p8) target bundleno = 42 (0x2a), region = 376 }
0x1b92   : > { %s6534_s10 = sld [smem:[#allocation50_spill]] }
0x1b93   : > { %s6535_s0 = sld [smem:[#allocation51_spill]] }
0x1b94   : > { %s6536_s11 = sld [smem:[#allocation54_spill]] }
0x1b95   : > { %s6537_s29 = sld [smem:[#allocation55_spill]] }
0x1b96   :  { %3465 = vsyncpa [#allocation4], 1 }
0x1b97   :  { %3467 = vsyncpa [#allocation4 + $0x1], 1 }
0x1b98   :  { %3468 = vsyncpa [#allocation7], 1 }
0x1b99   :  { %3470 = vsyncpa [#allocation7 + $0x1], 1 }
0x1b9a   :  { %3471 = vsyncpa [#allocation10], 1 }
0x1b9b   :  { %3472 = vsyncpa [#allocation5], 1 }
0x1b9c   :  { %3474 = vsyncpa [#allocation5 + $0x1], 1 }

</bundles_post_ra>
